<compile_context>
chip_gen: v5e
topology: v5e:2x2
jax: 0.10.0
libtpu: 0.0.40
codegen_flags: <defaults>
</compile_context>

<pallas_src>
import functools

import numpy as np
import jax
import jax.numpy as jnp
from jax.experimental import pallas as pl
from jax.experimental.pallas import tpu as pltpu

# ------------------------------------------------------------------------
# Synthetic hierarchy (replaces taxonomy file + ./data/rcv1_prob.json)
# ------------------------------------------------------------------------
LABEL_MAP = {'A': 0, 'B': 1, 'a1': 2, 'a2': 3, 'b1': 4, 'x1': 5, 'x2': 6, 'x3': 7}
N_LABELS = len(LABEL_MAP)
HIERARCHY_PROB = {
    'Root': {'A': 0.6, 'B': 0.4},
    'A':    {'a1': 0.5, 'a2': 0.5},
    'B':    {'b1': 1.0},
    'a1':   {'x1': 0.3, 'x2': 0.3, 'x3': 0.4},
}
# parent label id -> child label ids (get_hierarchy_relations equivalent)
RECURSIVE_RELATION = {0: [2, 3], 1: [4], 2: [5, 6, 7]}
REC_PAIRS = tuple((p, c) for p, cs in RECURSIVE_RELATION.items() for c in cs)
FIRST_LEVEL = list(HIERARCHY_PROB['Root'].keys())
SECOND_LEVEL_WITH_CHILD = []
for _k in FIRST_LEVEL:
    if _k in HIERARCHY_PROB:
        for _kk in HIERARCHY_PROB[_k]:
            if _kk in HIERARCHY_PROB:
                SECOND_LEVEL_WITH_CHILD.append(_kk)
RECURSIVE_PENALTY = 1e-4
SIM_SCALE = 1e-4


def build_R():
    """R[i, j] = 1 iff j is a descendant of i (or j == i)."""
    children = {LABEL_MAP[p]: [LABEL_MAP[c] for c in HIERARCHY_PROB[p]]
                for p in HIERARCHY_PROB if p != 'Root'}

    def descendants(i):
        out = {i}
        for c in children.get(i, []):
            out |= descendants(c)
        return out

    R = np.zeros((N_LABELS, N_LABELS), dtype=np.float32)
    for i in range(N_LABELS):
        for j in descendants(i):
            R[i, j] = 1.0
    return R


def _round_up(x, m):
    return (x + m - 1) // m * m


def _pick_b_tile(b, np_lanes, budget_bytes=2 << 20):
    """Largest multiple-of-8 batch tile whose two (Np, Np) f32 3-D intermediates per
    batch row stay under `budget_bytes` (bigger tile -> fewer per-grid-step overheads)."""
    per_row = 2 * np_lanes * np_lanes * 4
    t = max(8, (budget_bytes // max(per_row, 1)) // 8 * 8)
    return int(min(_round_up(b, 8), t))


# ------------------------------------------------------------------------
# Fused Pallas kernel
# ------------------------------------------------------------------------
def _fused_loss_kernel(logits_ref, targets_ref, r_ref, params_ref, feat_ref, idx_ref,
                       out_ref, acc_ref, *,
                       constrained, b_actual, n_actual, b_tile, n_cse_rows,
                       rec_pairs, rec_penalty, sim_scale):
    """Grid axis 0 tiles the (padded) batch; R / params / feature / indices stay resident.

    out_ref (SMEM f32[4]) = [loss, org_loss, sim_loss, recur_loss]
    acc_ref (SMEM f32[1]) = running BCE partial sum across batch tiles.
    """
    step = pl.program_id(0)

    # ---------------- constrained BCE: per-tile partial sum ----------------
    lg = logits_ref[...]                          # (b_tile, Np), lane-dense
    t = targets_ref[...]

    if constrained:
        p = jax.nn.sigmoid(lg)
        tp = t * p                                # pre-multiply on the 2-D tile (cheap)
        r_mask = r_ref[...] > 0.0                 # (Np, Np) bool, built once per tile
        # masked_*[b, i, j] = value[b, j] where R[i, j] > 0 else 0.
        # (At N padded to one 128-lane tile a single lane max-reduce is already minimal;
        #  for much larger N switch to a running VALU max over j-tiles.)
        masked_p = jnp.where(r_mask[None, :, :], p[:, None, :], 0.0)    # (b_tile, Np, Np)
        masked_tp = jnp.where(r_mask[None, :, :], tp[:, None, :], 0.0)  # (b_tile, Np, Np)
        constr = jnp.max(masked_p, axis=-1)                              # (b_tile, Np)
        constr_t = jnp.max(masked_tp, axis=-1)                           # (b_tile, Np)
        train_out = (1.0 - t) * constr + t * constr_t
    else:
        train_out = lg                             # torch passes raw "logits" to BCELoss here

    # torch.nn.BCELoss with log clamped at -100, mean reduction (mean applied at finalize)
    log_p = jnp.maximum(jnp.log(train_out), -100.0)
    log_q = jnp.maximum(jnp.log(1.0 - train_out), -100.0)
    bce = -(t * log_p + (1.0 - t) * log_q)

    # mask out padded rows/cols so the mean is over the original B*N elements
    row = jax.lax.broadcasted_iota(jnp.int32, bce.shape, 0) + step * b_tile
    col = jax.lax.broadcasted_iota(jnp.int32, bce.shape, 1)
    valid = jnp.logical_and(row < b_actual, col < n_actual).astype(jnp.float32)
    tile_sum = jnp.sum(bce * valid)

    @pl.when(step == 0)
    def _init():
        acc_ref[0] = jnp.float32(0.0)

    acc_ref[0] = acc_ref[0] + tile_sum

    # ---------------- finalize: rec-reg + cse + output scalars ----------------
    @pl.when(step == pl.num_programs(0) - 1)
    def _finalize():
        org_loss = acc_ref[0] / float(b_actual * n_actual)

        # recursive regularization: 0.5 * sum ||params[parent] - params[child]||^2
        # parent/child ids are compile-time constants -> static slices, no gather, no launch.
        rec = jnp.float32(0.0)
        for pi, ci in rec_pairs:
            d = params_ref[pl.ds(pi, 1), :] - params_ref[pl.ds(ci, 1), :]   # (1, Hp)
            rec = rec + jnp.sum(d * d)
        rec_reg = 0.5 * rec

        # cse (contrastive cosine) loss, both hierarchy levels fused.
        # Gather (3 * 2B, Hp) rows of the flattened feature via a one-hot MXU matmul.
        idx = idx_ref[...]                                                  # (3*M, 1) int32
        n_rows = idx.shape[0]
        flat_rows = feat_ref.shape[0]
        onehot = (idx == jax.lax.broadcasted_iota(
            jnp.int32, (n_rows, flat_rows), 1)).astype(jnp.float32)         # (3*M, B*N)
        g = jnp.dot(onehot, feat_ref[...], preferred_element_type=jnp.float32)  # (3*M, Hp)

        m = n_cse_rows
        f1 = g[0:m]
        f2 = g[m:2 * m]
        ch = g[2 * m:3 * m]

        def _cos(a, b):  # nn.CosineSimilarity(dim=1, eps=1e-6), rsqrt form (no EUP divides)
            eps2 = 1e-12
            dot = jnp.sum(a * b, axis=1, keepdims=True)
            na2 = jnp.sum(a * a, axis=1, keepdims=True)
            nb2 = jnp.sum(b * b, axis=1, keepdims=True)
            return dot * jax.lax.rsqrt(jnp.maximum(na2, eps2)) \
                       * jax.lax.rsqrt(jnp.maximum(nb2, eps2))

        sim_ff = _cos(f1, f2)
        sim_fc = _cos(f1, ch)
        # -log(e^{sc/T} / (e^{sc/T} + e^{sf/T})) == softplus((sf - sc)/T)   (stable form)
        dlt = (sim_ff - sim_fc) / 0.05
        cse = jnp.sum(jnp.maximum(dlt, 0.0) + jnp.log1p(jnp.exp(-jnp.abs(dlt))))

        if constrained:
            recur_loss = rec_penalty * rec_reg
            sim_loss = sim_scale * cse
            loss = org_loss               # reference returns org_loss only as `loss`
        else:
            recur_loss = jnp.float32(0.0)
            sim_loss = cse
            loss = org_loss + recur_loss + sim_loss

        out_ref[0] = loss
        out_ref[1] = org_loss
        out_ref[2] = sim_loss
        out_ref[3] = recur_loss


# ------------------------------------------------------------------------
# Host-side random label sampling (mirrors np.random.choice in the torch code)
# ------------------------------------------------------------------------
def sample_cse_label_ids(rng_np, batch):
    f1_all, f2_all, ch_all = [], [], []
    for level in (FIRST_LEVEL, SECOND_LEVEL_WITH_CHILD):
        f1_names = rng_np.choice(level, batch)
        ch_names = [rng_np.choice(list(HIERARCHY_PROB[str(f1_names[i])].keys()), 1)[0]
                    for i in range(batch)]
        f2_names = rng_np.choice(level, batch)
        f1_all.append(np.array([LABEL_MAP[str(x)] for x in f1_names], np.int32))
        f2_all.append(np.array([LABEL_MAP[str(x)] for x in f2_names], np.int32))
        ch_all.append(np.array([LABEL_MAP[str(x)] for x in ch_names], np.int32))
    return np.concatenate(f1_all), np.concatenate(f2_all), np.concatenate(ch_all)


# ------------------------------------------------------------------------
# Forward (mirrors ClassificationLoss.forward) — one fused pallas_call
# ------------------------------------------------------------------------
def classification_loss_forward(logits, targets, recursive_params, feature, R,
                                f1_ids, f2_ids, ch_ids,
                                recursive_constraint=True, b_tile=None):
    logits = jnp.asarray(logits, jnp.float32)
    targets = jnp.asarray(targets, jnp.float32)
    R = jnp.asarray(R, jnp.float32)
    recursive_params = jnp.asarray(recursive_params, jnp.float32)
    feature = jnp.asarray(feature, jnp.float32)

    B, N = logits.shape
    H = feature.shape[-1]
    Np = _round_up(N, 128)          # lane-dense label axis
    Hp = _round_up(H, 128)          # lane-dense hidden axis
    if b_tile is None:
        b_tile = _pick_b_tile(B, Np)    # biggest tile within the VMEM budget
    Bp = _round_up(B, b_tile)       # sublane-aligned, tileable batch
    num_tiles = Bp // b_tile

    # Padded inputs (padded rows/cols are masked out of the mean inside the kernel).
    logits_p = jnp.zeros((Bp, Np), jnp.float32).at[:B, :N].set(logits)
    targets_p = jnp.zeros((Bp, Np), jnp.float32).at[:B, :N].set(targets)
    R_p = jnp.zeros((Np, Np), jnp.float32).at[:N, :N].set(R)
    params_p = jnp.zeros((N, Hp), jnp.float32).at[:, :H].set(recursive_params)
    feat_flat = jnp.zeros((B * N, Hp), jnp.float32).at[:, :H].set(feature.reshape(B * N, H))

    # Flattened row indices (both levels concatenated; sampled label ids come from the host RNG).
    rows = np.concatenate([np.arange(B), np.arange(B)]).astype(np.int64)

    def _flat(ids):
        return (rows * N + np.asarray(ids, np.int64)).astype(np.int32)

    idx_all = jnp.asarray(
        np.concatenate([_flat(f1_ids), _flat(f2_ids), _flat(ch_ids)]).reshape(-1, 1))

    kernel = functools.partial(
        _fused_loss_kernel,
        constrained=bool(recursive_constraint),
        b_actual=B, n_actual=N, b_tile=b_tile, n_cse_rows=2 * B,
        rec_pairs=REC_PAIRS, rec_penalty=RECURSIVE_PENALTY, sim_scale=SIM_SCALE)

    out = pl.pallas_call(
        kernel,
        out_shape=jax.ShapeDtypeStruct((4,), jnp.float32),
        grid=(num_tiles,),
        in_specs=[
            pl.BlockSpec((b_tile, Np), lambda i: (i, 0)),        # logits   (batch-tiled)
            pl.BlockSpec((b_tile, Np), lambda i: (i, 0)),        # targets  (batch-tiled)
            pl.BlockSpec(memory_space=pltpu.MemorySpace.VMEM),   # R        (resident)
            pl.BlockSpec(memory_space=pltpu.MemorySpace.VMEM),   # params   (resident)
            pl.BlockSpec(memory_space=pltpu.MemorySpace.VMEM),   # feature  (resident, flat)
            pl.BlockSpec(memory_space=pltpu.MemorySpace.VMEM),   # cse gather indices
        ],
        out_specs=pl.BlockSpec(memory_space=pltpu.MemorySpace.SMEM),
        scratch_shapes=[pltpu.SMEM((1,), jnp.float32)],
        compiler_params=pltpu.CompilerParams(
            # batch axis carries an SMEM accumulator + single finalize -> reduction axis
            dimension_semantics=("arbitrary",)),
    )(logits_p, targets_p, R_p, params_p, feat_flat, idx_all)

    return out[0], out[1], out[2], out[3]


# ------------------------------------------------------------------------
# Pure-JAX reference (mirrors the torch module, original formulations)
# ------------------------------------------------------------------------
def reference_forward(logits, targets, recursive_params, feature, R,
                      f1_ids, f2_ids, ch_ids, recursive_constraint=True):
    logits = jnp.asarray(logits, jnp.float32)
    targets = jnp.asarray(targets, jnp.float32)
    R = jnp.asarray(R, jnp.float32)
    B, N = logits.shape

    if recursive_constraint:
        p = jax.nn.sigmoid(logits)
        constr = jnp.max(R[None, :, :] * p[:, None, :], axis=-1)
        constr_t = jnp.max(R[None, :, :] * (targets * p)[:, None, :], axis=-1)
        train_out = (1.0 - targets) * constr + targets * constr_t
    else:
        train_out = logits
    log_p = jnp.maximum(jnp.log(train_out), -100.0)
    log_q = jnp.maximum(jnp.log(1.0 - train_out), -100.0)
    org = jnp.mean(-(targets * log_p + (1.0 - targets) * log_q))

    rec = jnp.float32(0.0)
    for pi, ci in REC_PAIRS:
        d = recursive_params[pi] - recursive_params[ci]
        rec = rec + 0.5 * jnp.sum(d * d)

    rows = jnp.concatenate([jnp.arange(B), jnp.arange(B)])
    a = feature[rows, jnp.asarray(f1_ids)]
    b = feature[rows, jnp.asarray(f2_ids)]
    c = feature[rows, jnp.asarray(ch_ids)]

    def cos(x, y):
        eps = 1e-6
        nx = jnp.maximum(jnp.sqrt(jnp.sum(x * x, axis=1)), eps)
        ny = jnp.maximum(jnp.sqrt(jnp.sum(y * y, axis=1)), eps)
        return jnp.sum(x * y, axis=1) / (nx * ny)

    sff = cos(a, b)
    sfc = cos(a, c)
    ec = jnp.exp(sfc / 0.05)
    ef = jnp.exp(sff / 0.05)
    cse = jnp.sum(-jnp.log(ec / (ec + ef)))

    if recursive_constraint:
        recur = RECURSIVE_PENALTY * rec
        sim = SIM_SCALE * cse
        loss = org
    else:
        recur = jnp.float32(0.0)
        sim = cse
        loss = org + recur + sim
    return loss, org, sim, recur


# ------------------------------------------------------------------------
if __name__ == "__main__":
    B, H = 16, 32   # B=16 with b_tile=8 -> 2 grid steps (exercises the tiled accumulator)
    key = jax.random.PRNGKey(0)
    k1, k2, k3, k4 = jax.random.split(key, 4)

    logits = jax.random.normal(k1, (B, N_LABELS), dtype=jnp.float32)
    targets = (jax.random.uniform(k2, (B, N_LABELS)) > 0.5).astype(jnp.float32)
    recursive_params = jax.random.normal(k3, (N_LABELS, H), dtype=jnp.float32)
    feature = jax.random.normal(k4, (B, N_LABELS, H), dtype=jnp.float32)
    R = jnp.asarray(build_R())

    rng_np = np.random.default_rng(0)   # deterministic replacement for np.random.choice
    f1_ids, f2_ids, ch_ids = sample_cse_label_ids(rng_np, B)

    outs = classification_loss_forward(
        logits, targets, recursive_params, feature, R,
        f1_ids, f2_ids, ch_ids, recursive_constraint=True, b_tile=8)
    outs = jax.block_until_ready(outs)

    ref = reference_forward(
        logits, targets, recursive_params, feature, R,
        f1_ids, f2_ids, ch_ids, recursive_constraint=True)
    ref = jax.block_until_ready(ref)

    got = np.array([float(x) for x in outs])
    want = np.array([float(x) for x in ref])

    assert np.all(np.isfinite(got)), got
    np.testing.assert_allclose(got, want, rtol=2e-3, atol=1e-5)
    print("KERNEL_OK")
</pallas_src>

<mosaic_0001>
module attributes {stable_mosaic.version = 11 : i64} {
  func.func @_fused_loss_kernel(%arg0: i32, %arg1: memref<8x128xf32, #tpu.memory_space<vmem>>, %arg2: memref<8x128xf32, #tpu.memory_space<vmem>>, %arg3: memref<128x128xf32, #tpu.memory_space<vmem>>, %arg4: memref<8x128xf32, #tpu.memory_space<vmem>>, %arg5: memref<128x128xf32, #tpu.memory_space<vmem>>, %arg6: memref<96x1xi32, #tpu.memory_space<vmem>>, %arg7: memref<4xf32, #tpu.memory_space<smem>>, %arg8: memref<1xf32, #tpu.memory_space<smem>>) attributes {dimension_semantics = [#tpu.dimension_semantics<arbitrary>], iteration_bounds = array<i64: 2>, scalar_prefetch = 0 : i64, scratch_operands = 1 : i64, tpu.core_type = #tpu.core_type<tc>, window_params = [{transform_indices = @transform_0, window_bounds = array<i64: 8, 128>}, {transform_indices = @transform_1, window_bounds = array<i64: 8, 128>}, {pipeline_mode = #tpu.pipeline_mode<synchronous>, transform_indices = @transform_2, window_bounds = array<i64: 128, 128>}, {pipeline_mode = #tpu.pipeline_mode<synchronous>, transform_indices = @transform_3, window_bounds = array<i64: 8, 128>}, {pipeline_mode = #tpu.pipeline_mode<synchronous>, transform_indices = @transform_4, window_bounds = array<i64: 128, 128>}, {pipeline_mode = #tpu.pipeline_mode<synchronous>, transform_indices = @transform_5, window_bounds = array<i64: 96, 1>}, {transform_indices = @transform_6, window_bounds = array<i64: 4>}]} {
    %c0 = arith.constant 0 : index
    %c0_0 = arith.constant 0 : index
    %0 = vector.load %arg1[%c0, %c0_0] : memref<8x128xf32, #tpu.memory_space<vmem>>, vector<8x128xf32>
    %c0_1 = arith.constant 0 : index
    %c0_2 = arith.constant 0 : index
    %1 = vector.load %arg2[%c0_1, %c0_2] : memref<8x128xf32, #tpu.memory_space<vmem>>, vector<8x128xf32>
    %2 = arith.negf %0 : vector<8x128xf32>
    %3 = math.exp %2 : vector<8x128xf32>
    %cst = arith.constant 1.000000e+00 : f32
    %4 = vector.broadcast %cst : f32 to vector<8x128xf32>
    %5 = arith.addf %4, %3 : vector<8x128xf32>
    %6 = arith.divf %4, %5 : vector<8x128xf32>
    %7 = arith.mulf %1, %6 : vector<8x128xf32>
    %c0_3 = arith.constant 0 : index
    %c0_4 = arith.constant 0 : index
    %8 = vector.load %arg3[%c0_3, %c0_4] : memref<128x128xf32, #tpu.memory_space<vmem>>, vector<128x128xf32>
    %cst_5 = arith.constant 0.000000e+00 : f32
    %9 = vector.broadcast %cst_5 : f32 to vector<128x128xf32>
    %10 = arith.cmpf ogt, %8, %9 : vector<128x128xf32>
    %11 = vector.shape_cast %10 : vector<128x128xi1> to vector<1x128x128xi1>
    %12 = vector.shape_cast %6 : vector<8x128xf32> to vector<8x1x128xf32>
    %cst_6 = arith.constant 0.000000e+00 : f32
    %13 = vector.shape_cast %11 : vector<1x128x128xi1> to vector<1x128x128xi1>
    %14 = vector.broadcast %13 : vector<1x128x128xi1> to vector<8x128x128xi1>
    %15 = vector.shape_cast %12 : vector<8x1x128xf32> to vector<8x1x128xf32>
    %16 = vector.broadcast %15 : vector<8x1x128xf32> to vector<8x128x128xf32>
    %17 = vector.broadcast %cst_6 : f32 to vector<8x128x128xf32>
    %18 = arith.select %14, %16, %17 : vector<8x128x128xi1>, vector<8x128x128xf32>
    %19 = vector.shape_cast %10 : vector<128x128xi1> to vector<1x128x128xi1>
    %20 = vector.shape_cast %7 : vector<8x128xf32> to vector<8x1x128xf32>
    %cst_7 = arith.constant 0.000000e+00 : f32
    %21 = vector.shape_cast %19 : vector<1x128x128xi1> to vector<1x128x128xi1>
    %22 = vector.broadcast %21 : vector<1x128x128xi1> to vector<8x128x128xi1>
    %23 = vector.shape_cast %20 : vector<8x1x128xf32> to vector<8x1x128xf32>
    %24 = vector.broadcast %23 : vector<8x1x128xf32> to vector<8x128x128xf32>
    %25 = vector.broadcast %cst_7 : f32 to vector<8x128x128xf32>
    %26 = arith.select %22, %24, %25 : vector<8x128x128xi1>, vector<8x128x128xf32>
    %cst_8 = arith.constant dense<0xFF800000> : vector<8x128xf32>
    %27 = vector.multi_reduction <maximumf>, %18, %cst_8 [2] : vector<8x128x128xf32> to vector<8x128xf32>
    %cst_9 = arith.constant dense<0xFF800000> : vector<8x128xf32>
    %28 = vector.multi_reduction <maximumf>, %26, %cst_9 [2] : vector<8x128x128xf32> to vector<8x128xf32>
    %cst_10 = arith.constant 1.000000e+00 : f32
    %29 = vector.broadcast %cst_10 : f32 to vector<8x128xf32>
    %30 = arith.subf %29, %1 : vector<8x128xf32>
    %31 = arith.mulf %30, %27 : vector<8x128xf32>
    %32 = arith.mulf %1, %28 : vector<8x128xf32>
    %33 = arith.addf %31, %32 : vector<8x128xf32>
    %34 = math.log %33 : vector<8x128xf32>
    %cst_11 = arith.constant -1.000000e+02 : f32
    %35 = vector.broadcast %cst_11 : f32 to vector<8x128xf32>
    %36 = arith.maximumf %34, %35 : vector<8x128xf32>
    %cst_12 = arith.constant 1.000000e+00 : f32
    %37 = vector.broadcast %cst_12 : f32 to vector<8x128xf32>
    %38 = arith.subf %37, %33 : vector<8x128xf32>
    %39 = math.log %38 : vector<8x128xf32>
    %cst_13 = arith.constant -1.000000e+02 : f32
    %40 = vector.broadcast %cst_13 : f32 to vector<8x128xf32>
    %41 = arith.maximumf %39, %40 : vector<8x128xf32>
    %42 = arith.mulf %1, %36 : vector<8x128xf32>
    %cst_14 = arith.constant 1.000000e+00 : f32
    %43 = vector.broadcast %cst_14 : f32 to vector<8x128xf32>
    %44 = arith.subf %43, %1 : vector<8x128xf32>
    %45 = arith.mulf %44, %41 : vector<8x128xf32>
    %46 = arith.addf %42, %45 : vector<8x128xf32>
    %cst_15 = arith.constant 0.000000e+00 : f32
    %47 = vector.broadcast %cst_15 : f32 to vector<8x128xf32>
    %48 = arith.subf %47, %46 : vector<8x128xf32>
    %49 = tpu.iota {dimensions = array<i32: 0>} : vector<8x128xi32>
    %c8_i32 = arith.constant 8 : i32
    %50 = arith.muli %arg0, %c8_i32 : i32
    %51 = vector.broadcast %50 : i32 to vector<8x128xi32>
    %52 = arith.addi %49, %51 : vector<8x128xi32>
    %53 = tpu.iota {dimensions = array<i32: 1>} : vector<8x128xi32>
    %c16_i32 = arith.constant 16 : i32
    %54 = vector.broadcast %c16_i32 : i32 to vector<8x128xi32>
    %55 = arith.cmpi slt, %52, %54 : vector<8x128xi32>
    %c8_i32_16 = arith.constant 8 : i32
    %56 = vector.broadcast %c8_i32_16 : i32 to vector<8x128xi32>
    %57 = arith.cmpi slt, %53, %56 : vector<8x128xi32>
    %58 = arith.andi %55, %57 : vector<8x128xi1>
    %59 = arith.extui %58 : vector<8x128xi1> to vector<8x128xi32>
    %60 = arith.sitofp %59 : vector<8x128xi32> to vector<8x128xf32>
    %61 = arith.mulf %48, %60 : vector<8x128xf32>
    %62 = vector.shape_cast %61 : vector<8x128xf32> to vector<1x8x128xf32>
    %cst_17 = arith.constant dense<0.000000e+00> : vector<1xf32>
    %63 = vector.multi_reduction <add>, %62, %cst_17 [1, 2] : vector<1x8x128xf32> to vector<1xf32>
    %64 = vector.shape_cast %63 : vector<1xf32> to vector<1x1x1xf32>
    %65 = vector.extract %64[0, 0, 0] : f32 from vector<1x1x1xf32>
    %c0_i32 = arith.constant 0 : i32
    %66 = arith.cmpi eq, %arg0, %c0_i32 : i32
    %67 = arith.extui %66 : i1 to i32
    %c0_i32_18 = arith.constant 0 : i32
    %68 = arith.cmpi ne, %67, %c0_i32_18 : i32
    scf.if %68 {
      %cst_22 = arith.constant 0.000000e+00 : f32
      %c0_23 = arith.constant 0 : index
      %75 = memref.load %arg8[%c0_23] : memref<1xf32, #tpu.memory_space<smem>>
      memref.store %cst_22, %arg8[%c0_23] : memref<1xf32, #tpu.memory_space<smem>>
    } else {
    }
    %c0_19 = arith.constant 0 : index
    %69 = memref.load %arg8[%c0_19] : memref<1xf32, #tpu.memory_space<smem>>
    %70 = arith.addf %69, %65 : f32
    %c0_20 = arith.constant 0 : index
    %71 = memref.load %arg8[%c0_20] : memref<1xf32, #tpu.memory_space<smem>>
    memref.store %70, %arg8[%c0_20] : memref<1xf32, #tpu.memory_space<smem>>
    %c1_i32 = arith.constant 1 : i32
    %72 = arith.cmpi eq, %arg0, %c1_i32 : i32
    %73 = arith.extui %72 : i1 to i32
    %c0_i32_21 = arith.constant 0 : i32
    %74 = arith.cmpi ne, %73, %c0_i32_21 : i32
    scf.if %74 {
      %c0_22 = arith.constant 0 : index
      %75 = memref.load %arg8[%c0_22] : memref<1xf32, #tpu.memory_space<smem>>
      %cst_23 = arith.constant 1.280000e+02 : f32
      %76 = arith.divf %75, %cst_23 : f32
      %c0_24 = arith.constant 0 : index
      %c0_25 = arith.constant 0 : index
      %77 = vector.load %arg4[%c0_24, %c0_25] : memref<8x128xf32, #tpu.memory_space<vmem>>, vector<1x128xf32>
      %c2 = arith.constant 2 : index
      %c0_26 = arith.constant 0 : index
      %78 = vector.load %arg4[%c2, %c0_26] : memref<8x128xf32, #tpu.memory_space<vmem>>, vector<1x128xf32>
      %79 = arith.subf %77, %78 : vector<1x128xf32>
      %80 = arith.mulf %79, %79 : vector<1x128xf32>
      %81 = vector.shape_cast %80 : vector<1x128xf32> to vector<1x1x128xf32>
      %cst_27 = arith.constant dense<0.000000e+00> : vector<1xf32>
      %82 = vector.multi_reduction <add>, %81, %cst_27 [1, 2] : vector<1x1x128xf32> to vector<1xf32>
      %83 = vector.shape_cast %82 : vector<1xf32> to vector<1x1x1xf32>
      %84 = vector.extract %83[0, 0, 0] : f32 from vector<1x1x1xf32>
      %cst_28 = arith.constant 0.000000e+00 : f32
      %85 = arith.addf %cst_28, %84 : f32
      %c0_29 = arith.constant 0 : index
      %c0_30 = arith.constant 0 : index
      %86 = vector.load %arg4[%c0_29, %c0_30] : memref<8x128xf32, #tpu.memory_space<vmem>>, vector<1x128xf32>
      %c3 = arith.constant 3 : index
      %c0_31 = arith.constant 0 : index
      %87 = vector.load %arg4[%c3, %c0_31] : memref<8x128xf32, #tpu.memory_space<vmem>>, vector<1x128xf32>
      %88 = arith.subf %86, %87 : vector<1x128xf32>
      %89 = arith.mulf %88, %88 : vector<1x128xf32>
      %90 = vector.shape_cast %89 : vector<1x128xf32> to vector<1x1x128xf32>
      %cst_32 = arith.constant dense<0.000000e+00> : vector<1xf32>
      %91 = vector.multi_reduction <add>, %90, %cst_32 [1, 2] : vector<1x1x128xf32> to vector<1xf32>
      %92 = vector.shape_cast %91 : vector<1xf32> to vector<1x1x1xf32>
      %93 = vector.extract %92[0, 0, 0] : f32 from vector<1x1x1xf32>
      %94 = arith.addf %85, %93 : f32
      %c1 = arith.constant 1 : index
      %c0_33 = arith.constant 0 : index
      %95 = vector.load %arg4[%c1, %c0_33] : memref<8x128xf32, #tpu.memory_space<vmem>>, vector<1x128xf32>
      %c4 = arith.constant 4 : index
      %c0_34 = arith.constant 0 : index
      %96 = vector.load %arg4[%c4, %c0_34] : memref<8x128xf32, #tpu.memory_space<vmem>>, vector<1x128xf32>
      %97 = arith.subf %95, %96 : vector<1x128xf32>
      %98 = arith.mulf %97, %97 : vector<1x128xf32>
      %99 = vector.shape_cast %98 : vector<1x128xf32> to vector<1x1x128xf32>
      %cst_35 = arith.constant dense<0.000000e+00> : vector<1xf32>
      %100 = vector.multi_reduction <add>, %99, %cst_35 [1, 2] : vector<1x1x128xf32> to vector<1xf32>
      %101 = vector.shape_cast %100 : vector<1xf32> to vector<1x1x1xf32>
      %102 = vector.extract %101[0, 0, 0] : f32 from vector<1x1x1xf32>
      %103 = arith.addf %94, %102 : f32
      %c2_36 = arith.constant 2 : index
      %c0_37 = arith.constant 0 : index
      %104 = vector.load %arg4[%c2_36, %c0_37] : memref<8x128xf32, #tpu.memory_space<vmem>>, vector<1x128xf32>
      %c5 = arith.constant 5 : index
      %c0_38 = arith.constant 0 : index
      %105 = vector.load %arg4[%c5, %c0_38] : memref<8x128xf32, #tpu.memory_space<vmem>>, vector<1x128xf32>
      %106 = arith.subf %104, %105 : vector<1x128xf32>
      %107 = arith.mulf %106, %106 : vector<1x128xf32>
      %108 = vector.shape_cast %107 : vector<1x128xf32> to vector<1x1x128xf32>
      %cst_39 = arith.constant dense<0.000000e+00> : vector<1xf32>
      %109 = vector.multi_reduction <add>, %108, %cst_39 [1, 2] : vector<1x1x128xf32> to vector<1xf32>
      %110 = vector.shape_cast %109 : vector<1xf32> to vector<1x1x1xf32>
      %111 = vector.extract %110[0, 0, 0] : f32 from vector<1x1x1xf32>
      %112 = arith.addf %103, %111 : f32
      %c2_40 = arith.constant 2 : index
      %c0_41 = arith.constant 0 : index
      %113 = vector.load %arg4[%c2_40, %c0_41] : memref<8x128xf32, #tpu.memory_space<vmem>>, vector<1x128xf32>
      %c6 = arith.constant 6 : index
      %c0_42 = arith.constant 0 : index
      %114 = vector.load %arg4[%c6, %c0_42] : memref<8x128xf32, #tpu.memory_space<vmem>>, vector<1x128xf32>
      %115 = arith.subf %113, %114 : vector<1x128xf32>
      %116 = arith.mulf %115, %115 : vector<1x128xf32>
      %117 = vector.shape_cast %116 : vector<1x128xf32> to vector<1x1x128xf32>
      %cst_43 = arith.constant dense<0.000000e+00> : vector<1xf32>
      %118 = vector.multi_reduction <add>, %117, %cst_43 [1, 2] : vector<1x1x128xf32> to vector<1xf32>
      %119 = vector.shape_cast %118 : vector<1xf32> to vector<1x1x1xf32>
      %120 = vector.extract %119[0, 0, 0] : f32 from vector<1x1x1xf32>
      %121 = arith.addf %112, %120 : f32
      %c2_44 = arith.constant 2 : index
      %c0_45 = arith.constant 0 : index
      %122 = vector.load %arg4[%c2_44, %c0_45] : memref<8x128xf32, #tpu.memory_space<vmem>>, vector<1x128xf32>
      %c7 = arith.constant 7 : index
      %c0_46 = arith.constant 0 : index
      %123 = vector.load %arg4[%c7, %c0_46] : memref<8x128xf32, #tpu.memory_space<vmem>>, vector<1x128xf32>
      %124 = arith.subf %122, %123 : vector<1x128xf32>
      %125 = arith.mulf %124, %124 : vector<1x128xf32>
      %126 = vector.shape_cast %125 : vector<1x128xf32> to vector<1x1x128xf32>
      %cst_47 = arith.constant dense<0.000000e+00> : vector<1xf32>
      %127 = vector.multi_reduction <add>, %126, %cst_47 [1, 2] : vector<1x1x128xf32> to vector<1xf32>
      %128 = vector.shape_cast %127 : vector<1xf32> to vector<1x1x1xf32>
      %129 = vector.extract %128[0, 0, 0] : f32 from vector<1x1x1xf32>
      %130 = arith.addf %121, %129 : f32
      %cst_48 = arith.constant 5.000000e-01 : f32
      %131 = arith.mulf %cst_48, %130 : f32
      %c0_49 = arith.constant 0 : index
      %c0_50 = arith.constant 0 : index
      %132 = vector.load %arg6[%c0_49, %c0_50] : memref<96x1xi32, #tpu.memory_space<vmem>>, vector<96x1xi32>
      %133 = tpu.iota {dimensions = array<i32: 1>} : vector<96x128xi32>
      %134 = vector.broadcast %132 : vector<96x1xi32> to vector<96x128xi32>
      %135 = arith.cmpi eq, %134, %133 : vector<96x128xi32>
      %136 = arith.extui %135 : vector<96x128xi1> to vector<96x128xi32>
      %137 = arith.sitofp %136 : vector<96x128xi32> to vector<96x128xf32>
      %c0_51 = arith.constant 0 : index
      %c0_52 = arith.constant 0 : index
      %138 = vector.load %arg5[%c0_51, %c0_52] : memref<128x128xf32, #tpu.memory_space<vmem>>, vector<128x128xf32>
      %cst_53 = arith.constant dense<0.000000e+00> : vector<96x128xf32>
      %139 = tpu.matmul %137, %138, %cst_53 {dimension_numbers = #tpu.dot_dimension_numbers<[1], [0], [0], [1], [0, 0, 1, 1], [], []>} : vector<96x128xf32>, vector<128x128xf32>, vector<96x128xf32> -> vector<96x128xf32>
      %140 = vector.extract_strided_slice %139 {offsets = [0, 0], sizes = [32, 128], strides = [1, 1]} : vector<96x128xf32> to vector<32x128xf32>
      %141 = vector.extract_strided_slice %139 {offsets = [32, 0], sizes = [32, 128], strides = [1, 1]} : vector<96x128xf32> to vector<32x128xf32>
      %142 = vector.extract_strided_slice %139 {offsets = [64, 0], sizes = [32, 128], strides = [1, 1]} : vector<96x128xf32> to vector<32x128xf32>
      %143 = arith.mulf %140, %141 : vector<32x128xf32>
      %cst_54 = arith.constant dense<0.000000e+00> : vector<32xf32>
      %144 = vector.multi_reduction <add>, %143, %cst_54 [1] : vector<32x128xf32> to vector<32xf32>
      %145 = vector.shape_cast %144 : vector<32xf32> to vector<32x1xf32>
      %146 = arith.mulf %140, %140 : vector<32x128xf32>
      %cst_55 = arith.constant dense<0.000000e+00> : vector<32xf32>
      %147 = vector.multi_reduction <add>, %146, %cst_55 [1] : vector<32x128xf32> to vector<32xf32>
      %148 = vector.shape_cast %147 : vector<32xf32> to vector<32x1xf32>
      %149 = arith.mulf %141, %141 : vector<32x128xf32>
      %cst_56 = arith.constant dense<0.000000e+00> : vector<32xf32>
      %150 = vector.multi_reduction <add>, %149, %cst_56 [1] : vector<32x128xf32> to vector<32xf32>
      %151 = vector.shape_cast %150 : vector<32xf32> to vector<32x1xf32>
      %cst_57 = arith.constant 9.99999996E-13 : f32
      %152 = vector.broadcast %cst_57 : f32 to vector<32x1xf32>
      %153 = arith.maximumf %148, %152 : vector<32x1xf32>
      %154 = math.rsqrt %153 : vector<32x1xf32>
      %155 = arith.mulf %145, %154 : vector<32x1xf32>
      %cst_58 = arith.constant 9.99999996E-13 : f32
      %156 = vector.broadcast %cst_58 : f32 to vector<32x1xf32>
      %157 = arith.maximumf %151, %156 : vector<32x1xf32>
      %158 = math.rsqrt %157 : vector<32x1xf32>
      %159 = arith.mulf %155, %158 : vector<32x1xf32>
      %160 = arith.mulf %140, %142 : vector<32x128xf32>
      %cst_59 = arith.constant dense<0.000000e+00> : vector<32xf32>
      %161 = vector.multi_reduction <add>, %160, %cst_59 [1] : vector<32x128xf32> to vector<32xf32>
      %162 = vector.shape_cast %161 : vector<32xf32> to vector<32x1xf32>
      %163 = arith.mulf %140, %140 : vector<32x128xf32>
      %cst_60 = arith.constant dense<0.000000e+00> : vector<32xf32>
      %164 = vector.multi_reduction <add>, %163, %cst_60 [1] : vector<32x128xf32> to vector<32xf32>
      %165 = vector.shape_cast %164 : vector<32xf32> to vector<32x1xf32>
      %166 = arith.mulf %142, %142 : vector<32x128xf32>
      %cst_61 = arith.constant dense<0.000000e+00> : vector<32xf32>
      %167 = vector.multi_reduction <add>, %166, %cst_61 [1] : vector<32x128xf32> to vector<32xf32>
      %168 = vector.shape_cast %167 : vector<32xf32> to vector<32x1xf32>
      %cst_62 = arith.constant 9.99999996E-13 : f32
      %169 = vector.broadcast %cst_62 : f32 to vector<32x1xf32>
      %170 = arith.maximumf %165, %169 : vector<32x1xf32>
      %171 = math.rsqrt %170 : vector<32x1xf32>
      %172 = arith.mulf %162, %171 : vector<32x1xf32>
      %cst_63 = arith.constant 9.99999996E-13 : f32
      %173 = vector.broadcast %cst_63 : f32 to vector<32x1xf32>
      %174 = arith.maximumf %168, %173 : vector<32x1xf32>
      %175 = math.rsqrt %174 : vector<32x1xf32>
      %176 = arith.mulf %172, %175 : vector<32x1xf32>
      %177 = arith.subf %159, %176 : vector<32x1xf32>
      %cst_64 = arith.constant 5.000000e-02 : f32
      %178 = vector.broadcast %cst_64 : f32 to vector<32x1xf32>
      %179 = arith.divf %177, %178 : vector<32x1xf32>
      %cst_65 = arith.constant 0.000000e+00 : f32
      %180 = vector.broadcast %cst_65 : f32 to vector<32x1xf32>
      %181 = arith.maximumf %179, %180 : vector<32x1xf32>
      %182 = math.absf %179 : vector<32x1xf32>
      %cst_66 = arith.constant 0.000000e+00 : f32
      %183 = vector.broadcast %cst_66 : f32 to vector<32x1xf32>
      %184 = arith.subf %183, %182 : vector<32x1xf32>
      %185 = math.exp %184 : vector<32x1xf32>
      %186 = math.log1p %185 : vector<32x1xf32>
      %187 = arith.addf %181, %186 : vector<32x1xf32>
      %188 = vector.shape_cast %187 : vector<32x1xf32> to vector<1x32x1xf32>
      %cst_67 = arith.constant dense<0.000000e+00> : vector<1xf32>
      %189 = vector.multi_reduction <add>, %188, %cst_67 [1, 2] : vector<1x32x1xf32> to vector<1xf32>
      %190 = vector.shape_cast %189 : vector<1xf32> to vector<1x1x1xf32>
      %191 = vector.extract %190[0, 0, 0] : f32 from vector<1x1x1xf32>
      %cst_68 = arith.constant 9.99999974E-5 : f32
      %192 = arith.mulf %cst_68, %131 : f32
      %cst_69 = arith.constant 9.99999974E-5 : f32
      %193 = arith.mulf %cst_69, %191 : f32
      %c0_70 = arith.constant 0 : index
      %194 = memref.load %arg7[%c0_70] : memref<4xf32, #tpu.memory_space<smem>>
      memref.store %76, %arg7[%c0_70] : memref<4xf32, #tpu.memory_space<smem>>
      %c1_71 = arith.constant 1 : index
      %195 = memref.load %arg7[%c1_71] : memref<4xf32, #tpu.memory_space<smem>>
      memref.store %76, %arg7[%c1_71] : memref<4xf32, #tpu.memory_space<smem>>
      %c2_72 = arith.constant 2 : index
      %196 = memref.load %arg7[%c2_72] : memref<4xf32, #tpu.memory_space<smem>>
      memref.store %193, %arg7[%c2_72] : memref<4xf32, #tpu.memory_space<smem>>
      %c3_73 = arith.constant 3 : index
      %197 = memref.load %arg7[%c3_73] : memref<4xf32, #tpu.memory_space<smem>>
      memref.store %192, %arg7[%c3_73] : memref<4xf32, #tpu.memory_space<smem>>
    } else {
    }
    return
  }
  func.func @transform_0(%arg0: i32) -> (i32, i32) {
    %c0_i32 = arith.constant 0 : i32
    %c0_i32_0 = arith.constant 0 : i32
    return %arg0, %c0_i32 : i32, i32
  }
  func.func @transform_1(%arg0: i32) -> (i32, i32) {
    %c0_i32 = arith.constant 0 : i32
    %c0_i32_0 = arith.constant 0 : i32
    return %arg0, %c0_i32 : i32, i32
  }
  func.func @transform_2(%arg0: i32) -> (i32, i32) {
    %c0_i32 = arith.constant 0 : i32
    %c0_i32_0 = arith.constant 0 : i32
    %c0_i32_1 = arith.constant 0 : i32
    return %c0_i32, %c0_i32_0 : i32, i32
  }
  func.func @transform_3(%arg0: i32) -> (i32, i32) {
    %c0_i32 = arith.constant 0 : i32
    %c0_i32_0 = arith.constant 0 : i32
    %c0_i32_1 = arith.constant 0 : i32
    return %c0_i32, %c0_i32_0 : i32, i32
  }
  func.func @transform_4(%arg0: i32) -> (i32, i32) {
    %c0_i32 = arith.constant 0 : i32
    %c0_i32_0 = arith.constant 0 : i32
    %c0_i32_1 = arith.constant 0 : i32
    return %c0_i32, %c0_i32_0 : i32, i32
  }
  func.func @transform_5(%arg0: i32) -> (i32, i32) {
    %c0_i32 = arith.constant 0 : i32
    %c0_i32_0 = arith.constant 0 : i32
    %c0_i32_1 = arith.constant 0 : i32
    return %c0_i32, %c0_i32_0 : i32, i32
  }
  func.func @transform_6(%arg0: i32) -> i32 {
    %c0_i32 = arith.constant 0 : i32
    %c0_i32_0 = arith.constant 0 : i32
    return %c0_i32 : i32
  }
}

</mosaic_0001>

<bundles_post_ra>
// kernel: tpu_custom_call.1
= control target key start
LH: loop header
LB: loop body
LE: loop exit
PB: predicated region body
PF: predicated region fallthrough
CT: control target
= control target key end

     0   :  { %11 = vsyncpa [#allocation4], 0  ;;  %s5047_s0 = inlined_call_operand.vmem [shape: f32[16,128], index: 0, kind: input, shape index: {}]   ;;  %s5048_s1 = inlined_call_operand.vmem [shape: f32[16,128], index: 1, kind: input, shape index: {}]   ;;  %s5049_s2 = inlined_call_operand.hbm [shape: f32[128,128], index: 2, kind: input, shape index: {}]   ;;  %s5050_s3 = inlined_call_operand.vmem [shape: f32[8,128], index: 3, kind: input, shape index: {}]   ;;  %s5051_s4 = inlined_call_operand.hbm [shape: f32[128,128], index: 4, kind: input, shape index: {}]   ;;  %s5052_s5 = inlined_call_operand.vmem [shape: s32[96,1], index: 5, kind: input, shape index: {}]   ;;  %s5053_s6 = inlined_call_operand.hbm [shape: f32[4], index: 6, kind: output, shape index: {}]  }
   0x1   :  { %12 = vsyncpa [#allocation7], 0 }
   0x2   :  { %13 = vsyncpa [#allocation5], 0  ;;  %s3038_s21 = smov 0  }
   0x3 LB: > { %s192_s24 = sshll.u32 %s5049_s2, 4  ;;  %s3047_s25 = sadd.s32 4294967295, %s2990_s21   ;;  %s2990_s21 = sphi %s3038_s21, %s19_s21   ;;  %s193_s24 = int_to_ptr.hbm [resolvable:$true] %s192_s24 }
   0x4   : > { %p2687_p0 = scmp.ge.s32.totalorder %s2990_s21, 1  ;;  %p181_p1 = scmp.lt.s32.totalorder %s2990_s21, 3 }
   0x5   : > { %p2816_p2 = scmp.eq.s32.totalorder %s3047_s25, 0  ;;  %s2992_s27 = smov [#allocation3]  }
   0x6   : > { %p3052_p3 = pnand %p2687_p0, %p181_p1  ;;  %s194_s28 = sshll.u32 %s2992_s27, 4  ;;  %s195_s28 = int_to_ptr.vmem [resolvable:$true] %s194_s28 }
   0x7   : > { %s209_s7 = sshll.u32 %s5051_s4, 4  ;;  %s2993_s8 = smov [#allocation6]   ;;  %s210_s7 = int_to_ptr.hbm [resolvable:$true] %s209_s7 }
   0x8   : > { %p2809_p4 = pneg %p3052_p3  ;;  %s211_s9 = sshll.u32 %s2993_s8, 4  ;;  %s212_s9 = int_to_ptr.vmem [resolvable:$true] %s211_s9 }
   0x9   : > { %s2994_s10 = smov 128   ;;  %s2995_s11 = smov 8  }
   0xa   : > { %p2810_p5 = pnand %p2816_p2, %p2809_p4  ;;  %244 = sbr.rel (%p3052_p3) target bundleno = 1713 (0x6b1), region = 44 }
   0xc   : > { %2812 = dma.hbm_to_vmem [thread:$0]  (!%p2810_p5), %s193_s24, 2048, %s195_s28, [#allocation4], %s2994_s10, %s2994_s10, %s2995_s11  }
   0xd   : > { %2815 = dma.hbm_to_vmem [thread:$0]  (!%p2810_p5), %s210_s7, 2048, %s212_s9, [#allocation7], %s2994_s10, %s2994_s10, %s2995_s11  }
   0xf   : > { %2977 = dma.done.wait (%p2816_p2), [#allocation4], 2048  }
  0x10   : > { %2979 = vsyncadd (%p2816_p2), [#allocation4], 4294965248 }
  0x11   : > { %2981 = dma.done.wait (%p2816_p2), [#allocation7], 2048  }
  0x12   : > { %2983 = vsyncadd (%p2816_p2), [#allocation7], 4294965248  ;;  %p278_p6 = scmp.lt.s32.totalorder %s3047_s25, 1  ;;  %v3083_v12 = vld [vmem:[#allocation3 + $0x20] sm:$0xff]  ;;  %v3085_v13 = vld [vmem:[#allocation3 + $0x10] sm:$0xff]  ;;  %s2697_s20 = sshll.u32 %s3047_s25, 3 }
  0x13   : > { %5107 = vst [vmem:[#allocation12_spill] sm:$0xff] %v3083_v12  ;;  %v3087_v14 = vld [vmem:[#allocation3] sm:$0xff]  ;;  %vm5087_vm4 = vcmp.gt.f32.partialorder %v3083_v12, 0.0  ;;  %vm5077_vm5 = vcmp.gt.f32.partialorder %v3085_v13, 0.0  ;;  %v3101_v21 = vld [vmem:[#allocation3 + $0x28] sm:$0xff]  ;;  %v3103_v22 = vld [vmem:[#allocation3 + $0x18] sm:$0xff] }
  0x14   : > { %s3075_s12 = scalar_select %p278_p6, %s3047_s25, 1  ;;  %5108 = vst [vmem:[#allocation13_spill] sm:$0xff] %v3085_v13  ;;  %vm5084_vm6 = vcmp.gt.f32.partialorder %v3087_v14, 0.0  ;;  %v3105_v23 = vld [vmem:[#allocation3 + $0x8] sm:$0xff]  ;;  %vm5085_vm7 = vcmp.gt.f32.partialorder %v3101_v21, 0.0  ;;  %vm5086_vm8 = vcmp.gt.f32.partialorder %v3103_v22, 0.0 }
  0x15   : > { %5109 = vst [vmem:[#allocation14_spill] sm:$0xff] %v3087_v14  ;;  %vm5088_vm9 = vcmp.gt.f32.partialorder %v3105_v23, 0.0  ;;  %v3116_v27 = vld [vmem:[#allocation3 + $0x40] sm:$0xff]  ;;  %v3118_v28 = vld [vmem:[#allocation3 + $0x38] sm:$0xff]  ;;  %v3120_v29 = vld [vmem:[#allocation3 + $0x30] sm:$0xff]  ;;  %s2997_s22 = smov 0.0  }
  0x16   : > { %s2694_s13 = sshll.u32 %s3075_s12, 3  ;;  %5110 = vst [vmem:[#allocation15_spill] sm:$0xff] %v3105_v23  ;;  %vm5089_vm10 = vcmp.gt.f32.partialorder %v3116_v27, 0.0  ;;  %vm5076_vm11 = vcmp.gt.f32.partialorder %v3118_v28, 0.0  ;;  %vm5057_vm12 = vcmp.gt.f32.partialorder %v3120_v29, 0.0  ;;  %v3131_v33 = vld [vmem:[#allocation3 + $0x58] sm:$0xff] }
  0x17   : > { %s281_s16 = scalar_lea.vmem %s5047_s0, %s2694_s13  ;;  %v3133_v34 = vld [vmem:[#allocation3 + $0x50] sm:$0xff]  ;;  %v3135_v35 = vld [vmem:[#allocation3 + $0x48] sm:$0xff]  ;;  %vm5075_vm13 = vcmp.gt.f32.partialorder %v3131_v33, 0.0  ;;  %v3150_v41 = vld [vmem:[#allocation3 + $0x60] sm:$0xff]  ;;  %s3548_s19 = scalar_lea.vmem %s5048_s1, %s2694_s13 }
  0x18   : > { %v286_v0 = vld [vmem:[%s281_s16] sm:$0xff]  ;;  %5111 = vst [vmem:[#allocation16_spill] sm:$0xff] %v3133_v34  ;;  %vm5063_vm14 = vcmp.gt.f32.partialorder %v3133_v34, 0.0  ;;  %vm5056_vm15 = vcmp.gt.f32.partialorder %v3135_v35, 0.0  ;;  %v3146_v39 = vld [vmem:[#allocation3 + $0x70] sm:$0xff]  ;;  %v3148_v40 = vld [vmem:[#allocation3 + $0x68] sm:$0xff] }
  0x19   : > { %v2696_v1 = vmul.f32 -1.442695, %v286_v0  ;;  %5112 = vst [vmem:[#allocation17_spill] sm:$0xff] %v3135_v35  ;;  %v3162_v46 = vld [vmem:[#allocation3 + $0x78] sm:$0xff]  ;;  %2804 = sst [smem:[#allocation2]] (%p2816_p2), %s2997_s22  ;;  %p2700_p7 = scmp.ne.s32.totalorder %s3047_s25, 1 }
  0x1a   : > { %5113 = vst [vmem:[#allocation18_spill] sm:$0xff] %v3146_v39  ;;  %s2036_s23 = sld [smem:[#allocation2]] }
  0x1b   : > { %2842 = vpow2.f32 %v2696_v1  ;;  %5114 = vst [vmem:[#allocation19_spill] sm:$0xff] %v3150_v41 }
  0x1c   : > { %5115 = vst [vmem:[#allocation20_spill] sm:$0xff] %v3162_v46 }
  0x21   : > { %v2843_v2 = vpop.eup %2842 }
  0x22   : > { %v291_v3 = vadd.f32 1.0, %v2843_v2 }
  0x24   : > { %2844 = vrcp.f32 %v291_v3  ;;  %v303_v6 = vand.u32 2147483648, %v291_v3  ;;  %vm297_vm0 = vweird.f32 %v291_v3  ;;  %v301_v8 = vand.u32 2147483647, %v291_v3 }
  0x26   : > { %v304_v10 = vor.u32 1.1754944e-38, %v303_v6  ;;  %vm302_vm3 = vcmp.eq.f32.partialorder %v301_v8, 8.507059e+37 }
  0x2a   : > { %v2845_v4 = vpop.eup %2844 }
  0x2b   : > { %v293_v5 = vmul.f32 %v2845_v4, %v291_v3  ;;  %vm298_vm1 = vweird.f32 %v2845_v4 }
  0x2c   : > { %vm299_vm2 = vmor %vm297_vm0, %vm298_vm1  ;;  %vm5073_vm0 = vcmp.gt.f32.partialorder %v3146_v39, 0.0  ;;  %vm5074_vm1 = vcmp.gt.f32.partialorder %v3148_v40, 0.0 }
  0x2d   : > { %v294_v7 = vsub.f32 1.0, %v293_v5 }
  0x2f   : > { %v295_v9 = vmul.f32 %v2845_v4, %v294_v7 }
  0x31   : > { %v296_v11 = vadd.f32 %v2845_v4, %v295_v9 }
  0x33   : > { %v300_v15 = vsel %vm299_vm2, %v2845_v4, %v296_v11  ;;  %vm5058_vm2 = vcmp.gt.f32.partialorder %v3150_v41, 0.0 }
  0x34   : > { %v3089_v16 = vsel %vm302_vm3, %v304_v10, %v300_v15  ;;  %vm5072_vm3 = vcmp.gt.f32.partialorder %v3162_v46, 0.0 }
  0x35   : > { %v380_v17 = vperm.slane %v3089_v16, 0  ;;  %v341_v44 = vrot.slane %v3089_v16, 1  ;;  %v342_v62 = vrot.slane %v3089_v16, 2 }
  0x37   : > { %v400_v18 = vsel %vm5087_vm4, %v380_v17, 0.0  ;;  %v398_v19 = vsel %vm5077_vm5, %v380_v17, 0.0  ;;  %v396_v20 = vsel %vm5084_vm6, %v380_v17, 0.0  ;;  %v401_v24 = vsel %vm5085_vm7, %v380_v17, 0.0 }
  0x38   : > { %684 = vmax.xlane.f32.xlu2 %v400_v18  ;;  %680 = vmax.xlane.f32.xlu1 %v398_v19  ;;  %v399_v25 = vsel %vm5086_vm8, %v380_v17, 0.0  ;;  %v397_v26 = vsel %vm5088_vm9, %v380_v17, 0.0  ;;  %v404_v30 = vsel %vm5089_vm10, %v380_v17, 0.0  ;;  %v403_v31 = vsel %vm5076_vm11, %v380_v17, 0.0 }
  0x39   : > { %676 = vmax.xlane.f32.xlu0 %v396_v20  ;;  %v402_v32 = vsel %vm5057_vm12, %v380_v17, 0.0  ;;  %v407_v36 = vsel %vm5075_vm13, %v380_v17, 0.0  ;;  %v406_v37 = vsel %vm5063_vm14, %v380_v17, 0.0  ;;  %v405_v38 = vsel %vm5056_vm15, %v380_v17, 0.0 }
  0x3a   : > { %v410_v42 = vsel %vm5073_vm0, %v380_v17, 0.0  ;;  %v409_v43 = vsel %vm5074_vm1, %v380_v17, 0.0  ;;  %v408_v45 = vsel %vm5058_vm2, %v380_v17, 0.0  ;;  %v381_v47 = vperm.slane %v341_v44, 0 }
  0x3b   : > { %v411_v50 = vsel %vm5072_vm3, %v380_v17, 0.0  ;;  %v382_v0 = vperm.slane %v342_v62, 0 }
  0x3c   : > { %v413_v48 = vsel %vm5088_vm9, %v381_v47, 0.0  ;;  %v412_v49 = vsel %vm5084_vm6, %v381_v47, 0.0  ;;  %v416_v51 = vsel %vm5087_vm4, %v381_v47, 0.0  ;;  %v415_v52 = vsel %vm5086_vm8, %v381_v47, 0.0 }
  0x3d   : > { %v414_v53 = vsel %vm5077_vm5, %v381_v47, 0.0  ;;  %v419_v54 = vsel %vm5076_vm11, %v381_v47, 0.0  ;;  %v418_v55 = vsel %vm5057_vm12, %v381_v47, 0.0  ;;  %v417_v56 = vsel %vm5085_vm7, %v381_v47, 0.0 }
  0x3e   : > { %v422_v57 = vsel %vm5063_vm14, %v381_v47, 0.0  ;;  %v421_v58 = vsel %vm5056_vm15, %v381_v47, 0.0  ;;  %v420_v59 = vsel %vm5089_vm10, %v381_v47, 0.0  ;;  %v425_v60 = vsel %vm5074_vm1, %v381_v47, 0.0 }
  0x3f   : > { %v424_v61 = vsel %vm5058_vm2, %v381_v47, 0.0  ;;  %v423_v63 = vsel %vm5075_vm13, %v381_v47, 0.0  ;;  %v428_v1 = vsel %vm5084_vm6, %v382_v0, 0.0  ;;  %v427_v2 = vsel %vm5072_vm3, %v381_v47, 0.0 }
  0x40   : > { %686 = vmax.xlane.f32.xlu2 %v401_v24  ;;  %682 = vmax.xlane.f32.xlu1 %v399_v25  ;;  %v426_v3 = vsel %vm5073_vm0, %v381_v47, 0.0  ;;  %v431_v4 = vsel %vm5086_vm8, %v382_v0, 0.0  ;;  %v430_v5 = vsel %vm5077_vm5, %v382_v0, 0.0  ;;  %v429_v6 = vsel %vm5088_vm9, %v382_v0, 0.0 }
  0x41   : > { %678 = vmax.xlane.f32.xlu0 %v397_v26  ;;  %v434_v7 = vsel %vm5057_vm12, %v382_v0, 0.0  ;;  %v433_v8 = vsel %vm5085_vm7, %v382_v0, 0.0  ;;  %v432_v9 = vsel %vm5087_vm4, %v382_v0, 0.0  ;;  %v437_v10 = vsel %vm5056_vm15, %v382_v0, 0.0 }
  0x42   : > { %v436_v11 = vsel %vm5089_vm10, %v382_v0, 0.0  ;;  %v435_v15 = vsel %vm5076_vm11, %v382_v0, 0.0  ;;  %v440_v17 = vsel %vm5058_vm2, %v382_v0, 0.0  ;;  %v439_v18 = vsel %vm5075_vm13, %v382_v0, 0.0 }
  0x43   : > { %v438_v19 = vsel %vm5063_vm14, %v382_v0, 0.0  ;;  %v443_v26 = vsel %vm5072_vm3, %v382_v0, 0.0 }
  0x48   : > { %692 = vmax.xlane.f32.xlu2 %v404_v30  ;;  %690 = vmax.xlane.f32.xlu1 %v403_v31  ;;  %v442_v30 = vsel %vm5073_vm0, %v382_v0, 0.0  ;;  %v343_v31 = vrot.slane %v3089_v16, 3 }
  0x49   : > { %688 = vmax.xlane.f32.xlu0 %v402_v32  ;;  %v441_v32 = vsel %vm5074_vm1, %v382_v0, 0.0 }
  0x50   : > { %698 = vmax.xlane.f32.xlu2 %v407_v36  ;;  %696 = vmax.xlane.f32.xlu1 %v406_v37  ;;  %v383_v36 = vperm.slane %v343_v31, 0 }
  0x51   : > { %694 = vmax.xlane.f32.xlu0 %v405_v38 }
  0x52   : > { %v445_v44 = vsel %vm5088_vm9, %v383_v36, 0.0  ;;  %v455_v62 = vsel %vm5075_vm13, %v383_v36, 0.0  ;;  %v453_v0 = vsel %vm5056_vm15, %v383_v36, 0.0 }
  0x58   : > { %704 = vmax.xlane.f32.xlu2 %v410_v42  ;;  %702 = vmax.xlane.f32.xlu1 %v409_v43  ;;  %v446_v43 = vsel %vm5077_vm5, %v383_v36, 0.0 }
  0x59   : > { %700 = vmax.xlane.f32.xlu0 %v408_v45  ;;  %v444_v45 = vsel %vm5084_vm6, %v383_v36, 0.0 }
  0x60   : > { %710 = vmax.xlane.f32.xlu2 %v413_v48  ;;  %708 = vmax.xlane.f32.xlu1 %v412_v49 }
  0x61   : > { %706 = vmax.xlane.f32.xlu0 %v411_v50  ;;  %v449_v50 = vsel %vm5085_vm7, %v383_v36, 0.0 }
  0x68   : > { %716 = vmax.xlane.f32.xlu2 %v416_v51  ;;  %714 = vmax.xlane.f32.xlu1 %v415_v52  ;;  %v448_v51 = vsel %vm5087_vm4, %v383_v36, 0.0  ;;  %v447_v52 = vsel %vm5086_vm8, %v383_v36, 0.0 }
  0x69   : > { %712 = vmax.xlane.f32.xlu0 %v414_v53 }
  0x70   : > { %722 = vmax.xlane.f32.xlu2 %v419_v54  ;;  %720 = vmax.xlane.f32.xlu1 %v418_v55 }
  0x71   : > { %718 = vmax.xlane.f32.xlu0 %v417_v56  ;;  %v452_v56 = vsel %vm5089_vm10, %v383_v36, 0.0 }
  0x78   : > { %728 = vmax.xlane.f32.xlu2 %v422_v57  ;;  %726 = vmax.xlane.f32.xlu1 %v421_v58  ;;  %v451_v57 = vsel %vm5076_vm11, %v383_v36, 0.0  ;;  %v450_v58 = vsel %vm5057_vm12, %v383_v36, 0.0 }
  0x79   : > { %724 = vmax.xlane.f32.xlu0 %v420_v59 }
  0x80   : > { %734 = vmax.xlane.f32.xlu2 %v425_v60  ;;  %732 = vmax.xlane.f32.xlu1 %v424_v61 }
  0x81   : > { %730 = vmax.xlane.f32.xlu0 %v423_v63  ;;  %v454_v63 = vsel %vm5063_vm14, %v383_v36, 0.0 }
  0x88   : > { %740 = vmax.xlane.f32.xlu2 %v428_v1  ;;  %738 = vmax.xlane.f32.xlu1 %v427_v2 }
  0x89   : > { %736 = vmax.xlane.f32.xlu0 %v426_v3 }
  0x90   : > { %746 = vmax.xlane.f32.xlu2 %v431_v4  ;;  %744 = vmax.xlane.f32.xlu1 %v430_v5  ;;  %v458_v4 = vsel %vm5073_vm0, %v383_v36, 0.0  ;;  %v457_v5 = vsel %vm5074_vm1, %v383_v36, 0.0 }
  0x91   : > { %742 = vmax.xlane.f32.xlu0 %v429_v6  ;;  %v344_v6 = vrot.slane %v3089_v16, 4 }
  0x98   : > { %752 = vmax.xlane.f32.xlu2 %v434_v7  ;;  %750 = vmax.xlane.f32.xlu1 %v433_v8  ;;  %v456_v7 = vsel %vm5058_vm2, %v383_v36, 0.0  ;;  %v384_v8 = vperm.slane %v344_v6, 0 }
  0x99   : > { %748 = vmax.xlane.f32.xlu0 %v432_v9 }
  0x9a   : > { %v464_v31 = vsel %vm5087_vm4, %v384_v8, 0.0 }
  0xa0   : > { %758 = vmax.xlane.f32.xlu2 %v437_v10  ;;  %756 = vmax.xlane.f32.xlu1 %v436_v11 }
  0xa1   : > { %754 = vmax.xlane.f32.xlu0 %v435_v15  ;;  %v461_v15 = vsel %vm5088_vm9, %v384_v8, 0.0 }
  0xa8   : > { %764 = vmax.xlane.f32.xlu2 %v440_v17  ;;  %762 = vmax.xlane.f32.xlu1 %v439_v18  ;;  %v460_v17 = vsel %vm5084_vm6, %v384_v8, 0.0  ;;  %v459_v18 = vsel %vm5072_vm3, %v383_v36, 0.0 }
  0xa9   : > { %760 = vmax.xlane.f32.xlu0 %v438_v19 }
  0xab   : > { %v3226_v20 = vpop.xlane.xlu2 %684  ;;  %v3228_v24 = vpop.xlane.xlu1 %680 }
  0xac   : > { %v3230_v25 = vpop.xlane.xlu0 %676 }
  0xb0   : > { %770 = vmax.xlane.f32.xlu2 %v443_v26  ;;  %768 = vmax.xlane.f32.xlu1 %v442_v30 }
  0xb1   : > { %766 = vmax.xlane.f32.xlu0 %v441_v32  ;;  %v463_v32 = vsel %vm5086_vm8, %v384_v8, 0.0 }
  0xb3   : > { %v3239_v37 = vpop.xlane.xlu2 %686  ;;  %v3241_v38 = vpop.xlane.xlu1 %682 }
  0xb4   : > { %v3243_v42 = vpop.xlane.xlu0 %678 }
  0xb8   : > { %776 = vmax.xlane.f32.xlu2 %v446_v43  ;;  %774 = vmax.xlane.f32.xlu1 %v445_v44  ;;  %v462_v43 = vsel %vm5077_vm5, %v384_v8, 0.0 }
  0xb9   : > { %772 = vmax.xlane.f32.xlu0 %v444_v45 }
  0xbb   : > { %v3251_v47 = vpop.xlane.xlu2 %692  ;;  %v3253_v48 = vpop.xlane.xlu1 %690 }
  0xbc   : > { %v3255_v49 = vpop.xlane.xlu0 %688 }
  0xc0   : > { %782 = vmax.xlane.f32.xlu2 %v449_v50  ;;  %780 = vmax.xlane.f32.xlu1 %v448_v51  ;;  %v467_v50 = vsel %vm5076_vm11, %v384_v8, 0.0  ;;  %v466_v51 = vsel %vm5057_vm12, %v384_v8, 0.0 }
  0xc1   : > { %778 = vmax.xlane.f32.xlu0 %v447_v52  ;;  %v465_v52 = vsel %vm5085_vm7, %v384_v8, 0.0 }
  0xc3   : > { %v3263_v53 = vpop.xlane.xlu2 %698  ;;  %v3265_v54 = vpop.xlane.xlu1 %696 }
  0xc4   : > { %v3267_v55 = vpop.xlane.xlu0 %694 }
  0xc8   : > { %788 = vmax.xlane.f32.xlu2 %v452_v56  ;;  %786 = vmax.xlane.f32.xlu1 %v451_v57 }
  0xc9   : > { %784 = vmax.xlane.f32.xlu0 %v450_v58 }
  0xcb   : > { %v3275_v59 = vpop.xlane.xlu2 %704  ;;  %v3277_v60 = vpop.xlane.xlu1 %702 }
  0xcc   : > { %v3279_v61 = vpop.xlane.xlu0 %700 }
  0xd0   : > { %794 = vmax.xlane.f32.xlu2 %v455_v62  ;;  %792 = vmax.xlane.f32.xlu1 %v454_v63  ;;  %v470_v62 = vsel %vm5063_vm14, %v384_v8, 0.0  ;;  %v469_v63 = vsel %vm5056_vm15, %v384_v8, 0.0 }
  0xd1   : > { %790 = vmax.xlane.f32.xlu0 %v453_v0  ;;  %v468_v0 = vsel %vm5089_vm10, %v384_v8, 0.0 }
  0xd3   : > { %v3287_v1 = vpop.xlane.xlu2 %710  ;;  %v3289_v2 = vpop.xlane.xlu1 %708 }
  0xd4   : > { %v3291_v3 = vpop.xlane.xlu0 %706 }
  0xd5   : > { %5116 = vst [vmem:[#allocation21_spill] sm:$0xff] %v3291_v3 }
  0xd8   : > { %800 = vmax.xlane.f32.xlu2 %v458_v4  ;;  %798 = vmax.xlane.f32.xlu1 %v457_v5 }
  0xd9   : > { %796 = vmax.xlane.f32.xlu0 %v456_v7  ;;  %v473_v7 = vsel %vm5074_vm1, %v384_v8, 0.0 }
  0xdb   : > { %v3300_v9 = vpop.xlane.xlu2 %716  ;;  %v3302_v10 = vpop.xlane.xlu1 %714 }
  0xdc   : > { %v3304_v11 = vpop.xlane.xlu0 %712 }
  0xe0   : > { %806 = vmax.xlane.f32.xlu2 %v461_v15  ;;  %804 = vmax.xlane.f32.xlu1 %v460_v17  ;;  %v472_v15 = vsel %vm5058_vm2, %v384_v8, 0.0  ;;  %v345_v17 = vrot.slane %v3089_v16, 5 }
  0xe1   : > { %802 = vmax.xlane.f32.xlu0 %v459_v18  ;;  %v471_v18 = vsel %vm5075_vm13, %v384_v8, 0.0 }
  0xe3   : > { %v3312_v19 = vpop.xlane.xlu2 %722  ;;  %v3314_v26 = vpop.xlane.xlu1 %720 }
  0xe4   : > { %v3316_v30 = vpop.xlane.xlu0 %718 }
  0xe8   : > { %812 = vmax.xlane.f32.xlu2 %v464_v31  ;;  %810 = vmax.xlane.f32.xlu1 %v463_v32  ;;  %v385_v31 = vperm.slane %v345_v17, 0 }
  0xe9   : > { %808 = vmax.xlane.f32.xlu0 %v462_v43 }
  0xea   : > { %v478_v17 = vsel %vm5077_vm5, %v385_v31, 0.0  ;;  %v489_v3 = vsel %vm5074_vm1, %v385_v31, 0.0 }
  0xeb   : > { %v3324_v36 = vpop.xlane.xlu2 %728  ;;  %v3326_v44 = vpop.xlane.xlu1 %726 }
  0xec   : > { %v3328_v45 = vpop.xlane.xlu0 %724 }
  0xf0   : > { %818 = vmax.xlane.f32.xlu2 %v467_v50  ;;  %816 = vmax.xlane.f32.xlu1 %v466_v51  ;;  %v476_v51 = vsel %vm5084_vm6, %v385_v31, 0.0 }
  0xf1   : > { %814 = vmax.xlane.f32.xlu0 %v465_v52  ;;  %v475_v52 = vsel %vm5072_vm3, %v384_v8, 0.0 }
  0xf3   : > { %v3336_v56 = vpop.xlane.xlu2 %734  ;;  %v3338_v57 = vpop.xlane.xlu1 %732 }
  0xf4   : > { %5117 = vst [vmem:[#allocation22_spill] sm:$0xff] %v3336_v56  ;;  %v3340_v58 = vpop.xlane.xlu0 %730  ;;  %v483_v56 = vsel %vm5076_vm11, %v385_v31, 0.0 }
  0xf8   : > { %824 = vmax.xlane.f32.xlu2 %v470_v62  ;;  %822 = vmax.xlane.f32.xlu1 %v469_v63  ;;  %v474_v62 = vsel %vm5073_vm0, %v384_v8, 0.0 }
  0xf9   : > { %820 = vmax.xlane.f32.xlu0 %v468_v0 }
  0xfb   : > { %v3348_v4 = vpop.xlane.xlu2 %740  ;;  %v3350_v5 = vpop.xlane.xlu1 %738 }
  0xfc   : > { %5118 = vst [vmem:[#allocation23_spill] sm:$0xff] %v3350_v5  ;;  %v3352_v6 = vpop.xlane.xlu0 %736  ;;  %v480_v5 = vsel %vm5087_vm4, %v385_v31, 0.0 }
  0xfd   : > { %5119 = vst [vmem:[#allocation24_spill] sm:$0xff] %v3352_v6  ;;  %v481_v6 = vsel %vm5085_vm7, %v385_v31, 0.0 }
 0x100   : > { %830 = vmax.xlane.f32.xlu2 %v473_v7  ;;  %828 = vmax.xlane.f32.xlu1 %v472_v15  ;;  %v479_v15 = vsel %vm5086_vm8, %v385_v31, 0.0 }
 0x101   : > { %826 = vmax.xlane.f32.xlu0 %v471_v18  ;;  %v477_v18 = vsel %vm5088_vm9, %v385_v31, 0.0 }
 0x103   : > { %v3361_v32 = vpop.xlane.xlu2 %746  ;;  %v3363_v43 = vpop.xlane.xlu1 %744 }
 0x104   : > { %v3365_v50 = vpop.xlane.xlu0 %742 }
 0x108   : > { %836 = vmax.xlane.f32.xlu2 %v476_v51  ;;  %834 = vmax.xlane.f32.xlu1 %v475_v52 }
 0x109   : > { %832 = vmax.xlane.f32.xlu0 %v474_v62  ;;  %v482_v62 = vsel %vm5057_vm12, %v385_v31, 0.0 }
 0x10b   : > { %v3373_v63 = vpop.xlane.xlu2 %752  ;;  %v3375_v0 = vpop.xlane.xlu1 %750 }
 0x10c   : > { %v3377_v7 = vpop.xlane.xlu0 %748 }
 0x110   : > { %842 = vmax.xlane.f32.xlu2 %v479_v15  ;;  %840 = vmax.xlane.f32.xlu1 %v478_v17 }
 0x111   : > { %838 = vmax.xlane.f32.xlu0 %v477_v18 }
 0x113   : > { %v3385_v8 = vpop.xlane.xlu2 %758  ;;  %v3387_v51 = vpop.xlane.xlu1 %756 }
 0x114   : > { %5120 = vst [vmem:[#allocation25_spill] sm:$0xff] %v3385_v8  ;;  %v3389_v52 = vpop.xlane.xlu0 %754  ;;  %v485_v8 = vsel %vm5056_vm15, %v385_v31, 0.0 }
 0x115   : > { %5121 = vst [vmem:[#allocation26_spill] sm:$0xff] %v3387_v51  ;;  %v484_v51 = vsel %vm5089_vm10, %v385_v31, 0.0 }
 0x116   : > { %5122 = vst [vmem:[#allocation27_spill] sm:$0xff] %v3389_v52 }
 0x118   : > { %848 = vmax.xlane.f32.xlu2 %v482_v62  ;;  %846 = vmax.xlane.f32.xlu1 %v481_v6 }
 0x119   : > { %844 = vmax.xlane.f32.xlu0 %v480_v5 }
 0x11b   : > { %v3397_v15 = vpop.xlane.xlu2 %764  ;;  %v3399_v17 = vpop.xlane.xlu1 %762 }
 0x11c   : > { %5123 = vst [vmem:[#allocation28_spill] sm:$0xff] %v3397_v15  ;;  %v3401_v18 = vpop.xlane.xlu0 %760  ;;  %v488_v15 = vsel %vm5058_vm2, %v385_v31, 0.0 }
 0x11d   : > { %5124 = vst [vmem:[#allocation29_spill] sm:$0xff] %v3399_v17  ;;  %v487_v17 = vsel %vm5075_vm13, %v385_v31, 0.0 }
 0x11e   : > { %5125 = vst [vmem:[#allocation30_spill] sm:$0xff] %v3401_v18  ;;  %v486_v18 = vsel %vm5063_vm14, %v385_v31, 0.0 }
 0x120   : > { %854 = vmax.xlane.f32.xlu2 %v485_v8  ;;  %852 = vmax.xlane.f32.xlu1 %v484_v51 }
 0x121   : > { %850 = vmax.xlane.f32.xlu0 %v483_v56 }
 0x123   : > { %v3409_v6 = vpop.xlane.xlu2 %770  ;;  %v3411_v5 = vpop.xlane.xlu1 %768 }
 0x124   : > { %5126 = vst [vmem:[#allocation31_spill] sm:$0xff] %v3409_v6  ;;  %v3413_v62 = vpop.xlane.xlu0 %766  ;;  %v491_v6 = vsel %vm5072_vm3, %v385_v31, 0.0 }
 0x125   : > { %5127 = vst [vmem:[#allocation32_spill] sm:$0xff] %v3411_v5  ;;  %v490_v5 = vsel %vm5073_vm0, %v385_v31, 0.0 }
 0x126   : > { %5128 = vst [vmem:[#allocation33_spill] sm:$0xff] %v3413_v62  ;;  %v346_v62 = vrot.slane %v3089_v16, 6 }
 0x128   : > { %860 = vmax.xlane.f32.xlu2 %v488_v15  ;;  %858 = vmax.xlane.f32.xlu1 %v487_v17  ;;  %v386_v15 = vperm.slane %v346_v62, 0 }
 0x129   : > { %856 = vmax.xlane.f32.xlu0 %v486_v18 }
 0x12a   : > { %v492_v52 = vsel %vm5084_vm6, %v386_v15, 0.0  ;;  %v496_v62 = vsel %vm5087_vm4, %v386_v15, 0.0 }
 0x12b   : > { %v3421_v8 = vpop.xlane.xlu2 %776  ;;  %v3423_v56 = vpop.xlane.xlu1 %774 }
 0x12c   : > { %5129 = vst [vmem:[#allocation34_spill] sm:$0xff] %v3421_v8  ;;  %v3425_v51 = vpop.xlane.xlu0 %772 }
 0x12d   : > { %5130 = vst [vmem:[#allocation35_spill] sm:$0xff] %v3423_v56  ;;  %v494_v56 = vsel %vm5077_vm5, %v386_v15, 0.0 }
 0x12e   : > { %5131 = vst [vmem:[#allocation36_spill] sm:$0xff] %v3425_v51  ;;  %v493_v51 = vsel %vm5088_vm9, %v386_v15, 0.0 }
 0x130   : > { %866 = vmax.xlane.f32.xlu2 %v491_v6  ;;  %864 = vmax.xlane.f32.xlu1 %v490_v5  ;;  %v497_v5 = vsel %vm5085_vm7, %v386_v15, 0.0 }
 0x131   : > { %862 = vmax.xlane.f32.xlu0 %v489_v3 }
 0x133   : > { %v3434_v17 = vpop.xlane.xlu2 %782  ;;  %v3436_v18 = vpop.xlane.xlu1 %780 }
 0x134   : > { %5132 = vst [vmem:[#allocation37_spill] sm:$0xff] %v3434_v17  ;;  %v3438_v8 = vpop.xlane.xlu0 %778  ;;  %v495_v17 = vsel %vm5086_vm8, %v386_v15, 0.0 }
 0x135   : > { %5133 = vst [vmem:[#allocation38_spill] sm:$0xff] %v3436_v18  ;;  %v504_v18 = vsel %vm5058_vm2, %v386_v15, 0.0 }
 0x136   : > { %5134 = vst [vmem:[#allocation39_spill] sm:$0xff] %v3438_v8 }
 0x138   : > { %872 = vmax.xlane.f32.xlu2 %v494_v56  ;;  %870 = vmax.xlane.f32.xlu1 %v493_v51 }
 0x139   : > { %868 = vmax.xlane.f32.xlu0 %v492_v52 }
 0x13b   : > { %v3446_v3 = vpop.xlane.xlu2 %788  ;;  %v3448_v31 = vpop.xlane.xlu1 %786 }
 0x13c   : > { %5135 = vst [vmem:[#allocation40_spill] sm:$0xff] %v3446_v3  ;;  %v3450_v6 = vpop.xlane.xlu0 %784  ;;  %v500_v3 = vsel %vm5089_vm10, %v386_v15, 0.0 }
 0x13d   : > { %5136 = vst [vmem:[#allocation41_spill] sm:$0xff] %v3448_v31  ;;  %v499_v31 = vsel %vm5076_vm11, %v386_v15, 0.0 }
 0x13e   : > { %5137 = vst [vmem:[#allocation42_spill] sm:$0xff] %v3450_v6  ;;  %v498_v6 = vsel %vm5057_vm12, %v386_v15, 0.0 }
 0x140   : > { %878 = vmax.xlane.f32.xlu2 %v497_v5  ;;  %876 = vmax.xlane.f32.xlu1 %v496_v62 }
 0x141   : > { %874 = vmax.xlane.f32.xlu0 %v495_v17 }
 0x143   : > { %v3458_v56 = vpop.xlane.xlu2 %794  ;;  %v3460_v52 = vpop.xlane.xlu1 %792 }
 0x144   : > { %5138 = vst [vmem:[#allocation43_spill] sm:$0xff] %v3458_v56  ;;  %v3462_v51 = vpop.xlane.xlu0 %790  ;;  %v503_v56 = vsel %vm5075_vm13, %v386_v15, 0.0 }
 0x145   : > { %5139 = vst [vmem:[#allocation44_spill] sm:$0xff] %v3460_v52  ;;  %v502_v52 = vsel %vm5063_vm14, %v386_v15, 0.0 }
 0x146   : > { %5140 = vst [vmem:[#allocation45_spill] sm:$0xff] %v3462_v51  ;;  %v501_v51 = vsel %vm5056_vm15, %v386_v15, 0.0 }
 0x148   : > { %884 = vmax.xlane.f32.xlu2 %v500_v3  ;;  %882 = vmax.xlane.f32.xlu1 %v499_v31 }
 0x149   : > { %880 = vmax.xlane.f32.xlu0 %v498_v6 }
 0x14b   : > { %v3470_v5 = vpop.xlane.xlu2 %800  ;;  %v3472_v17 = vpop.xlane.xlu1 %798 }
 0x14c   : > { %5141 = vst [vmem:[#allocation46_spill] sm:$0xff] %v3470_v5  ;;  %v3474_v62 = vpop.xlane.xlu0 %796  ;;  %v506_v5 = vsel %vm5073_vm0, %v386_v15, 0.0 }
 0x14d   : > { %5142 = vst [vmem:[#allocation47_spill] sm:$0xff] %v3472_v17  ;;  %v505_v17 = vsel %vm5074_vm1, %v386_v15, 0.0 }
 0x14e   : > { %5143 = vst [vmem:[#allocation48_spill] sm:$0xff] %v3474_v62  ;;  %v347_v62 = vrot.slane %v3089_v16, 7 }
 0x150   : > { %890 = vmax.xlane.f32.xlu2 %v503_v56  ;;  %888 = vmax.xlane.f32.xlu1 %v502_v52  ;;  %v387_v56 = vperm.slane %v347_v62, 0 }
 0x151   : > { %886 = vmax.xlane.f32.xlu0 %v501_v51 }
 0x152   : > { %v509_v8 = vsel %vm5088_vm9, %v387_v56, 0.0  ;;  %v512_v62 = vsel %vm5087_vm4, %v387_v56, 0.0 }
 0x153   : > { %v3482_v3 = vpop.xlane.xlu2 %806  ;;  %v3484_v31 = vpop.xlane.xlu1 %804 }
 0x154   : > { %5144 = vst [vmem:[#allocation49_spill] sm:$0xff] %v3482_v3  ;;  %v3486_v6 = vpop.xlane.xlu0 %802  ;;  %v507_v3 = vsel %vm5072_vm3, %v386_v15, 0.0 }
 0x155   : > { %5145 = vst [vmem:[#allocation50_spill] sm:$0xff] %v3484_v31  ;;  %v508_v31 = vsel %vm5084_vm6, %v387_v56, 0.0 }
 0x156   : > { %5146 = vst [vmem:[#allocation51_spill] sm:$0xff] %v3486_v6 }
 0x158   : > { %896 = vmax.xlane.f32.xlu2 %v506_v5  ;;  %894 = vmax.xlane.f32.xlu1 %v505_v17 }
 0x159   : > { %892 = vmax.xlane.f32.xlu0 %v504_v18 }
 0x15b   : > { %v3495_v52 = vpop.xlane.xlu2 %812  ;;  %v3497_v51 = vpop.xlane.xlu1 %810 }
 0x15c   : > { %5147 = vst [vmem:[#allocation52_spill] sm:$0xff] %v3495_v52  ;;  %v3499_v6 = vpop.xlane.xlu0 %808  ;;  %v511_v52 = vsel %vm5086_vm8, %v387_v56, 0.0 }
 0x15d   : > { %5148 = vst [vmem:[#allocation53_spill] sm:$0xff] %v3497_v51  ;;  %v510_v51 = vsel %vm5077_vm5, %v387_v56, 0.0 }
 0x15e   : > { %5149 = vst [vmem:[#allocation54_spill] sm:$0xff] %v3499_v6  ;;  %v523_v6 = vsel %vm5072_vm3, %v387_v56, 0.0 }
 0x160   : > { %902 = vmax.xlane.f32.xlu2 %v509_v8  ;;  %900 = vmax.xlane.f32.xlu1 %v508_v31  ;;  %v515_v31 = vsel %vm5076_vm11, %v387_v56, 0.0 }
 0x161   : > { %898 = vmax.xlane.f32.xlu0 %v507_v3 }
 0x163   : > { %v3507_v18 = vpop.xlane.xlu2 %818  ;;  %v3509_v5 = vpop.xlane.xlu1 %816 }
 0x164   : > { %5150 = vst [vmem:[#allocation55_spill] sm:$0xff] %v3507_v18  ;;  %v3511_v17 = vpop.xlane.xlu0 %814  ;;  %v514_v18 = vsel %vm5057_vm12, %v387_v56, 0.0 }
 0x165   : > { %5151 = vst [vmem:[#allocation56_spill] sm:$0xff] %v3509_v5  ;;  %v513_v5 = vsel %vm5085_vm7, %v387_v56, 0.0 }
 0x166   : > { %5152 = vst [vmem:[#allocation57_spill] sm:$0xff] %v3511_v17 }
 0x168   : > { %908 = vmax.xlane.f32.xlu2 %v512_v62  ;;  %906 = vmax.xlane.f32.xlu1 %v511_v52 }
 0x169   : > { %904 = vmax.xlane.f32.xlu0 %v510_v51 }
 0x16b   : > { %v3519_v8 = vpop.xlane.xlu2 %824  ;;  %v3521_v15 = vpop.xlane.xlu1 %822 }
 0x16c   : > { %5153 = vst [vmem:[#allocation58_spill] sm:$0xff] %v3519_v8  ;;  %v3523_v3 = vpop.xlane.xlu0 %820  ;;  %v518_v8 = vsel %vm5063_vm14, %v387_v56, 0.0 }
 0x16d   : > { %5154 = vst [vmem:[#allocation59_spill] sm:$0xff] %v3521_v15  ;;  %v517_v15 = vsel %vm5056_vm15, %v387_v56, 0.0 }
 0x16e   : > { %5155 = vst [vmem:[#allocation60_spill] sm:$0xff] %v3523_v3  ;;  %v516_v3 = vsel %vm5089_vm10, %v387_v56, 0.0 }
 0x170   : > { %914 = vmax.xlane.f32.xlu2 %v515_v31  ;;  %912 = vmax.xlane.f32.xlu1 %v514_v18  ;;  %v287_v18 = vld [vmem:[%s3548_s19] sm:$0xff] }
 0x171   : > { %910 = vmax.xlane.f32.xlu0 %v513_v5  ;;  %v3562_v17 = vmul.f32 %v3089_v16, %v287_v18 }
 0x173   : > { %v3531_v52 = vpop.xlane.xlu2 %830  ;;  %v3533_v51 = vpop.xlane.xlu1 %828  ;;  %5162 = vst [vmem:[#allocation67_spill] sm:$0xff] %v3562_v17 }
 0x174   : > { %5156 = vst [vmem:[#allocation61_spill] sm:$0xff] %v3531_v52  ;;  %v3535_v62 = vpop.xlane.xlu0 %826 }
 0x175   : > { %5157 = vst [vmem:[#allocation62_spill] sm:$0xff] %v3533_v51  ;;  %v521_v51 = vsel %vm5074_vm1, %v387_v56, 0.0 }
 0x176   : > { %5158 = vst [vmem:[#allocation63_spill] sm:$0xff] %v3535_v62  ;;  %v520_v62 = vsel %vm5058_vm2, %v387_v56, 0.0 }
 0x178   : > { %920 = vmax.xlane.f32.xlu2 %v518_v8  ;;  %918 = vmax.xlane.f32.xlu1 %v517_v15  ;;  %v519_v8 = vsel %vm5075_vm13, %v387_v56, 0.0  ;;  %v3567_v15 = vperm.slane %v3562_v17, 0 }
 0x179   : > { %916 = vmax.xlane.f32.xlu0 %v516_v3 }
 0x17a   : > { %v548_v16 = vsel %vm5084_vm6, %v3567_v15, 0.0 }
 0x17b   : > { %v3551_v5 = vpop.xlane.xlu2 %836  ;;  %v3553_v31 = vpop.xlane.xlu1 %834 }
 0x17c   : > { %5159 = vst [vmem:[#allocation64_spill] sm:$0xff] %v3551_v5  ;;  %v3555_v52 = vpop.xlane.xlu0 %832 }
 0x17d   : > { %5160 = vst [vmem:[#allocation65_spill] sm:$0xff] %v3553_v31 }
 0x17e   : > { %5161 = vst [vmem:[#allocation66_spill] sm:$0xff] %v3555_v52 }
 0x180   : > { %926 = vmax.xlane.f32.xlu2 %v521_v51  ;;  %924 = vmax.xlane.f32.xlu1 %v520_v62  ;;  %v522_v51 = vsel %vm5073_vm0, %v387_v56, 0.0 }
 0x181   : > { %922 = vmax.xlane.f32.xlu0 %v519_v8 }
 0x183   : > { %v3569_v3 = vpop.xlane.xlu2 %842  ;;  %v3571_v31 = vpop.xlane.xlu1 %840 }
 0x184   : > { %5163 = vst [vmem:[#allocation68_spill] sm:$0xff] %v3569_v3  ;;  %v3573_v52 = vpop.xlane.xlu0 %838  ;;  %v550_v3 = vsel %vm5077_vm5, %v3567_v15, 0.0 }
 0x185   : > { %5164 = vst [vmem:[#allocation69_spill] sm:$0xff] %v3571_v31  ;;  %v551_v31 = vsel %vm5086_vm8, %v3567_v15, 0.0 }
 0x186   : > { %5165 = vst [vmem:[#allocation70_spill] sm:$0xff] %v3573_v52 }
 0x188   : > { %930 = vmax.xlane.f32.xlu1 %v523_v6  ;;  %932 = vmax.xlane.f32.xlu2 %v548_v16  ;;  %v549_v6 = vsel %vm5088_vm9, %v3567_v15, 0.0 }
 0x189   : > { %928 = vmax.xlane.f32.xlu0 %v522_v51 }
 0x18b   : > { %v3582_v62 = vpop.xlane.xlu2 %848  ;;  %v3584_v18 = vpop.xlane.xlu1 %846 }
 0x18c   : > { %5166 = vst [vmem:[#allocation71_spill] sm:$0xff] %v3582_v62  ;;  %v3586_v8 = vpop.xlane.xlu0 %844  ;;  %v553_v62 = vsel %vm5085_vm7, %v3567_v15, 0.0 }
 0x18d   : > { %5167 = vst [vmem:[#allocation72_spill] sm:$0xff] %v3584_v18  ;;  %v554_v18 = vsel %vm5057_vm12, %v3567_v15, 0.0  ;;  %vm1326_vm12 = vcmask 195712  }
 0x18e   : > { %5168 = vst [vmem:[#allocation73_spill] sm:$0xff] %v3586_v8  ;;  %v556_v8 = vsel %vm5089_vm10, %v3567_v15, 0.0 }
 0x190   : > { %936 = vmax.xlane.f32.xlu1 %v550_v3  ;;  %938 = vmax.xlane.f32.xlu2 %v551_v31  ;;  %v552_v3 = vsel %vm5087_vm4, %v3567_v15, 0.0  ;;  %v5055_v31 = vlaneseq }
 0x191   : > { %934 = vmax.xlane.f32.xlu0 %v549_v6 }
 0x193   : > { %v3597_v56 = vpop.xlane.xlu2 %854  ;;  %v3599_v16 = vpop.xlane.xlu1 %852 }
 0x194   : > { %5169 = vst [vmem:[#allocation74_spill] sm:$0xff] %v3597_v56  ;;  %v3601_v51 = vpop.xlane.xlu0 %850 }
 0x195   : > { %5170 = vst [vmem:[#allocation75_spill] sm:$0xff] %v3599_v16 }
 0x196   : > { %5171 = vst [vmem:[#allocation76_spill] sm:$0xff] %v3601_v51  ;;  %v3619_v51 = vand.u32 127, %v5055_v31 }
 0x198   : > { %942 = vmax.xlane.f32.xlu1 %v553_v62  ;;  %944 = vmax.xlane.f32.xlu2 %v554_v18  ;;  %v557_v62 = vsel %vm5056_vm15, %v3567_v15, 0.0  ;;  %v555_v18 = vsel %vm5076_vm11, %v3567_v15, 0.0  ;;  %vm5092_vm15 = vcmask 130112   ;;  %v1319_v5 = vperm.slane %v3230_v25, %v3619_v51 }
 0x199   : > { %940 = vmax.xlane.f32.xlu0 %v552_v3  ;;  %v3631_v3 = vadd.s32 4294967288, %v3619_v51  ;;  %v3668_v35 = vadd.s32 4294967256, %v3619_v51  ;;  %v3697_v39 = vadd.s32 4294967240, %v3619_v51  ;;  %vm5099_vm11 = vcmask 654912  }
 0x19a   : > { %v3755_v14 = vadd.s32 4294967192, %v3619_v51 }
 0x19b   : > { %v3612_v6 = vpop.xlane.xlu2 %860  ;;  %v3614_v56 = vpop.xlane.xlu1 %858  ;;  %v1321_v31 = vperm.slane %v3243_v42, %v3631_v3  ;;  %v559_v42 = vsel %vm5075_vm13, %v3567_v15, 0.0  ;;  %5178 = vst [vmem:[#allocation83_spill] sm:$0xff] %v3697_v39  ;;  %vm1350_vm13 = vcmask 589312  }
 0x19c   : > { %5172 = vst [vmem:[#allocation77_spill] sm:$0xff] %v3612_v6  ;;  %v3616_v16 = vpop.xlane.xlu0 %856 }
 0x19d   : > { %5173 = vst [vmem:[#allocation78_spill] sm:$0xff] %v3614_v56 }
 0x19e   : > { %5174 = vst [vmem:[#allocation79_spill] sm:$0xff] %v3616_v16  ;;  %v3640_v16 = vadd.s32 4294967280, %v3619_v51 }
 0x1a0   : > { %948 = vmax.xlane.f32.xlu1 %v556_v8  ;;  %950 = vmax.xlane.f32.xlu2 %v557_v62  ;;  %v3647_v8 = vadd.s32 4294967272, %v3619_v51  ;;  %v560_v62 = vsel %vm5058_vm2, %v3567_v15, 0.0  ;;  %v1325_v25 = vperm.slane %v3228_v24, %v3640_v16  ;;  %vm1330_vm2 = vcmask 261312  }
 0x1a1   : > { %946 = vmax.xlane.f32.xlu0 %v555_v18  ;;  %v558_v18 = vsel %vm5063_vm14, %v3567_v15, 0.0  ;;  %v1380_v24 = vperm.slane %v3289_v2, %v3619_v51  ;;  %vm1334_vm14 = vcmask 326912   ;;  %v525_v2 = vrot.slane %v3562_v17, 1 }
 0x1a2   : > { %v1383_v34 = vperm.slane %v3304_v11, %v3640_v16  ;;  %v1385_v11 = vperm.slane %v3302_v10, %v3647_v8 }
 0x1a3   : > { %v3635_v6 = vpop.xlane.xlu2 %866  ;;  %v3637_v56 = vpop.xlane.xlu1 %864 }
 0x1a4   : > { %5175 = vst [vmem:[#allocation80_spill] sm:$0xff] %v3635_v6  ;;  %v3642_v52 = vpop.xlane.xlu0 %862  ;;  %v1323_v6 = vsel %vm5092_vm15, %v1321_v31, %v1319_v5  ;;  %v1381_v5 = vperm.slane %v3287_v1, %v3631_v3  ;;  %v563_v1 = vsel %vm5072_vm3, %v3567_v15, 0.0  ;;  %vm5090_vm3 = vcmask 392512  }
 0x1a5   : > { %5176 = vst [vmem:[#allocation81_spill] sm:$0xff] %v3637_v56  ;;  %v1329_v56 = vperm.slane %v3241_v38, %v3647_v8  ;;  %v1327_v41 = vsel %vm1326_vm12, %v1325_v25, %v1323_v6  ;;  %v3677_v38 = vadd.s32 4294967248, %v3619_v51  ;;  %v562_v6 = vsel %vm5073_vm0, %v3567_v15, 0.0 }
 0x1a6   : > { %5177 = vst [vmem:[#allocation82_spill] sm:$0xff] %v3642_v52  ;;  %v3664_v52 = vadd.s32 4294967264, %v3619_v51  ;;  %v1382_v46 = vsel %vm5092_vm15, %v1381_v5, %v1380_v24  ;;  %vm5091_vm0 = vcmask 458112   ;;  %v1345_v24 = vperm.slane %v3253_v48, %v3697_v39 }
 0x1a7   : > { %v1384_v5 = vsel %vm1326_vm12, %v1383_v34, %v1382_v46 }
 0x1a8   : > { %954 = vmax.xlane.f32.xlu1 %v559_v42  ;;  %956 = vmax.xlane.f32.xlu2 %v560_v62  ;;  %v1333_v25 = vperm.slane %v3226_v20, %v3664_v52  ;;  %v1341_v20 = vperm.slane %v3255_v49, %v3677_v38  ;;  %v1387_v34 = vperm.slane %v3300_v9, %v3664_v52 }
 0x1a9   : > { %952 = vmax.xlane.f32.xlu0 %v558_v18  ;;  %v1331_v18 = vsel %vm1330_vm2, %v1329_v56, %v1327_v41  ;;  %v561_v41 = vsel %vm5074_vm1, %v3567_v15, 0.0  ;;  %v1337_v56 = vperm.slane %v3239_v37, %v3668_v35  ;;  %v3705_v15 = vperm.slane %v525_v2, 0 }
 0x1aa   : > { %v1335_v17 = vsel %vm1334_vm14, %v1333_v25, %v1331_v18  ;;  %v3708_v37 = vadd.s32 4294967232, %v3619_v51  ;;  %vm1346_vm1 = vcmask 523712   ;;  %v3720_v25 = vadd.s32 4294967208, %v3619_v51 }
 0x1ab   : > { %v3674_v31 = vpop.xlane.xlu2 %872  ;;  %v871_v42 = vpop.xlane.xlu1 %870  ;;  %v1339_v49 = vsel %vm5090_vm3, %v1337_v56, %v1335_v17  ;;  %v1386_v48 = vsel %vm1330_vm2, %v1385_v11, %v1384_v5  ;;  %v1389_v17 = vperm.slane %v3316_v30, %v3668_v35  ;;  %v3737_v56 = vadd.s32 4294967216, %v3619_v51 }
 0x1ac   : > { %v869_v62 = vpop.xlane.xlu0 %868  ;;  %v1343_v2 = vsel %vm5091_vm0, %v1341_v20, %v1339_v49  ;;  %v1538_v9 = vperm.slane %v3674_v31, %v3640_v16  ;;  %v564_v20 = vsel %vm5084_vm6, %v3705_v15, 0.0  ;;  %v1349_v30 = vperm.slane %v3251_v47, %v3708_v37 }
 0x1ad   : > { %v1535_v18 = vperm.slane %v869_v62, %v3619_v51  ;;  %v565_v62 = vsel %vm5088_vm9, %v3705_v15, 0.0  ;;  %v1347_v11 = vsel %vm1346_vm1, %v1345_v24, %v1343_v2  ;;  %v1388_v23 = vsel %vm1334_vm14, %v1387_v34, %v1386_v48 }
 0x1ae   : > { %v1391_v31 = vperm.slane %v3314_v26, %v3677_v38  ;;  %vm1362_vm6 = vcmask 786112   ;;  %v3758_v47 = vadd.s32 4294967200, %v3619_v51  ;;  %v1390_v24 = vsel %vm5090_vm3, %v1389_v17, %v1388_v23 }
 0x1af   : > { %v1357_v2 = vperm.slane %v3265_v54, %v3737_v56  ;;  %v1351_v34 = vsel %vm1350_vm13, %v1349_v30, %v1347_v11  ;;  %vm5180_vm9 = vcmp.gt.f32.partialorder %v3120_v29, 0.0 }
 0x1b0   : > { %960 = vmax.xlane.f32.xlu1 %v562_v6  ;;  %962 = vmax.xlane.f32.xlu2 %v563_v1  ;;  %v1536_v6 = vperm.slane %v871_v42, %v3631_v3  ;;  %v566_v42 = vsel %vm5077_vm5, %v3705_v15, 0.0  ;;  %vm5098_vm5 = vcmask 720512   ;;  %v1365_v30 = vperm.slane %v3279_v61, %v3758_v47 }
 0x1b1   : > { %958 = vmax.xlane.f32.xlu0 %v561_v41  ;;  %v3723_v41 = vadd.s32 4294967224, %v3619_v51 }
 0x1b2   : > { %v1537_v5 = vsel %vm5092_vm15, %v1536_v6, %v1535_v18  ;;  %v1412_v18 = vperm.slane %v3365_v50, %v3631_v3 }
 0x1b3   : > { %v3716_v10 = vpop.xlane.xlu2 %878  ;;  %v877_v1 = vpop.xlane.xlu1 %876  ;;  %v1353_v13 = vperm.slane %v3267_v55, %v3723_v41  ;;  %v1411_v55 = vperm.slane %v3348_v4, %v3619_v51  ;;  %v1539_v26 = vsel %vm1326_vm12, %v1538_v9, %v1537_v5  ;;  %v1361_v4 = vperm.slane %v3263_v53, %v3720_v25 }
 0x1b4   : > { %v875_v46 = vpop.xlane.xlu0 %874  ;;  %v1542_v6 = vperm.slane %v877_v1, %v3664_v52  ;;  %v1395_v1 = vperm.slane %v3328_v45, %v3708_v37  ;;  %v569_v9 = vsel %vm5085_vm7, %v3705_v15, 0.0  ;;  %v1397_v5 = vperm.slane %v3326_v44, %v3723_v41 }
 0x1b5   : > { %v1540_v49 = vperm.slane %v875_v46, %v3647_v8  ;;  %v1393_v46 = vperm.slane %v3312_v19, %v3697_v39  ;;  %v1355_v50 = vsel %vm5099_vm11, %v1353_v13, %v1351_v34  ;;  %v1544_v19 = vperm.slane %v3716_v10, %v3668_v35 }
 0x1b6   : > { %v568_v13 = vsel %vm5087_vm4, %v3705_v15, 0.0  ;;  %v1413_v53 = vsel %vm5092_vm15, %v1412_v18, %v1411_v55  ;;  %v1359_v10 = vsel %vm5098_vm5, %v1357_v2, %v1355_v50  ;;  %vm5100_vm7 = vcmask 851712  }
 0x1b7   : > { %v1541_v23 = vsel %vm1330_vm2, %v1540_v49, %v1539_v26  ;;  %v1363_v44 = vsel %vm1362_vm6, %v1361_v4, %v1359_v10  ;;  %v1418_v26 = vperm.slane %v3377_v7, %v3664_v52  ;;  %v1399_v34 = vperm.slane %v3324_v36, %v3737_v56 }
 0x1b8   : > { %968 = vmax.xlane.f32.xlu2 %v566_v42  ;;  %966 = vmax.xlane.f32.xlu1 %v565_v62  ;;  %v1392_v42 = vsel %vm5091_vm0, %v1391_v31, %v1390_v24  ;;  %v1414_v62 = vperm.slane %v3363_v43, %v3640_v16  ;;  %v567_v43 = vsel %vm5086_vm8, %v3705_v15, 0.0  ;;  %v1416_v31 = vperm.slane %v3361_v32, %v3647_v8 }
 0x1b9   : > { %964 = vmax.xlane.f32.xlu0 %v564_v20  ;;  %v1543_v20 = vsel %vm1334_vm14, %v1542_v6, %v1541_v23  ;;  %v1394_v11 = vsel %vm1346_vm1, %v1393_v46, %v1392_v42  ;;  %v3805_v24 = vadd.s32 4294967184, %v3619_v51  ;;  %vm1370_vm8 = vcmask 917312  }
 0x1ba   : > { %v1396_v49 = vsel %vm1350_vm13, %v1395_v1, %v1394_v11  ;;  %v1415_v55 = vsel %vm1326_vm12, %v1414_v62, %v1413_v53  ;;  %v1545_v61 = vsel %vm5090_vm3, %v1544_v19, %v1543_v20  ;;  %v1369_v6 = vperm.slane %v3277_v60, %v3755_v14  ;;  %v5181_v11 = vld [vmem:[#allocation27_spill] sm:$0xff] }
 0x1bb   : > { %v885_v48 = vpop.xlane.xlu2 %884  ;;  %v883_v17 = vpop.xlane.xlu1 %882  ;;  %v1367_v2 = vsel %vm5100_vm7, %v1365_v30, %v1363_v44  ;;  %v1398_v46 = vsel %vm5099_vm11, %v1397_v5, %v1396_v49  ;;  %v1401_v4 = vperm.slane %v3340_v58, %v3720_v25  ;;  %v1417_v50 = vsel %vm1330_vm2, %v1416_v31, %v1415_v55 }
 0x1bc   : > { %v881_v54 = vpop.xlane.xlu0 %880  ;;  %v1548_v18 = vperm.slane %v883_v17, %v3697_v39  ;;  %v1420_v7 = vperm.slane %v3375_v0, %v3668_v35  ;;  %v1550_v42 = vperm.slane %v885_v48, %v3708_v37  ;;  %v572_v36 = vsel %vm5089_vm10, %v3705_v15, 0.0 }
 0x1bd   : > { %v1546_v45 = vperm.slane %v881_v54, %v3677_v38  ;;  %vm5179_vm4 = vcmp.gt.f32.partialorder %v3118_v28, 0.0  ;;  %v3835_v62 = vadd.s32 4294967176, %v3619_v51  ;;  %v1419_v0 = vsel %vm1334_vm14, %v1418_v26, %v1417_v50 }
 0x1be   : > { %v571_v58 = vsel %vm5179_vm4, %v3705_v15, 0.0  ;;  %v570_v48 = vsel %vm5180_vm9, %v3705_v15, 0.0  ;;  %v1373_v19 = vperm.slane %v3275_v59, %v3805_v24  ;;  %v1403_v53 = vperm.slane %v3338_v57, %v3758_v47 }
 0x1bf   : > { %v1547_v32 = vsel %vm5091_vm0, %v1546_v45, %v1545_v61  ;;  %vm1374_vm4 = vcmask 982912   ;;  %v1422_v20 = vperm.slane %v3373_v63, %v3677_v38  ;;  %v1421_v59 = vsel %vm5090_vm3, %v1420_v7, %v1419_v0  ;;  %v5182_v63 = vld [vmem:[#allocation21_spill] sm:$0xff] }
 0x1c0   : > { %974 = vmax.xlane.f32.xlu2 %v569_v9  ;;  %972 = vmax.xlane.f32.xlu1 %v568_v13  ;;  %v1549_v1 = vsel %vm1346_vm1, %v1548_v18, %v1547_v32  ;;  %v1371_v9 = vsel %vm1370_vm8, %v1369_v6, %v1367_v2  ;;  %v1400_v13 = vsel %vm5098_vm5, %v1399_v34, %v1398_v46  ;;  %vm5093_vm9 = vcmask 1048512   ;;  %v5183_v18 = vld [vmem:[#allocation22_spill] sm:$0xff]  ;;  %v5192_v0 = vld [vmem:[#allocation49_spill] sm:$0xff] }
 0x1c1   : > { %970 = vmax.xlane.f32.xlu0 %v567_v43  ;;  %v1551_v45 = vsel %vm1350_vm13, %v1550_v42, %v1549_v1  ;;  %v1402_v10 = vsel %vm1362_vm6, %v1401_v4, %v1400_v13  ;;  %v1424_v57 = vperm.slane %v5181_v11, %v3697_v39  ;;  %v1375_v5 = vsel %vm1374_vm4, %v1373_v19, %v1371_v9  ;;  %v5184_v34 = vld [vmem:[#allocation26_spill] sm:$0xff]  ;;  %v5186_v4 = vld [vmem:[#allocation16_spill] sm:$0xff]  ;;  %v5189_v1 = vld [vmem:[#allocation35_spill] sm:$0xff] }
 0x1c2   : > { %v1377_v49 = vperm.slane %v5182_v63, %v3835_v62  ;;  %v1405_v44 = vperm.slane %v5183_v18, %v3755_v14  ;;  %v1404_v26 = vsel %vm5100_vm7, %v1403_v53, %v1402_v10  ;;  %v1423_v32 = vsel %vm5091_vm0, %v1422_v20, %v1421_v59  ;;  %v5188_v42 = vld [vmem:[#allocation36_spill] sm:$0xff]  ;;  %v5193_v19 = vld [vmem:[#allocation50_spill] sm:$0xff]  ;;  %v5194_v10 = vld [vmem:[#allocation25_spill] sm:$0xff] }
 0x1c3   : > { %v891_v23 = vpop.xlane.xlu2 %890  ;;  %v889_v17 = vpop.xlane.xlu1 %888  ;;  %v1426_v46 = vperm.slane %v5184_v34, %v3708_v37  ;;  %vm5185_vm10 = vcmp.gt.f32.partialorder %v3131_v33, 0.0  ;;  %vm5187_vm3 = vcmp.gt.f32.partialorder %v5186_v4, 0.0  ;;  %v1425_v7 = vsel %vm1346_vm1, %v1424_v57, %v1423_v32  ;;  %v5195_v11 = vld [vmem:[#allocation30_spill] sm:$0xff]  ;;  %v5199_v32 = vld [vmem:[#allocation39_spill] sm:$0xff] }
 0x1c4   : > { %v887_v60 = vpop.xlane.xlu0 %886  ;;  %v1554_v43 = vperm.slane %v889_v17, %v3737_v56  ;;  %v1556_v31 = vperm.slane %v891_v23, %v3720_v25  ;;  %v575_v23 = vsel %vm5185_vm10, %v3705_v15, 0.0  ;;  %v574_v50 = vsel %vm5187_vm3, %v3705_v15, 0.0  ;;  %v5196_v63 = vld [vmem:[#allocation34_spill] sm:$0xff] }
 0x1c5   : > { %v1552_v54 = vperm.slane %v887_v60, %v3723_v41  ;;  %v1442_v60 = vperm.slane %v5188_v42, %v3619_v51  ;;  %v1473_v9 = vperm.slane %v5193_v19, %v3619_v51  ;;  %v3889_v20 = vsel %vm5093_vm9, %v1377_v49, %v1375_v5  ;;  %v5197_v49 = vld [vmem:[#allocation64_spill] sm:$0xff]  ;;  %v5205_v19 = vld [vmem:[#allocation67_spill] sm:$0xff] }
 0x1c6   : > { %v1428_v59 = vperm.slane %v5194_v10, %v3723_v41  ;;  %v1430_v57 = vperm.slane %v5195_v11, %v3737_v56  ;;  %v1445_v5 = vperm.slane %v5196_v63, %v3640_v16  ;;  %v5206_v10 = vld [vmem:[#allocation19_spill] sm:$0xff] }
 0x1c7   : > { %v1553_v30 = vsel %vm5099_vm11, %v1552_v54, %v1551_v45  ;;  %v1443_v54 = vperm.slane %v5189_v1, %v3631_v3  ;;  %vm5207_vm3 = vcmp.gt.f32.partialorder %v5206_v10, 0.0 }
 0x1c8   : > { %980 = vmax.xlane.f32.xlu2 %v572_v36  ;;  %978 = vmax.xlane.f32.xlu1 %v571_v58  ;;  %v1555_v6 = vsel %vm5098_vm5, %v1554_v43, %v1553_v30  ;;  %v5190_v36 = vld [vmem:[#allocation17_spill] sm:$0xff]  ;;  %v3893_v43 = vsel %vm1370_vm8, %v1405_v44, %v1404_v26  ;;  %v1427_v30 = vsel %vm1350_vm13, %v1426_v46, %v1425_v7  ;;  %v576_v11 = vsel %vm5207_vm3, %v3705_v15, 0.0 }
 0x1c9   : > { %976 = vmax.xlane.f32.xlu0 %v570_v48  ;;  %vm5191_vm0 = vcmp.gt.f32.partialorder %v5190_v36, 0.0  ;;  %v1474_v48 = vperm.slane %v5192_v0, %v3631_v3  ;;  %v1557_v13 = vsel %vm1362_vm6, %v1556_v31, %v1555_v6  ;;  %v1504_v31 = vperm.slane %v5197_v49, %v3619_v51  ;;  %v5201_v7 = vld [vmem:[#allocation69_spill] sm:$0xff]  ;;  %v5208_v49 = vld [vmem:[#allocation38_spill] sm:$0xff] }
 0x1ca   : > { %v573_v58 = vsel %vm5191_vm0, %v3705_v15, 0.0  ;;  %v1444_v26 = vsel %vm5092_vm15, %v1443_v54, %v1442_v60  ;;  %v1447_v6 = vperm.slane %v5199_v32, %v3647_v8  ;;  %v1507_v42 = vperm.slane %v5201_v7, %v3640_v16  ;;  %v5209_v32 = vld [vmem:[#allocation53_spill] sm:$0xff] }
 0x1cb   : > { %v897_v55 = vpop.xlane.xlu2 %896  ;;  %v895_v61 = vpop.xlane.xlu1 %894  ;;  %vm5204_vm0 = vcmp.gt.f32.partialorder %v3148_v40, 0.0  ;;  %v1446_v63 = vsel %vm1326_vm12, %v1445_v5, %v1444_v26  ;;  %v5211_v5 = vld [vmem:[#allocation23_spill] sm:$0xff]  ;;  %vm5223_vm3 = vcmask 392512  }
 0x1cc   : > { %v893_v2 = vpop.xlane.xlu0 %892  ;;  %v1560_v53 = vperm.slane %v895_v61, %v3755_v14  ;;  %v5198_v61 = vld [vmem:[#allocation70_spill] sm:$0xff]  ;;  %v1562_v44 = vperm.slane %v897_v55, %v3805_v24 }
 0x1cd   : > { %v1558_v17 = vperm.slane %v893_v2, %v3758_v47  ;;  %v1505_v18 = vperm.slane %v5198_v61, %v3631_v3  ;;  %v1475_v2 = vsel %vm5092_vm15, %v1474_v48, %v1473_v9  ;;  %v577_v48 = vsel %vm5204_vm0, %v3705_v15, 0.0 }
 0x1ce   : > { %v526_v9 = vrot.slane %v5205_v19, 2  ;;  %v1449_v61 = vperm.slane %v5208_v49, %v3664_v52 }
 0x1cf   : > { %v1559_v45 = vsel %vm5100_vm7, %v1558_v17, %v1557_v13  ;;  %v1506_v13 = vsel %vm5092_vm15, %v1505_v18, %v1504_v31  ;;  %v1448_v31 = vsel %vm1330_vm2, %v1447_v6, %v1446_v63  ;;  %v5212_v6 = vld [vmem:[#allocation29_spill] sm:$0xff] }
 0x1d0   : > { %986 = vmax.xlane.f32.xlu2 %v575_v23  ;;  %984 = vmax.xlane.f32.xlu1 %v574_v50  ;;  %v1561_v34 = vsel %vm1370_vm8, %v1560_v53, %v1559_v45  ;;  %v5200_v23 = vld [vmem:[#allocation54_spill] sm:$0xff]  ;;  %v1508_v7 = vsel %vm1326_vm12, %v1507_v42, %v1506_v13  ;;  %v5216_v42 = vld [vmem:[#allocation52_spill] sm:$0xff] }
 0x1d1   : > { %982 = vmax.xlane.f32.xlu0 %v573_v58  ;;  %v1476_v50 = vperm.slane %v5200_v23, %v3640_v16  ;;  %v5202_v58 = vld [vmem:[#allocation18_spill] sm:$0xff]  ;;  %v1563_v53 = vsel %vm1374_vm4, %v1562_v44, %v1561_v34  ;;  %v5210_v44 = vld [vmem:[#allocation68_spill] sm:$0xff]  ;;  %v1429_v23 = vsel %vm5099_vm11, %v1428_v59, %v1427_v30 }
 0x1d2   : > { %vm5203_vm10 = vcmp.gt.f32.partialorder %v5202_v58, 0.0  ;;  %v1509_v34 = vperm.slane %v5210_v44, %v3647_v8  ;;  %v5215_v59 = vld [vmem:[#allocation42_spill] sm:$0xff] }
 0x1d3   : > { %v903_v46 = vpop.xlane.xlu2 %902  ;;  %v901_v17 = vpop.xlane.xlu1 %900  ;;  %v578_v0 = vsel %vm5203_vm10, %v3705_v15, 0.0  ;;  %v1477_v18 = vsel %vm1326_vm12, %v1476_v50, %v1475_v2  ;;  %v1432_v2 = vperm.slane %v5212_v6, %v3720_v25  ;;  %v5213_v50 = vld [vmem:[#allocation37_spill] sm:$0xff]  ;;  %v1453_v30 = vperm.slane %v5215_v59, %v3677_v38 }
 0x1d4   : > { %v899_v1 = vpop.xlane.xlu0 %898  ;;  %v1567_v55 = vperm.slane %v903_v46, %v3631_v3  ;;  %v1566_v60 = vperm.slane %v901_v17, %v3619_v51  ;;  %v1478_v46 = vperm.slane %v5209_v32, %v3647_v8  ;;  %v1510_v49 = vsel %vm1330_vm2, %v1509_v34, %v1508_v7  ;;  %v5218_v32 = vld [vmem:[#allocation72_spill] sm:$0xff]  ;;  %v5224_v7 = vld [vmem:[#allocation41_spill] sm:$0xff] }
 0x1d5   : > { %v1564_v54 = vperm.slane %v899_v1, %v3835_v62  ;;  %v3948_v1 = vperm.slane %v526_v9, 0  ;;  %v1480_v9 = vperm.slane %v5216_v42, %v3664_v52  ;;  %v1513_v44 = vperm.slane %v5218_v32, %v3668_v35 }
 0x1d6   : > { %v1568_v45 = vsel %vm5092_vm15, %v1567_v55, %v1566_v60  ;;  %v1431_v55 = vsel %vm5098_vm5, %v1430_v57, %v1429_v23  ;;  %v1451_v60 = vperm.slane %v5213_v50, %v3668_v35  ;;  %v1479_v13 = vsel %vm1330_vm2, %v1478_v46, %v1477_v18  ;;  %v5219_v50 = vld [vmem:[#allocation15_spill] sm:$0xff]  ;;  %v5221_v18 = vld [vmem:[#allocation14_spill] sm:$0xff] }
 0x1d7   : > { %v3938_v17 = vsel %vm5093_vm9, %v1564_v54, %v1563_v53  ;;  %v5214_v54 = vld [vmem:[#allocation73_spill] sm:$0xff]  ;;  %vm5220_vm10 = vcmp.gt.f32.partialorder %v5219_v50, 0.0  ;;  %vm5222_vm0 = vcmp.gt.f32.partialorder %v5221_v18, 0.0  ;;  %v1455_v59 = vperm.slane %v5224_v7, %v3697_v39 }
 0x1d8   : > { %992 = vmax.xlane.f32.xlu2 %v578_v0  ;;  %990 = vmax.xlane.f32.xlu1 %v577_v48  ;;  %v1511_v0 = vperm.slane %v5214_v54, %v3664_v52  ;;  %v1450_v48 = vsel %vm1334_vm14, %v1449_v61, %v1448_v31  ;;  %v581_v46 = vsel %vm5220_vm10, %v3948_v1, 0.0  ;;  %v580_v54 = vsel %vm5222_vm0, %v3948_v1, 0.0  ;;  %vm5229_vm10 = vmmov %vm5223_vm3 }
 0x1d9   : > { %988 = vmax.xlane.f32.xlu0 %v576_v11  ;;  %v5217_v11 = vld [vmem:[#allocation57_spill] sm:$0xff]  ;;  %v1452_v34 = vsel %vm5223_vm3, %v1451_v60, %v1450_v48  ;;  %vm5227_vm9 = vcmask 458112   ;;  %v1481_v32 = vsel %vm1334_vm14, %v1480_v9, %v1479_v13  ;;  %v5230_v48 = vld [vmem:[#allocation71_spill] sm:$0xff] }
 0x1da   : > { %v1482_v63 = vperm.slane %v5217_v11, %v3668_v35  ;;  %v1512_v42 = vsel %vm1334_vm14, %v1511_v0, %v1510_v49  ;;  %v1515_v7 = vperm.slane %v5230_v48, %v3677_v38  ;;  %vm5240_vm0 = vmmov %vm5227_vm9 }
 0x1db   : > { %v909_v57 = vpop.xlane.xlu2 %908  ;;  %v907_v53 = vpop.xlane.xlu1 %906 }
 0x1dc   : > { %v905_v23 = vpop.xlane.xlu0 %904  ;;  %v1571_v61 = vperm.slane %v907_v53, %v3647_v8  ;;  %v1573_v6 = vperm.slane %v909_v57, %v3664_v52  ;;  %v5225_v53 = vld [vmem:[#allocation20_spill] sm:$0xff]  ;;  %v1454_v57 = vsel %vm5227_vm9, %v1453_v30, %v1452_v34  ;;  %v1483_v60 = vsel %vm5229_vm10, %v1482_v63, %v1481_v32 }
 0x1dd   : > { %v1569_v31 = vperm.slane %v905_v23, %v3640_v16  ;;  %vm5226_vm15 = vcmp.gt.f32.partialorder %v5225_v53, 0.0  ;;  %v5228_v23 = vld [vmem:[#allocation56_spill] sm:$0xff]  ;;  %v1433_v63 = vsel %vm1362_vm6, %v1432_v2, %v1431_v55  ;;  %v1456_v32 = vsel %vm1346_vm1, %v1455_v59, %v1454_v57 }
 0x1de   : > { %v579_v11 = vsel %vm5226_vm15, %v3705_v15, 0.0  ;;  %v1484_v26 = vperm.slane %v5228_v23, %v3677_v38  ;;  %v5231_v15 = vld [vmem:[#allocation24_spill] sm:$0xff]  ;;  %vm5233_vm15 = vmmov %vm5223_vm3  ;;  %v5237_v23 = vld [vmem:[#allocation45_spill] sm:$0xff]  ;;  %vm5242_vm3 = vcmp.gt.f32.partialorder %v3083_v12, 0.0  ;;  %vm5243_vm10 = vcmp.gt.f32.partialorder %v3103_v22, 0.0 }
 0x1df   : > { %v1570_v50 = vsel %vm1326_vm12, %v1569_v31, %v1568_v45  ;;  %v1407_v49 = vperm.slane %v5231_v15, %v3805_v24  ;;  %v5232_v30 = vld [vmem:[#allocation28_spill] sm:$0xff]  ;;  %v1514_v13 = vsel %vm5233_vm15, %v1513_v44, %v1512_v42  ;;  %v5234_v31 = vld [vmem:[#allocation33_spill] sm:$0xff]  ;;  %v1459_v48 = vperm.slane %v5237_v23, %v3723_v41  ;;  %v5238_v44 = vld [vmem:[#allocation55_spill] sm:$0xff] }
 0x1e0   : > { %v1572_v0 = vsel %vm1330_vm2, %v1571_v61, %v1570_v50  ;;  %998 = vmax.xlane.f32.xlu2 %v581_v46  ;;  %996 = vmax.xlane.f32.xlu1 %v580_v54  ;;  %v1434_v9 = vperm.slane %v5232_v30, %v3758_v47  ;;  %v1436_v34 = vperm.slane %v5234_v31, %v3755_v14  ;;  %v5235_v61 = vld [vmem:[#allocation40_spill] sm:$0xff]  ;;  %v5241_v30 = vld [vmem:[#allocation75_spill] sm:$0xff] }
 0x1e1   : > { %994 = vmax.xlane.f32.xlu0 %v579_v11  ;;  %v1574_v45 = vsel %vm1334_vm14, %v1573_v6, %v1572_v0  ;;  %v1457_v50 = vperm.slane %v5235_v61, %v3708_v37  ;;  %v5236_v46 = vld [vmem:[#allocation76_spill] sm:$0xff]  ;;  %v1486_v42 = vperm.slane %v5238_v44, %v3697_v39  ;;  %v1485_v6 = vsel %vm5227_vm9, %v1484_v26, %v1483_v60 }
 0x1e2   : > { %v1517_v54 = vperm.slane %v5236_v46, %v3697_v39  ;;  %v5239_v11 = vld [vmem:[#allocation60_spill] sm:$0xff]  ;;  %v1516_v15 = vsel %vm5240_vm0, %v1515_v7, %v1514_v13  ;;  %v1519_v31 = vperm.slane %v5241_v30, %v3708_v37  ;;  %v584_v26 = vsel %vm5242_vm3, %v3948_v1, 0.0 }
 0x1e3   : > { %v915_v55 = vpop.xlane.xlu2 %914  ;;  %v913_v2 = vpop.xlane.xlu1 %912  ;;  %v1488_v0 = vperm.slane %v5239_v11, %v3708_v37  ;;  %v583_v60 = vsel %vm5243_vm10, %v3948_v1, 0.0  ;;  %v1458_v7 = vsel %vm1350_vm13, %v1457_v50, %v1456_v32  ;;  %v5244_v13 = vld [vmem:[#allocation44_spill] sm:$0xff]  ;;  %v1487_v30 = vsel %vm1346_vm1, %v1486_v42, %v1485_v6  ;;  %v5249_v32 = vld [vmem:[#allocation74_spill] sm:$0xff] }
 0x1e4   : > { %v911_v61 = vpop.xlane.xlu0 %910  ;;  %v1577_v59 = vperm.slane %v913_v2, %v3677_v38  ;;  %v1579_v46 = vperm.slane %v915_v55, %v3697_v39  ;;  %v1461_v23 = vperm.slane %v5244_v13, %v3737_v56  ;;  %v1518_v44 = vsel %vm1346_vm1, %v1517_v54, %v1516_v15  ;;  %v5245_v2 = vld [vmem:[#allocation13_spill] sm:$0xff] }
 0x1e5   : > { %v1575_v57 = vperm.slane %v911_v61, %v3668_v35  ;;  %vm5246_vm15 = vcmp.gt.f32.partialorder %v5245_v2, 0.0  ;;  %v1460_v55 = vsel %vm5099_vm11, %v1459_v48, %v1458_v7  ;;  %v5247_v61 = vld [vmem:[#allocation59_spill] sm:$0xff]  ;;  %vm5248_vm9 = vcmask 392512  }
 0x1e6   : > { %v582_v11 = vsel %vm5246_vm15, %v3948_v1, 0.0  ;;  %v1490_v12 = vperm.slane %v5247_v61, %v3723_v41  ;;  %v1489_v50 = vsel %vm1350_vm13, %v1488_v0, %v1487_v30  ;;  %v1521_v13 = vperm.slane %v5249_v32, %v3723_v41  ;;  %v5250_v0 = vld [vmem:[#allocation32_spill] sm:$0xff]  ;;  %v5251_v7 = vld [vmem:[#allocation43_spill] sm:$0xff]  ;;  %v5256_v61 = vld [vmem:[#allocation78_spill] sm:$0xff] }
 0x1e7   : > { %v1576_v39 = vsel %vm5248_vm9, %v1575_v57, %v1574_v45  ;;  %v1408_v15 = vsel %vm1374_vm4, %v1407_v49, %v3893_v43  ;;  %v1435_v48 = vsel %vm5100_vm7, %v1434_v9, %v1433_v63  ;;  %v1520_v42 = vsel %vm1350_vm13, %v1519_v31, %v1518_v44  ;;  %v5253_v49 = vld [vmem:[#allocation48_spill] sm:$0xff]  ;;  %v5254_v63 = vld [vmem:[#allocation58_spill] sm:$0xff]  ;;  %v5255_v44 = vld [vmem:[#allocation63_spill] sm:$0xff] }
 0x1e8   : > { %v1578_v54 = vsel %vm5240_vm0, %v1577_v59, %v1576_v39  ;;  %1004 = vmax.xlane.f32.xlu2 %v584_v26  ;;  %1002 = vmax.xlane.f32.xlu1 %v583_v60  ;;  %v1437_v45 = vsel %vm1370_vm8, %v1436_v34, %v1435_v48  ;;  %v1438_v57 = vperm.slane %v5250_v0, %v3805_v24  ;;  %v5252_v59 = vld [vmem:[#allocation79_spill] sm:$0xff]  ;;  %vm5257_vm3 = vcmp.gt.f32.partialorder %v3118_v28, 0.0 }
 0x1e9   : > { %1000 = vmax.xlane.f32.xlu0 %v582_v11  ;;  %v1580_v6 = vsel %vm1346_vm1, %v1579_v46, %v1578_v54  ;;  %v1463_v39 = vperm.slane %v5251_v7, %v3720_v25  ;;  %v1523_v26 = vperm.slane %v5252_v59, %v3737_v56  ;;  %v1462_v43 = vsel %vm5098_vm5, %v1461_v23, %v1460_v55 }
 0x1ea   : > { %v1465_v9 = vperm.slane %v5253_v49, %v3758_v47  ;;  %v1492_v31 = vperm.slane %v5254_v63, %v3737_v56  ;;  %v1491_v46 = vsel %vm5099_vm11, %v1490_v12, %v1489_v50  ;;  %v1494_v11 = vperm.slane %v5255_v44, %v3720_v25 }
 0x1eb   : > { %v921_v34 = vpop.xlane.xlu2 %920  ;;  %v919_v60 = vpop.xlane.xlu1 %918  ;;  %v1522_v30 = vsel %vm5099_vm11, %v1521_v13, %v1520_v42  ;;  %v1525_v32 = vperm.slane %v5256_v61, %v3720_v25  ;;  %v587_v12 = vsel %vm5257_vm3, %v3948_v1, 0.0  ;;  %vm5258_vm10 = vcmp.gt.f32.partialorder %v3120_v29, 0.0  ;;  %v5259_v42 = vld [vmem:[#allocation47_spill] sm:$0xff] }
 0x1ec   : > { %v917_v54 = vpop.xlane.xlu0 %916  ;;  %v1583_v23 = vperm.slane %v919_v60, %v3723_v41  ;;  %v1585_v48 = vperm.slane %v921_v34, %v3737_v56  ;;  %v586_v50 = vsel %vm5258_vm10, %v3948_v1, 0.0  ;;  %v1464_v13 = vsel %vm1362_vm6, %v1463_v39, %v1462_v43  ;;  %v5261_v34 = vld [vmem:[#allocation62_spill] sm:$0xff]  ;;  %v5262_v43 = vld [vmem:[#allocation77_spill] sm:$0xff] }
 0x1ed   : > { %v1581_v55 = vperm.slane %v917_v54, %v3708_v37  ;;  %v1467_v0 = vperm.slane %v5259_v42, %v3755_v14  ;;  %v1524_v7 = vsel %vm5098_vm5, %v1523_v26, %v1522_v30  ;;  %vm5260_vm15 = vcmp.gt.f32.partialorder %v3101_v21, 0.0 }
 0x1ee   : > { %v585_v59 = vsel %vm5260_vm15, %v3948_v1, 0.0  ;;  %v1466_v49 = vsel %vm5100_vm7, %v1465_v9, %v1464_v13  ;;  %v1493_v63 = vsel %vm5098_vm5, %v1492_v31, %v1491_v46  ;;  %v1496_v60 = vperm.slane %v5261_v34, %v3758_v47  ;;  %v5271_v34 = vld [vmem:[#allocation81_spill] sm:$0xff] }
 0x1ef   : > { %v1582_v44 = vsel %vm1350_vm13, %v1581_v55, %v1580_v6  ;;  %vm5101_vm9 = vcmask 1041409   ;;  %v1495_v39 = vsel %vm1362_vm6, %v1494_v11, %v1493_v63  ;;  %v1527_v61 = vperm.slane %v5262_v43, %v3758_v47  ;;  %v5265_v11 = vld [vmem:[#allocation31_spill] sm:$0xff] }
 0x1f0   : > { %v1584_v26 = vsel %vm5099_vm11, %v1583_v23, %v1582_v44  ;;  %1010 = vmax.xlane.f32.xlu2 %v587_v12  ;;  %1008 = vmax.xlane.f32.xlu1 %v586_v50  ;;  %v5263_v9 = vperm.slane %v5211_v5, %v3835_v62  ;;  %vm5264_vm0 = vcmask 1048512   ;;  %vm1599_vm3 = vcmask 1042434   ;;  %v5266_v23 = vld [vmem:[#allocation46_spill] sm:$0xff] }
 0x1f1   : > { %v1526_v46 = vsel %vm1362_vm6, %v1525_v32, %v1524_v7  ;;  %1006 = vmax.xlane.f32.xlu0 %v585_v59  ;;  %v1586_v6 = vsel %vm5098_vm5, %v1585_v48, %v1584_v26  ;;  %v1440_v30 = vperm.slane %v5265_v11, %v3835_v62  ;;  %v1439_v54 = vsel %vm1374_vm4, %v1438_v57, %v1437_v45  ;;  %v5267_v12 = vld [vmem:[#allocation82_spill] sm:$0xff]  ;;  %v5269_v32 = vld [vmem:[#allocation61_spill] sm:$0xff]  ;;  %vm5275_vm11 = vmmov %vm5264_vm0 }
 0x1f2   : > { %v1410_v31 = vsel %vm5264_vm0, %v5263_v9, %v1408_v15  ;;  %v1469_v55 = vperm.slane %v5266_v23, %v3805_v24  ;;  %v1529_v50 = vperm.slane %v5267_v12, %v3755_v14  ;;  %v1468_v5 = vsel %vm1370_vm8, %v1467_v0, %v1466_v49  ;;  %v5268_v15 = vld [vmem:[#allocation51_spill] sm:$0xff]  ;;  %v5270_v45 = vld [vmem:[#allocation66_spill] sm:$0xff] }
 0x1f3   : > { %v1471_v13 = vperm.slane %v5268_v15, %v3835_v62  ;;  %v1498_v42 = vperm.slane %v5269_v32, %v3755_v14  ;;  %v1497_v48 = vsel %vm5100_vm7, %v1496_v60, %v1495_v39  ;;  %v927_v7 = vpop.xlane.xlu2 %926  ;;  %v925_v59 = vpop.xlane.xlu1 %924  ;;  %v1500_v57 = vperm.slane %v5270_v45, %v3805_v24  ;;  %v5276_v15 = vld [vmem:[#allocation65_spill] sm:$0xff] }
 0x1f4   : > { %v1528_v63 = vsel %vm5100_vm7, %v1527_v61, %v1526_v46  ;;  %v1531_v44 = vperm.slane %v5271_v34, %v3805_v24  ;;  %v923_v43 = vpop.xlane.xlu0 %922  ;;  %v1589_v0 = vperm.slane %v925_v59, %v3758_v47  ;;  %v1591_v26 = vperm.slane %v927_v7, %v3755_v14 }
 0x1f5   : > { %v1587_v49 = vperm.slane %v923_v43, %v3720_v25  ;;  %vm5272_vm10 = vcmp.gt.f32.partialorder %v5186_v4, 0.0  ;;  %vm5273_vm15 = vcmp.gt.f32.partialorder %v5190_v36, 0.0  ;;  %v1441_v61 = vsel %vm5264_vm0, %v1440_v30, %v1439_v54  ;;  %v5277_v54 = vld [vmem:[#allocation80_spill] sm:$0xff] }
 0x1f6   : > { %v590_v60 = vsel %vm5272_vm10, %v3948_v1, 0.0  ;;  %v589_v39 = vsel %vm5273_vm15, %v3948_v1, 0.0  ;;  %v1470_v9 = vsel %vm1374_vm4, %v1469_v55, %v1468_v5  ;;  %v1530_v46 = vsel %vm1370_vm8, %v1529_v50, %v1528_v63  ;;  %vm5279_vm15 = vmmov %vm5264_vm0 }
 0x1f7   : > { %vm5274_vm5 = vcmp.gt.f32.partialorder %v3116_v27, 0.0  ;;  %v1472_v23 = vsel %vm5275_vm11, %v1471_v13, %v1470_v9  ;;  %v1499_v12 = vsel %vm1370_vm8, %v1498_v42, %v1497_v48  ;;  %v1502_v32 = vperm.slane %v5276_v15, %v3835_v62  ;;  %vm5278_vm11 = vmmov %vm5264_vm0 }
 0x1f8   : > { %v588_v11 = vsel %vm5274_vm5, %v3948_v1, 0.0  ;;  %v1588_v7 = vsel %vm1362_vm6, %v1587_v49, %v1586_v6  ;;  %vm5102_vm10 = vcmask 1043459   ;;  %v1501_v30 = vsel %vm1374_vm4, %v1500_v57, %v1499_v12  ;;  %1016 = vmax.xlane.f32.xlu2 %v590_v60  ;;  %1014 = vmax.xlane.f32.xlu1 %v589_v39 }
 0x1f9   : > { %v1533_v55 = vperm.slane %v5277_v54, %v3835_v62  ;;  %v1590_v50 = vsel %vm5100_vm7, %v1589_v0, %v1588_v7  ;;  %v1598_v5 = vsel %vm5101_vm9, %v1410_v31, %v3889_v20  ;;  %v1532_v13 = vsel %vm1374_vm4, %v1531_v44, %v1530_v46  ;;  %1012 = vmax.xlane.f32.xlu0 %v588_v11 }
 0x1fa   : > { %v1592_v42 = vsel %vm1370_vm8, %v1591_v26, %v1590_v50  ;;  %v1600_v6 = vsel %vm1599_vm3, %v1441_v61, %v1598_v5  ;;  %vm1603_vm5 = vcmask 1044484   ;;  %v1503_v59 = vsel %vm5278_vm11, %v1502_v32, %v1501_v30 }
 0x1fb   : > { %v1602_v48 = vsel %vm5102_vm10, %v1472_v23, %v1600_v6  ;;  %v931_v45 = vpop.xlane.xlu1 %930  ;;  %v933_v57 = vpop.xlane.xlu2 %932  ;;  %v1534_v63 = vsel %vm5279_vm15, %v1533_v55, %v1532_v13  ;;  %vm5105_vm0 = vcmask 1045509   ;;  %vm5104_vm7 = vcmask 1046534  }
 0x1fc   : > { %v929_v34 = vpop.xlane.xlu0 %928  ;;  %v1595_v20 = vperm.slane %v931_v45, %v3835_v62  ;;  %vm5280_vm9 = vcmp.gt.f32.partialorder %v3148_v40, 0.0  ;;  %vm5281_vm10 = vcmp.gt.f32.partialorder %v5206_v10, 0.0  ;;  %v527_v0 = vrot.slane %v5205_v19, 3 }
 0x1fd   : > { %v1593_v31 = vperm.slane %v929_v34, %v3805_v24  ;;  %v593_v44 = vsel %vm5280_vm9, %v3948_v1, 0.0  ;;  %v592_v43 = vsel %vm5281_vm10, %v3948_v1, 0.0  ;;  %v1604_v49 = vsel %vm1603_vm5, %v1503_v59, %v1602_v48 }
 0x1fe   : > { %vm5103_vm11 = vcmask 1047559   ;;  %vm5282_vm15 = vcmp.gt.f32.partialorder %v3131_v33, 0.0  ;;  %v1606_v60 = vsel %vm5105_vm0, %v1534_v63, %v1604_v49  ;;  %vm5283_vm9 = vcmask 1048512  }
 0x1ff   : > { %v591_v26 = vsel %vm5282_vm15, %v3948_v1, 0.0  ;;  %v1594_v39 = vsel %vm1374_vm4, %v1593_v31, %v1592_v42  ;;  %v1608_v61 = vsel %vm5104_vm7, %v3938_v17, %v1606_v60  ;;  %v4167_v11 = vperm.slane %v527_v0, 0 }
 0x200   : > { %v1596_v9 = vsel %vm5283_vm9, %v1595_v20, %v1594_v39  ;;  %1022 = vmax.xlane.f32.xlu2 %v593_v44  ;;  %1020 = vmax.xlane.f32.xlu1 %v592_v43  ;;  %v1741_v23 = vperm.slane %v933_v57, %v3619_v51  ;;  %vm5284_vm10 = vcmp.gt.f32.partialorder %v5221_v18, 0.0  ;;  %vm5285_vm15 = vcmp.gt.f32.partialorder %v5225_v53, 0.0  ;;  %v5290_v20 = vld [vmem:[#allocation15_spill] sm:$0xff] }
 0x201   : > { %v4165_v46 = vsel %vm5103_vm11, %v1596_v9, %v1608_v61  ;;  %1018 = vmax.xlane.f32.xlu0 %v591_v26  ;;  %v596_v54 = vsel %vm5284_vm10, %v4167_v11, 0.0  ;;  %v595_v55 = vsel %vm5285_vm15, %v3948_v1, 0.0  ;;  %vm5286_vm9 = vcmp.gt.f32.partialorder %v5202_v58, 0.0  ;;  %v5294_v61 = vld [vmem:[#allocation83_spill] sm:$0xff] }
 0x202   : > { %v594_v50 = vsel %vm5286_vm9, %v3948_v1, 0.0  ;;  %vm5287_vm11 = vcmask 130112   ;;  %vm5288_vm10 = vcmp.gt.f32.partialorder %v3103_v22, 0.0  ;;  %vm5291_vm15 = vcmp.gt.f32.partialorder %v5290_v20, 0.0 }
 0x203   : > { %v937_v12 = vpop.xlane.xlu1 %936  ;;  %v939_v15 = vpop.xlane.xlu2 %938  ;;  %v599_v1 = vsel %vm5288_vm10, %v4167_v11, 0.0  ;;  %v597_v31 = vsel %vm5291_vm15, %v4167_v11, 0.0  ;;  %vm5292_vm9 = vcmask 392512   ;;  %vm5293_vm7 = vcmask 458112  }
 0x204   : > { %v1744_v32 = vperm.slane %v937_v12, %v3640_v16  ;;  %v935_v7 = vpop.xlane.xlu0 %934  ;;  %v1746_v17 = vperm.slane %v939_v15, %v3647_v8  ;;  %vm5295_vm10 = vcmp.gt.f32.partialorder %v3120_v29, 0.0  ;;  %vm5299_vm15 = vcmask 654912  }
 0x205   : > { %v1742_v30 = vperm.slane %v935_v7, %v3631_v3  ;;  %v602_v12 = vsel %vm5295_vm10, %v4167_v11, 0.0  ;;  %vm5301_vm10 = vcmp.gt.f32.partialorder %v3116_v27, 0.0  ;;  %vm5335_vm0 = vcmask 1041409  }
 0x207   : > { %v1743_v5 = vsel %vm5287_vm11, %v1742_v30, %v1741_v23  ;;  %vm5289_vm11 = vcmp.gt.f32.partialorder %v5245_v2, 0.0 }
 0x208   : > { %v1745_v13 = vsel %vm1326_vm12, %v1744_v32, %v1743_v5  ;;  %1028 = vmax.xlane.f32.xlu2 %v596_v54  ;;  %1026 = vmax.xlane.f32.xlu1 %v595_v55  ;;  %v598_v34 = vsel %vm5289_vm11, %v4167_v11, 0.0  ;;  %vm5296_vm11 = vcmp.gt.f32.partialorder %v3101_v21, 0.0  ;;  %v5297_v32 = vld [vmem:[#allocation12_spill] sm:$0xff] }
 0x209   : > { %v1747_v42 = vsel %vm1330_vm2, %v1746_v17, %v1745_v13  ;;  %1024 = vmax.xlane.f32.xlu0 %v594_v50  ;;  %v601_v15 = vsel %vm5296_vm11, %v4167_v11, 0.0  ;;  %vm5302_vm11 = vcmp.gt.f32.partialorder %v3118_v28, 0.0 }
 0x20b   : > { %v943_v6 = vpop.xlane.xlu1 %942  ;;  %v945_v48 = vpop.xlane.xlu2 %944 }
 0x20c   : > { %v1750_v59 = vperm.slane %v943_v6, %v3668_v35  ;;  %v941_v45 = vpop.xlane.xlu0 %940  ;;  %v1752_v63 = vperm.slane %v945_v48, %v3677_v38 }
 0x20d   : > { %v1748_v57 = vperm.slane %v941_v45, %v3664_v52  ;;  %v603_v45 = vsel %vm5302_vm11, %v4167_v11, 0.0  ;;  %vm5307_vm11 = vcmp.gt.f32.partialorder %v5186_v4, 0.0 }
 0x20f   : > { %v1749_v44 = vsel %vm1334_vm14, %v1748_v57, %v1747_v42 }
 0x210   : > { %v1751_v43 = vsel %vm5292_vm9, %v1750_v59, %v1749_v44  ;;  %1034 = vmax.xlane.f32.xlu2 %v599_v1  ;;  %1032 = vmax.xlane.f32.xlu1 %v598_v34  ;;  %vm5300_vm9 = vcmp.gt.f32.partialorder %v5190_v36, 0.0  ;;  %v604_v59 = vsel %vm5301_vm10, %v4167_v11, 0.0  ;;  %vm5306_vm10 = vcmp.gt.f32.partialorder %v3131_v33, 0.0 }
 0x211   : > { %v1753_v0 = vsel %vm5293_vm7, %v1752_v63, %v1751_v43  ;;  %1030 = vmax.xlane.f32.xlu0 %v597_v31  ;;  %vm5298_vm7 = vcmp.gt.f32.partialorder %v5297_v32, 0.0  ;;  %v605_v48 = vsel %vm5300_vm9, %v4167_v11, 0.0  ;;  %vm5305_vm9 = vcmp.gt.f32.partialorder %v5206_v10, 0.0 }
 0x212   : > { %v600_v7 = vsel %vm5298_vm7, %v4167_v11, 0.0  ;;  %vm5303_vm7 = vcmask 720512  }
 0x213   : > { %v949_v49 = vpop.xlane.xlu1 %948  ;;  %v951_v26 = vpop.xlane.xlu2 %950 }
 0x214   : > { %v1756_v60 = vperm.slane %v949_v49, %v3708_v37  ;;  %v947_v39 = vpop.xlane.xlu0 %946  ;;  %v1758_v23 = vperm.slane %v951_v26, %v3723_v41  ;;  %v608_v26 = vsel %vm5305_vm9, %v4167_v11, 0.0  ;;  %vm5310_vm9 = vcmp.gt.f32.partialorder %v5202_v58, 0.0 }
 0x215   : > { %v1754_v9 = vperm.slane %v947_v39, %v5294_v61  ;;  %v606_v39 = vsel %vm5307_vm11, %v4167_v11, 0.0  ;;  %vm5312_vm11 = vcmask 130112  }
 0x217   : > { %v1755_v30 = vsel %vm1346_vm1, %v1754_v9, %v1753_v0 }
 0x218   : > { %v1757_v17 = vsel %vm1350_vm13, %v1756_v60, %v1755_v30  ;;  %1040 = vmax.xlane.f32.xlu2 %v602_v12  ;;  %1038 = vmax.xlane.f32.xlu1 %v601_v15  ;;  %v607_v60 = vsel %vm5306_vm10, %v4167_v11, 0.0  ;;  %vm5311_vm10 = vcmp.gt.f32.partialorder %v3148_v40, 0.0 }
 0x219   : > { %v1759_v54 = vsel %vm5299_vm15, %v1758_v23, %v1757_v17  ;;  %1036 = vmax.xlane.f32.xlu0 %v600_v7  ;;  %vm5304_vm15 = vcmask 851712  }
 0x21b   : > { %v955_v55 = vpop.xlane.xlu1 %954  ;;  %v957_v50 = vpop.xlane.xlu2 %956 }
 0x21c   : > { %v1762_v5 = vperm.slane %v955_v55, %v3720_v25  ;;  %v953_v13 = vpop.xlane.xlu0 %952  ;;  %v1764_v6 = vperm.slane %v957_v50, %v3758_v47  ;;  %v528_v55 = vrot.slane %v5205_v19, 4 }
 0x21d   : > { %v1760_v42 = vperm.slane %v953_v13, %v3737_v56  ;;  %v610_v13 = vsel %vm5310_vm9, %v4167_v11, 0.0  ;;  %vm5315_vm9 = vcmp.gt.f32.partialorder %v5221_v18, 0.0 }
 0x21f   : > { %v1761_v57 = vsel %vm5303_vm7, %v1760_v42, %v1759_v54  ;;  %vm5308_vm7 = vcmask 1048512   ;;  %v609_v42 = vsel %vm5311_vm10, %v4167_v11, 0.0  ;;  %vm5316_vm10 = vcmask 392512  }
 0x220   : > { %v1763_v63 = vsel %vm1362_vm6, %v1762_v5, %v1761_v57  ;;  %1046 = vmax.xlane.f32.xlu2 %v605_v48  ;;  %1044 = vmax.xlane.f32.xlu1 %v604_v59  ;;  %v4262_v59 = vperm.slane %v528_v55, 0 }
 0x221   : > { %v1765_v1 = vsel %vm5304_vm15, %v1764_v6, %v1763_v63  ;;  %1042 = vmax.xlane.f32.xlu0 %v603_v45  ;;  %vm5309_vm15 = vcmp.gt.f32.partialorder %v5225_v53, 0.0 }
 0x222   : > { %v611_v5 = vsel %vm5309_vm15, %v4167_v11, 0.0  ;;  %vm5314_vm15 = vcmp.gt.f32.partialorder %v5290_v20, 0.0 }
 0x223   : > { %v961_v34 = vpop.xlane.xlu1 %960  ;;  %v963_v31 = vpop.xlane.xlu2 %962 }
 0x224   : > { %v1768_v44 = vperm.slane %v961_v34, %v3805_v24  ;;  %v959_v43 = vpop.xlane.xlu0 %958  ;;  %v1770_v49 = vperm.slane %v963_v31, %v3835_v62 }
 0x225   : > { %v1766_v0 = vperm.slane %v959_v43, %v3755_v14  ;;  %v529_v43 = vrot.slane %v5205_v19, 5 }
 0x227   : > { %v1767_v9 = vsel %vm1370_vm8, %v1766_v0, %v1765_v1  ;;  %v612_v0 = vsel %vm5315_vm9, %v4262_v59, 0.0 }
 0x228   : > { %v1769_v23 = vsel %vm1374_vm4, %v1768_v44, %v1767_v9  ;;  %1052 = vmax.xlane.f32.xlu2 %v608_v26  ;;  %1050 = vmax.xlane.f32.xlu1 %v607_v60  ;;  %v613_v44 = vsel %vm5314_vm15, %v4262_v59, 0.0 }
 0x229   : > { %v4245_v12 = vsel %vm5308_vm7, %v1770_v49, %v1769_v23  ;;  %1048 = vmax.xlane.f32.xlu0 %v606_v39  ;;  %vm5313_vm7 = vcmp.gt.f32.partialorder %v5245_v2, 0.0  ;;  %v4280_v39 = vperm.slane %v529_v43, 0 }
 0x22a   : > { %v614_v34 = vsel %vm5313_vm7, %v4262_v59, 0.0  ;;  %vm5318_vm7 = vmmov %vm5314_vm15 }
 0x22b   : > { %v969_v15 = vpop.xlane.xlu2 %968  ;;  %v967_v7 = vpop.xlane.xlu1 %966  ;;  %v629_v55 = vsel %vm5318_vm7, %v4280_v39, 0.0  ;;  %vm5319_vm15 = vmmov %vm5315_vm9  ;;  %vm5320_vm9 = vcmask 458112  }
 0x22c   : > { %v1775_v30 = vperm.slane %v969_v15, %v3640_v16  ;;  %v1773_v17 = vperm.slane %v967_v7, %v3631_v3  ;;  %v965_v54 = vpop.xlane.xlu0 %964 }
 0x22d   : > { %v1772_v50 = vperm.slane %v965_v54, %v3619_v51 }
 0x22f   : > { %v1774_v6 = vsel %vm5312_vm11, %v1773_v17, %v1772_v50  ;;  %vm5317_vm11 = vcmp.gt.f32.partialorder %v3103_v22, 0.0  ;;  %v530_v50 = vrot.slane %v5205_v19, 6 }
 0x230   : > { %1058 = vmax.xlane.f32.xlu2 %v611_v5  ;;  %1056 = vmax.xlane.f32.xlu1 %v610_v13  ;;  %v1776_v48 = vsel %vm1326_vm12, %v1775_v30, %v1774_v6  ;;  %v615_v30 = vsel %vm5317_vm11, %v4262_v59, 0.0  ;;  %v628_v5 = vsel %vm5319_vm15, %v4280_v39, 0.0  ;;  %vm5322_vm11 = vmmov %vm5319_vm15  ;;  %vm5324_vm15 = vcmask 654912  }
 0x231   : > { %1054 = vmax.xlane.f32.xlu0 %v609_v42 }
 0x233   : > { %v975_v45 = vpop.xlane.xlu2 %974  ;;  %v973_v57 = vpop.xlane.xlu1 %972 }
 0x234   : > { %v1779_v63 = vperm.slane %v973_v57, %v3664_v52  ;;  %v971_v1 = vpop.xlane.xlu0 %970  ;;  %v1781_v11 = vperm.slane %v975_v45, %v3668_v35 }
 0x235   : > { %v1777_v31 = vperm.slane %v971_v1, %v3647_v8 }
 0x237   : > { %v1778_v49 = vsel %vm1330_vm2, %v1777_v31, %v1776_v48  ;;  %v4298_v48 = vperm.slane %v530_v50, 0 }
 0x238   : > { %v1780_v26 = vsel %vm1334_vm14, %v1779_v63, %v1778_v49  ;;  %1064 = vmax.xlane.f32.xlu2 %v614_v34  ;;  %1062 = vmax.xlane.f32.xlu1 %v613_v44 }
 0x239   : > { %1060 = vmax.xlane.f32.xlu0 %v612_v0  ;;  %v1782_v60 = vsel %vm5316_vm10, %v1781_v11, %v1780_v26  ;;  %vm5321_vm10 = vmmov %vm5318_vm7  ;;  %v644_v44 = vsel %vm5322_vm11, %v4298_v48, 0.0  ;;  %vm5323_vm7 = vcmp.gt.f32.partialorder %v5245_v2, 0.0  ;;  %vm5327_vm11 = vcmp.gt.f32.partialorder %v3103_v22, 0.0 }
 0x23a   : > { %v645_v31 = vsel %vm5321_vm10, %v4298_v48, 0.0  ;;  %v630_v43 = vsel %vm5323_vm7, %v4280_v39, 0.0  ;;  %vm5326_vm10 = vmmov %vm5323_vm7  ;;  %vm5328_vm7 = vcmp.gt.f32.partialorder %v5297_v32, 0.0 }
 0x23b   : > { %v981_v9 = vpop.xlane.xlu2 %980  ;;  %v979_v23 = vpop.xlane.xlu1 %978  ;;  %v616_v50 = vsel %vm5328_vm7, %v4262_v59, 0.0  ;;  %vm5333_vm7 = vcmp.gt.f32.partialorder %v5221_v18, 0.0 }
 0x23c   : > { %v1785_v15 = vperm.slane %v979_v23, %v5294_v61  ;;  %v977_v7 = vpop.xlane.xlu0 %976  ;;  %v1787_v17 = vperm.slane %v981_v9, %v3708_v37 }
 0x23d   : > { %v1783_v54 = vperm.slane %v977_v7, %v3677_v38  ;;  %v646_v7 = vsel %vm5326_vm10, %v4298_v48, 0.0  ;;  %vm5331_vm10 = vcmp.gt.f32.partialorder %v5290_v20, 0.0 }
 0x23f   : > { %v1784_v13 = vsel %vm5320_vm9, %v1783_v54, %v1782_v60  ;;  %vm5325_vm9 = vcmask 720512   ;;  %v631_v54 = vsel %vm5327_vm11, %v4280_v39, 0.0  ;;  %vm5332_vm11 = vcmask 130112  }
 0x240   : > { %v1786_v42 = vsel %vm1346_vm1, %v1785_v15, %v1784_v13  ;;  %1066 = vmax.xlane.f32.xlu2 %v615_v30  ;;  %1094 = vmax.xlane.f32.xlu1 %v629_v55  ;;  %v531_v55 = vrot.slane %v5205_v19, 7 }
 0x241   : > { %1092 = vmax.xlane.f32.xlu0 %v628_v5  ;;  %v1788_v6 = vsel %vm1350_vm13, %v1787_v17, %v1786_v42 }
 0x243   : > { %v987_v45 = vpop.xlane.xlu2 %986  ;;  %v985_v57 = vpop.xlane.xlu1 %984 }
 0x244   : > { %v1791_v63 = vperm.slane %v985_v57, %v3737_v56  ;;  %v983_v1 = vpop.xlane.xlu0 %982  ;;  %v1793_v34 = vperm.slane %v987_v45, %v3720_v25 }
 0x245   : > { %v1789_v11 = vperm.slane %v983_v1, %v3723_v41 }
 0x247   : > { %v1790_v0 = vsel %vm5324_vm15, %v1789_v11, %v1788_v6  ;;  %vm5329_vm15 = vcmask 851712   ;;  %v4331_v6 = vperm.slane %v531_v55, 0 }
 0x248   : > { %v1792_v49 = vsel %vm5325_vm9, %v1791_v63, %v1790_v0  ;;  %1126 = vmax.xlane.f32.xlu2 %v645_v31  ;;  %1124 = vmax.xlane.f32.xlu1 %v644_v44  ;;  %vm5330_vm9 = vcmp.gt.f32.partialorder %v3101_v21, 0.0 }
 0x249   : > { %1096 = vmax.xlane.f32.xlu0 %v630_v43  ;;  %v1794_v26 = vsel %vm1362_vm6, %v1793_v34, %v1792_v49  ;;  %v617_v11 = vsel %vm5330_vm9, %v4262_v59, 0.0  ;;  %v661_v31 = vsel %vm5331_vm10, %v4331_v6, 0.0  ;;  %v660_v43 = vsel %vm5333_vm7, %v4331_v6, 0.0 }
 0x24a   : > { %vm5336_vm9 = vcmp.gt.f32.partialorder %v5245_v2, 0.0  ;;  %vm5338_vm10 = vcmp.gt.f32.partialorder %v5297_v32, 0.0  ;;  %vm5340_vm7 = vcmp.gt.f32.partialorder %v3101_v21, 0.0 }
 0x24b   : > { %v993_v60 = vpop.xlane.xlu2 %992  ;;  %v991_v9 = vpop.xlane.xlu1 %990  ;;  %v662_v18 = vsel %vm5336_vm9, %v4331_v6, 0.0  ;;  %vm5342_vm9 = vcmask 392512  }
 0x24c   : > { %v1797_v23 = vperm.slane %v991_v9, %v3755_v14  ;;  %v989_v15 = vpop.xlane.xlu0 %988  ;;  %v1799_v30 = vperm.slane %v993_v60, %v3805_v24 }
 0x24d   : > { %v1795_v17 = vperm.slane %v989_v15, %v3758_v47 }
 0x24f   : > { %v1796_v5 = vsel %vm5329_vm15, %v1795_v17, %v1794_v26  ;;  %vm5334_vm15 = vcmask 1048512  }
 0x250   : > { %v1798_v13 = vsel %vm1370_vm8, %v1797_v23, %v1796_v5  ;;  %1128 = vmax.xlane.f32.xlu2 %v646_v7  ;;  %1098 = vmax.xlane.f32.xlu1 %v631_v54  ;;  %v632_v7 = vsel %vm5338_vm10, %v4280_v39, 0.0 }
 0x251   : > { %1068 = vmax.xlane.f32.xlu0 %v616_v50  ;;  %v1800_v42 = vsel %vm1374_vm4, %v1799_v30, %v1798_v13 }
 0x253   : > { %v999_v45 = vpop.xlane.xlu2 %998  ;;  %v997_v57 = vpop.xlane.xlu1 %996 }
 0x254   : > { %v1804_v63 = vperm.slane %v999_v45, %v3631_v3  ;;  %v1803_v19 = vperm.slane %v997_v57, %v3619_v51  ;;  %v995_v1 = vpop.xlane.xlu0 %994  ;;  %v633_v57 = vsel %vm5340_vm7, %v4280_v39, 0.0  ;;  %vm5346_vm7 = vcmp.gt.f32.partialorder %v3103_v22, 0.0 }
 0x255   : > { %v1801_v34 = vperm.slane %v995_v1, %v3835_v62 }
 0x256   : > { %v1805_v44 = vsel %vm5332_vm11, %v1804_v63, %v1803_v19  ;;  %vm5339_vm11 = vmmov %vm5338_vm10 }
 0x257   : > { %v1802_v0 = vsel %vm5334_vm15, %v1801_v34, %v1800_v42  ;;  %v648_v45 = vsel %vm5339_vm11, %v4298_v48, 0.0  ;;  %vm5341_vm15 = vcmp.gt.f32.partialorder %v3120_v29, 0.0  ;;  %vm5345_vm11 = vcmp.gt.f32.partialorder %v3118_v28, 0.0 }
 0x258   : > { %v4349_v49 = vsel %vm5335_vm0, %v1802_v0, %v4245_v12  ;;  %1070 = vmax.xlane.f32.xlu2 %v617_v11  ;;  %1158 = vmax.xlane.f32.xlu1 %v661_v31  ;;  %vm5337_vm0 = vcmp.gt.f32.partialorder %v3103_v22, 0.0  ;;  %v618_v63 = vsel %vm5341_vm15, %v4262_v59, 0.0  ;;  %vm5344_vm10 = vmmov %vm5341_vm15  ;;  %vm5347_vm15 = vcmask 654912  }
 0x259   : > { %1156 = vmax.xlane.f32.xlu0 %v660_v43  ;;  %v647_v12 = vsel %vm5337_vm0, %v4298_v48, 0.0  ;;  %vm5343_vm0 = vcmask 458112  }
 0x25b   : > { %v1005_v26 = vpop.xlane.xlu2 %1004  ;;  %v1003_v60 = vpop.xlane.xlu1 %1002 }
 0x25c   : > { %v1808_v20 = vperm.slane %v1003_v60, %v3647_v8  ;;  %v1001_v9 = vpop.xlane.xlu0 %1000  ;;  %v1810_v23 = vperm.slane %v1005_v26, %v3664_v52  ;;  %v634_v60 = vsel %vm5344_vm10, %v4280_v39, 0.0  ;;  %vm5350_vm10 = vcmp.gt.f32.partialorder %v5297_v32, 0.0 }
 0x25d   : > { %v1806_v15 = vperm.slane %v1001_v9, %v3640_v16  ;;  %v663_v9 = vsel %vm5346_vm7, %v4331_v6, 0.0  ;;  %vm5352_vm7 = vcmask 851712  }
 0x25f   : > { %v1807_v30 = vsel %vm1326_vm12, %v1806_v15, %v1805_v44 }
 0x260   : > { %v1809_v17 = vsel %vm1330_vm2, %v1808_v20, %v1807_v30  ;;  %1160 = vmax.xlane.f32.xlu2 %v662_v18  ;;  %1130 = vmax.xlane.f32.xlu1 %v647_v12  ;;  %v619_v20 = vsel %vm5345_vm11, %v4262_v59, 0.0  ;;  %vm5351_vm11 = vcmp.gt.f32.partialorder %v3101_v21, 0.0 }
 0x261   : > { %1100 = vmax.xlane.f32.xlu0 %v632_v7  ;;  %v1811_v54 = vsel %vm1334_vm14, %v1810_v23, %v1809_v17 }
 0x263   : > { %v1011_v55 = vpop.xlane.xlu2 %1010  ;;  %v1009_v2 = vpop.xlane.xlu1 %1008 }
 0x264   : > { %v1814_v50 = vperm.slane %v1009_v2, %v3677_v38  ;;  %v1007_v5 = vpop.xlane.xlu0 %1006  ;;  %v1816_v13 = vperm.slane %v1011_v55, %v5294_v61  ;;  %v664_v2 = vsel %vm5350_vm10, %v4331_v6, 0.0  ;;  %vm5356_vm10 = vcmask 1048512  }
 0x265   : > { %v1812_v42 = vperm.slane %v1007_v5, %v3668_v35 }
 0x267   : > { %v1813_v19 = vsel %vm5342_vm9, %v1812_v42, %v1811_v54  ;;  %vm5348_vm9 = vcmask 720512  }
 0x268   : > { %v1815_v1 = vsel %vm5343_vm0, %v1814_v50, %v1813_v19  ;;  %1132 = vmax.xlane.f32.xlu2 %v648_v45  ;;  %1102 = vmax.xlane.f32.xlu1 %v633_v57  ;;  %vm5349_vm0 = vcmp.gt.f32.partialorder %v3116_v27, 0.0  ;;  %v649_v50 = vsel %vm5351_vm11, %v4298_v48, 0.0 }
 0x269   : > { %1072 = vmax.xlane.f32.xlu0 %v618_v63  ;;  %v1817_v34 = vsel %vm1346_vm1, %v1816_v13, %v1815_v1  ;;  %v620_v22 = vsel %vm5349_vm0, %v4262_v59, 0.0  ;;  %vm5355_vm0 = vcmp.gt.f32.partialorder %v3118_v28, 0.0 }
 0x26b   : > { %v1017_v11 = vpop.xlane.xlu2 %1016  ;;  %v1015_v31 = vpop.xlane.xlu1 %1014 }
 0x26c   : > { %v1820_v44 = vperm.slane %v1015_v31, %v3723_v41  ;;  %v1013_v43 = vpop.xlane.xlu0 %1012  ;;  %v1822_v0 = vperm.slane %v1017_v11, %v3737_v56  ;;  %v635_v11 = vsel %vm5355_vm0, %v4280_v39, 0.0 }
 0x26d   : > { %v1818_v26 = vperm.slane %v1013_v43, %v3708_v37 }
 0x26f   : > { %v1819_v23 = vsel %vm1350_vm13, %v1818_v26, %v1817_v34 }
 0x270   : > { %v1821_v15 = vsel %vm5347_vm15, %v1820_v44, %v1819_v23  ;;  %1104 = vmax.xlane.f32.xlu2 %v634_v60  ;;  %1074 = vmax.xlane.f32.xlu1 %v619_v20  ;;  %vm5353_vm15 = vmmov %vm5351_vm11 }
 0x271   : > { %1162 = vmax.xlane.f32.xlu0 %v663_v9  ;;  %v1823_v18 = vsel %vm5348_vm9, %v1822_v0, %v1821_v15  ;;  %v665_v1 = vsel %vm5353_vm15, %v4331_v6, 0.0  ;;  %vm5354_vm9 = vcmp.gt.f32.partialorder %v3120_v29, 0.0  ;;  %vm5357_vm11 = vmmov %vm5355_vm0  ;;  %vm5360_vm15 = vcmask 130112  }
 0x272   : > { %v650_v34 = vsel %vm5354_vm9, %v4298_v48, 0.0  ;;  %v651_v15 = vsel %vm5357_vm11, %v4298_v48, 0.0  ;;  %vm5362_vm0 = vcmp.gt.f32.partialorder %v5186_v4, 0.0  ;;  %vm5364_vm11 = vcmask 392512  }
 0x273   : > { %v1023_v12 = vpop.xlane.xlu2 %1022  ;;  %v1021_v7 = vpop.xlane.xlu1 %1020 }
 0x274   : > { %v1826_v30 = vperm.slane %v1021_v7, %v3758_v47  ;;  %v1019_v17 = vpop.xlane.xlu0 %1018  ;;  %v1828_v54 = vperm.slane %v1023_v12, %v3755_v14 }
 0x275   : > { %v1824_v55 = vperm.slane %v1019_v17, %v3720_v25 }
 0x277   : > { %v1825_v5 = vsel %vm1362_vm6, %v1824_v55, %v1823_v18 }
 0x278   : > { %v1827_v13 = vsel %vm5352_vm7, %v1826_v30, %v1825_v5  ;;  %1076 = vmax.xlane.f32.xlu2 %v620_v22  ;;  %1164 = vmax.xlane.f32.xlu1 %v664_v2  ;;  %vm5359_vm7 = vcmp.gt.f32.partialorder %v5190_v36, 0.0 }
 0x279   : > { %1134 = vmax.xlane.f32.xlu0 %v649_v50  ;;  %v1829_v42 = vsel %vm1370_vm8, %v1828_v54, %v1827_v13  ;;  %v621_v18 = vsel %vm5359_vm7, %v4262_v59, 0.0  ;;  %vm5361_vm9 = vmmov %vm5359_vm7  ;;  %v622_v13 = vsel %vm5362_vm0, %v4262_v59, 0.0  ;;  %vm5366_vm7 = vcmp.gt.f32.partialorder %v3131_v33, 0.0 }
 0x27a   : > { %v637_v5 = vsel %vm5361_vm9, %v4280_v39, 0.0  ;;  %vm5368_vm9 = vcmp.gt.f32.partialorder %v3116_v27, 0.0  ;;  %vm5369_vm0 = vcmask 654912  }
 0x27b   : > { %v1029_v45 = vpop.xlane.xlu2 %1028  ;;  %v1027_v57 = vpop.xlane.xlu1 %1026 }
 0x27c   : > { %v1832_v63 = vperm.slane %v1027_v57, %v3835_v62  ;;  %v1025_v19 = vpop.xlane.xlu0 %1024  ;;  %v1834_v21 = vperm.slane %v1029_v45, %v3619_v51 }
 0x27d   : > { %v1830_v32 = vperm.slane %v1025_v19, %v3805_v24 }
 0x27f   : > { %v1831_v31 = vsel %vm1374_vm4, %v1830_v32, %v1829_v42 }
 0x280   : > { %v1833_v44 = vsel %vm5356_vm10, %v1832_v63, %v1831_v31  ;;  %1166 = vmax.xlane.f32.xlu2 %v665_v1  ;;  %1136 = vmax.xlane.f32.xlu1 %v650_v34  ;;  %vm5363_vm10 = vcmp.gt.f32.partialorder %v3120_v29, 0.0  ;;  %v623_v29 = vsel %vm5366_vm7, %v4262_v59, 0.0  ;;  %vm5373_vm7 = vcmask 720512  }
 0x281   : > { %v4426_v43 = vsel %vm1599_vm3, %v1833_v44, %v4349_v49  ;;  %1106 = vmax.xlane.f32.xlu0 %v635_v11  ;;  %vm5358_vm3 = vcmp.gt.f32.partialorder %v3116_v27, 0.0  ;;  %v666_v42 = vsel %vm5363_vm10, %v4331_v6, 0.0  ;;  %vm5370_vm10 = vmmov %vm5368_vm9 }
 0x282   : > { %v636_v49 = vsel %vm5358_vm3, %v4280_v39, 0.0  ;;  %vm5365_vm3 = vcmask 458112  }
 0x283   : > { %v1035_v0 = vpop.xlane.xlu2 %1034  ;;  %v1033_v26 = vpop.xlane.xlu1 %1032 }
 0x284   : > { %v1837_v60 = vperm.slane %v1033_v26, %v3640_v16  ;;  %v1031_v20 = vpop.xlane.xlu0 %1030  ;;  %v1839_v9 = vperm.slane %v1035_v0, %v3647_v8 }
 0x285   : > { %v1835_v23 = vperm.slane %v1031_v20, %v3631_v3 }
 0x287   : > { %v1836_v12 = vsel %vm5360_vm15, %v1835_v23, %v1834_v21  ;;  %vm5367_vm15 = vcmp.gt.f32.partialorder %v3118_v28, 0.0  ;;  %v652_v21 = vsel %vm5368_vm9, %v4298_v48, 0.0 }
 0x288   : > { %v1838_v7 = vsel %vm1326_vm12, %v1837_v60, %v1836_v12  ;;  %1138 = vmax.xlane.f32.xlu2 %v651_v15  ;;  %1108 = vmax.xlane.f32.xlu1 %v636_v49  ;;  %v667_v44 = vsel %vm5367_vm15, %v4331_v6, 0.0  ;;  %vm5374_vm15 = vcmask 851712  }
 0x289   : > { %1078 = vmax.xlane.f32.xlu0 %v621_v18  ;;  %v1840_v30 = vsel %vm1330_vm2, %v1839_v9, %v1838_v7  ;;  %v668_v18 = vsel %vm5370_vm10, %v4331_v6, 0.0  ;;  %vm5377_vm10 = vcmp.gt.f32.partialorder %v5206_v10, 0.0 }
 0x28b   : > { %v1041_v17 = vpop.xlane.xlu2 %1040  ;;  %v1039_v54 = vpop.xlane.xlu1 %1038 }
 0x28c   : > { %v1843_v55 = vperm.slane %v1039_v54, %v3668_v35  ;;  %v1037_v22 = vpop.xlane.xlu0 %1036  ;;  %v1845_v2 = vperm.slane %v1041_v17, %v3677_v38 }
 0x28d   : > { %v1841_v50 = vperm.slane %v1037_v22, %v3664_v52 }
 0x28f   : > { %v1842_v45 = vsel %vm1334_vm14, %v1841_v50, %v1840_v30 }
 0x290   : > { %v1844_v57 = vsel %vm5364_vm11, %v1843_v55, %v1842_v45  ;;  %1110 = vmax.xlane.f32.xlu2 %v637_v5  ;;  %1080 = vmax.xlane.f32.xlu1 %v622_v13  ;;  %vm5371_vm11 = vcmp.gt.f32.partialorder %v5190_v36, 0.0  ;;  %v624_v45 = vsel %vm5377_vm10, %v4262_v59, 0.0 }
 0x291   : > { %1168 = vmax.xlane.f32.xlu0 %v666_v42  ;;  %v1846_v63 = vsel %vm5365_vm3, %v1845_v2, %v1844_v57  ;;  %v653_v12 = vsel %vm5371_vm11, %v4298_v48, 0.0  ;;  %vm5372_vm3 = vcmp.gt.f32.partialorder %v5186_v4, 0.0  ;;  %vm5378_vm11 = vcmask 1048512  }
 0x292   : > { %v638_v7 = vsel %vm5372_vm3, %v4280_v39, 0.0  ;;  %vm5375_vm9 = vmmov %vm5372_vm3  ;;  %vm5379_vm3 = vcmask 1043459  }
 0x293   : > { %v1047_v19 = vpop.xlane.xlu2 %1046  ;;  %v1045_v32 = vpop.xlane.xlu1 %1044  ;;  %v654_v13 = vsel %vm5375_vm9, %v4298_v48, 0.0  ;;  %vm5382_vm9 = vcmp.gt.f32.partialorder %v5190_v36, 0.0 }
 0x294   : > { %v1849_v1 = vperm.slane %v1045_v32, %v3708_v37  ;;  %v1043_v34 = vpop.xlane.xlu0 %1042  ;;  %v1851_v11 = vperm.slane %v1047_v19, %v3723_v41 }
 0x295   : > { %v1847_v31 = vperm.slane %v1043_v34, %v5294_v61 }
 0x297   : > { %v1848_v0 = vsel %vm1346_vm1, %v1847_v31, %v1846_v63 }
 0x298   : > { %v1850_v26 = vsel %vm1350_vm13, %v1849_v1, %v1848_v0  ;;  %1082 = vmax.xlane.f32.xlu2 %v623_v29  ;;  %1170 = vmax.xlane.f32.xlu1 %v667_v44 }
 0x299   : > { %1140 = vmax.xlane.f32.xlu0 %v652_v21  ;;  %v1852_v60 = vsel %vm5369_vm0, %v1851_v11, %v1850_v26  ;;  %vm5376_vm0 = vcmp.gt.f32.partialorder %v3131_v33, 0.0 }
 0x29a   : > { %v639_v42 = vsel %vm5376_vm0, %v4280_v39, 0.0  ;;  %vm5383_vm0 = vcmask 130112  }
 0x29b   : > { %v1053_v20 = vpop.xlane.xlu2 %1052  ;;  %v1051_v9 = vpop.xlane.xlu1 %1050 }
 0x29c   : > { %v1855_v23 = vperm.slane %v1051_v9, %v3720_v25  ;;  %v1049_v15 = vpop.xlane.xlu0 %1048  ;;  %v1857_v28 = vperm.slane %v1053_v20, %v3758_v47 }
 0x29d   : > { %v1853_v49 = vperm.slane %v1049_v15, %v3737_v56 }
 0x29f   : > { %v1854_v30 = vsel %vm5373_vm7, %v1853_v49, %v1852_v60  ;;  %vm5380_vm7 = vmmov %vm5377_vm10  ;;  %vm5384_vm10 = vcmp.gt.f32.partialorder %v5202_v58, 0.0 }
 0x2a0   : > { %v1856_v17 = vsel %vm1362_vm6, %v1855_v23, %v1854_v30  ;;  %1172 = vmax.xlane.f32.xlu2 %v668_v18  ;;  %1142 = vmax.xlane.f32.xlu1 %v653_v12  ;;  %v640_v21 = vsel %vm5380_vm7, %v4280_v39, 0.0  ;;  %v626_v36 = vsel %vm5384_vm10, %v4262_v59, 0.0  ;;  %vm5387_vm7 = vmmov %vm5383_vm0  ;;  %vm5390_vm10 = vcmp.gt.f32.partialorder %v3148_v40, 0.0 }
 0x2a1   : > { %1112 = vmax.xlane.f32.xlu0 %v638_v7  ;;  %v1858_v54 = vsel %vm5374_vm15, %v1857_v28, %v1856_v17  ;;  %vm5381_vm15 = vcmp.gt.f32.partialorder %v3148_v40, 0.0 }
 0x2a2   : > { %v625_v0 = vsel %vm5381_vm15, %v4262_v59, 0.0 }
 0x2a3   : > { %v1059_v55 = vpop.xlane.xlu2 %1058  ;;  %v1057_v27 = vpop.xlane.xlu1 %1056 }
 0x2a4   : > { %v1861_v22 = vperm.slane %v1057_v27, %v3805_v24  ;;  %v1055_v2 = vpop.xlane.xlu0 %1054  ;;  %v1863_v50 = vperm.slane %v1059_v55, %v3835_v62 }
 0x2a5   : > { %v1859_v5 = vperm.slane %v1055_v2, %v3755_v14 }
 0x2a7   : > { %v1860_v57 = vsel %vm1370_vm8, %v1859_v5, %v1858_v54 }
 0x2a8   : > { %v1862_v63 = vsel %vm1374_vm4, %v1861_v22, %v1860_v57  ;;  %1144 = vmax.xlane.f32.xlu2 %v654_v13  ;;  %1114 = vmax.xlane.f32.xlu1 %v639_v42  ;;  %v641_v13 = vsel %vm5390_vm10, %v4280_v39, 0.0 }
 0x2a9   : > { %v1864_v19 = vsel %vm5378_vm11, %v1863_v50, %v1862_v63  ;;  %1084 = vmax.xlane.f32.xlu0 %v624_v45  ;;  %vm5385_vm11 = vcmp.gt.f32.partialorder %v5186_v4, 0.0 }
 0x2aa   : > { %v4506_v32 = vsel %vm5379_vm3, %v1864_v19, %v4426_v43  ;;  %v669_v43 = vsel %vm5382_vm9, %v4331_v6, 0.0  ;;  %v670_v18 = vsel %vm5385_vm11, %v4331_v6, 0.0  ;;  %vm5386_vm3 = vcmp.gt.f32.partialorder %v3131_v33, 0.0  ;;  %vm5391_vm11 = vmmov %vm5390_vm10 }
 0x2ab   : > { %v1065_v1 = vpop.xlane.xlu2 %1064  ;;  %v1063_v34 = vpop.xlane.xlu1 %1062  ;;  %v655_v7 = vsel %vm5386_vm3, %v4298_v48, 0.0  ;;  %vm5388_vm15 = vmmov %vm5386_vm3  ;;  %vm5389_vm9 = vcmp.gt.f32.partialorder %v5206_v10, 0.0  ;;  %vm5392_vm3 = vcmp.gt.f32.partialorder %v5202_v58, 0.0  ;;  %vm5397_vm10 = vcmp.gt.f32.partialorder %v5206_v10, 0.0 }
 0x2ac   : > { %v1868_v11 = vperm.slane %v1065_v1, %v3640_v16  ;;  %v1866_v31 = vperm.slane %v1063_v34, %v3631_v3  ;;  %v1061_v29 = vpop.xlane.xlu0 %1060  ;;  %v671_v2 = vsel %vm5388_vm15, %v4331_v6, 0.0  ;;  %v656_v50 = vsel %vm5389_vm9, %v4298_v48, 0.0  ;;  %vm5394_vm15 = vmmov %vm5392_vm3 }
 0x2ad   : > { %v1865_v44 = vperm.slane %v1061_v29, %v3619_v51  ;;  %v657_v34 = vsel %vm5391_vm11, %v4298_v48, 0.0  ;;  %vm5398_vm11 = vcmask 130112  }
 0x2af   : > { %v1867_v26 = vsel %vm5383_vm0, %v1866_v31, %v1865_v44 }
 0x2b0   : > { %1116 = vmax.xlane.f32.xlu2 %v640_v21  ;;  %1086 = vmax.xlane.f32.xlu1 %v625_v0  ;;  %v1869_v60 = vsel %vm1326_vm12, %v1868_v11, %v1867_v26  ;;  %v642_v11 = vsel %vm5392_vm3, %v4280_v39, 0.0 }
 0x2b1   : > { %1174 = vmax.xlane.f32.xlu0 %v669_v43 }
 0x2b3   : > { %v1067_v20 = vpop.xlane.xlu2 %1066  ;;  %v1095_v9 = vpop.xlane.xlu1 %1094 }
 0x2b4   : > { %v1870_v23 = vperm.slane %v1067_v20, %v3647_v8  ;;  %v1897_v15 = vperm.slane %v1095_v9, %v3631_v3  ;;  %v1093_v28 = vpop.xlane.xlu0 %1092 }
 0x2b5   : > { %v1896_v49 = vperm.slane %v1093_v28, %v3619_v51  ;;  %v672_v28 = vsel %vm5397_vm10, %v4331_v6, 0.0 }
 0x2b6   : > { %v1871_v12 = vsel %vm1330_vm2, %v1870_v23, %v1869_v60  ;;  %v658_v23 = vsel %vm5394_vm15, %v4298_v48, 0.0 }
 0x2b7   : > { %v1898_v30 = vsel %vm5387_vm7, %v1897_v15, %v1896_v49  ;;  %vm5393_vm7 = vcmp.gt.f32.partialorder %v5225_v53, 0.0 }
 0x2b8   : > { %1088 = vmax.xlane.f32.xlu2 %v626_v36  ;;  %1176 = vmax.xlane.f32.xlu1 %v670_v18  ;;  %v627_v44 = vsel %vm5393_vm7, %v4262_v59, 0.0  ;;  %vm5395_vm9 = vmmov %vm5393_vm7 }
 0x2b9   : > { %1146 = vmax.xlane.f32.xlu0 %v655_v7  ;;  %v643_v59 = vsel %vm5395_vm9, %v4280_v39, 0.0  ;;  %vm5399_vm3 = vmmov %vm5393_vm7 }
 0x2ba   : > { %vm5400_vm7 = vmmov %vm5394_vm15  ;;  %vm5401_vm15 = vcmp.gt.f32.partialorder %v3148_v40, 0.0 }
 0x2bb   : > { %v1127_v17 = vpop.xlane.xlu2 %1126  ;;  %v1125_v54 = vpop.xlane.xlu1 %1124  ;;  %v674_v10 = vsel %vm5400_vm7, %v4331_v6, 0.0  ;;  %vm5403_vm9 = vmmov %vm5399_vm3 }
 0x2bc   : > { %v1928_v55 = vperm.slane %v1127_v17, %v3631_v3  ;;  %v1927_v27 = vperm.slane %v1125_v54, %v3619_v51  ;;  %v1097_v22 = vpop.xlane.xlu0 %1096  ;;  %v675_v40 = vsel %vm5403_vm9, %v4331_v6, 0.0  ;;  %vm5413_vm9 = vcmask 851712  }
 0x2bd   : > { %v1899_v4 = vperm.slane %v1097_v22, %v3640_v16 }
 0x2be   : > { %v1929_v5 = vsel %vm5383_vm0, %v1928_v55, %v1927_v27  ;;  %vm5396_vm0 = vcmask 392512  }
 0x2bf   : > { %v1900_v42 = vsel %vm1326_vm12, %v1899_v4, %v1898_v30  ;;  %v659_v30 = vsel %vm5399_vm3, %v4298_v48, 0.0 }
 0x2c0   : > { %1178 = vmax.xlane.f32.xlu2 %v671_v2  ;;  %1148 = vmax.xlane.f32.xlu1 %v656_v50 }
 0x2c1   : > { %1118 = vmax.xlane.f32.xlu0 %v641_v13 }
 0x2c3   : > { %v1129_v45 = vpop.xlane.xlu2 %1128  ;;  %v1099_v57 = vpop.xlane.xlu1 %1098 }
 0x2c4   : > { %v1930_v33 = vperm.slane %v1129_v45, %v3640_v16  ;;  %v1901_v63 = vperm.slane %v1099_v57, %v3647_v8  ;;  %v1069_v19 = vpop.xlane.xlu0 %1068 }
 0x2c5   : > { %v1872_v1 = vperm.slane %v1069_v19, %v3664_v52 }
 0x2c6   : > { %v1931_v31 = vsel %vm1326_vm12, %v1930_v33, %v1929_v5  ;;  %v1902_v29 = vsel %vm1330_vm2, %v1901_v63, %v1900_v42 }
 0x2c7   : > { %v1873_v21 = vsel %vm1334_vm14, %v1872_v1, %v1871_v12 }
 0x2c8   : > { %1150 = vmax.xlane.f32.xlu2 %v657_v34  ;;  %1120 = vmax.xlane.f32.xlu1 %v642_v11 }
 0x2c9   : > { %1090 = vmax.xlane.f32.xlu0 %v627_v44 }
 0x2cb   : > { %v1071_v0 = vpop.xlane.xlu2 %1070  ;;  %v1159_v43 = vpop.xlane.xlu1 %1158 }
 0x2cc   : > { %v1874_v26 = vperm.slane %v1071_v0, %v3668_v35  ;;  %v1959_v60 = vperm.slane %v1159_v43, %v3631_v3  ;;  %v1157_v20 = vpop.xlane.xlu0 %1156 }
 0x2cd   : > { %v1958_v9 = vperm.slane %v1157_v20, %v3619_v51 }
 0x2ce   : > { %v1875_v15 = vsel %vm5396_vm0, %v1874_v26, %v1873_v21 }
 0x2cf   : > { %v1960_v49 = vsel %vm5398_vm11, %v1959_v60, %v1958_v9 }
 0x2d0   : > { %1152 = vmax.xlane.f32.xlu2 %v658_v23  ;;  %1122 = vmax.xlane.f32.xlu1 %v643_v59 }
 0x2d1   : > { %1180 = vmax.xlane.f32.xlu0 %v672_v28 }
 0x2d3   : > { %v1161_v3 = vpop.xlane.xlu2 %1160  ;;  %v1131_v36 = vpop.xlane.xlu1 %1130 }
 0x2d4   : > { %v1961_v18 = vperm.slane %v1161_v3, %v3640_v16  ;;  %v1932_v12 = vperm.slane %v1131_v36, %v3647_v8  ;;  %v1101_v7 = vpop.xlane.xlu0 %1100  ;;  %v673_v16 = vsel %vm5401_vm15, %v4331_v6, 0.0  ;;  %vm5411_vm15 = vcmask 720512  }
 0x2d5   : > { %v1903_v39 = vperm.slane %v1101_v7, %v3664_v52 }
 0x2d6   : > { %v1962_v17 = vsel %vm1326_vm12, %v1961_v18, %v1960_v49  ;;  %v1933_v54 = vsel %vm1330_vm2, %v1932_v12, %v1931_v31  ;;  %vm5402_vm12 = vmmov %vm5396_vm0  ;;  %vm5404_vm0 = vcmask 458112  }
 0x2d7   : > { %v1904_v55 = vsel %vm1334_vm14, %v1903_v39, %v1902_v29  ;;  %vm5405_vm10 = vmmov %vm5404_vm0 }
 0x2d8   : > { %1154 = vmax.xlane.f32.xlu1 %v659_v30  ;;  %1184 = vmax.xlane.f32.xlu2 %v674_v10  ;;  %vm5406_vm11 = vmmov %vm5402_vm12 }
 0x2d9   : > { %1182 = vmax.xlane.f32.xlu0 %v673_v16  ;;  %vm5408_vm3 = vmmov %vm5404_vm0 }
 0x2db   : > { %v1133_v27 = vpop.xlane.xlu2 %1132  ;;  %v1103_v22 = vpop.xlane.xlu1 %1102 }
 0x2dc   : > { %v1934_v48 = vperm.slane %v1133_v27, %v3664_v52  ;;  %v1905_v58 = vperm.slane %v1103_v22, %v3668_v35  ;;  %v1073_v4 = vpop.xlane.xlu0 %1072 }
 0x2dd   : > { %v1876_v2 = vperm.slane %v1073_v4, %v3677_v38 }
 0x2de   : > { %v1935_v50 = vsel %vm1334_vm14, %v1934_v48, %v1933_v54  ;;  %v1906_v5 = vsel %vm5402_vm12, %v1905_v58, %v1904_v55  ;;  %vm5412_vm12 = vmmov %vm5404_vm0 }
 0x2df   : > { %v1877_v13 = vsel %vm5404_vm0, %v1876_v2, %v1875_v15  ;;  %vm5414_vm0 = vcmask 1048512  }
 0x2e1   : > { %1186 = vmax.xlane.f32.xlu0 %v675_v40 }
 0x2e3   : > { %v1105_v42 = vpop.xlane.xlu2 %1104  ;;  %v1075_v45 = vpop.xlane.xlu1 %1074 }
 0x2e4   : > { %v1907_v57 = vperm.slane %v1105_v42, %v3677_v38  ;;  %v1878_v33 = vperm.slane %v1075_v45, %v5294_v61  ;;  %v1163_v63 = vpop.xlane.xlu0 %1162 }
 0x2e5   : > { %v1963_v19 = vperm.slane %v1163_v63, %v3647_v8 }
 0x2e6   : > { %v1908_v1 = vsel %vm5405_vm10, %v1907_v57, %v1906_v5  ;;  %v1879_v34 = vsel %vm1346_vm1, %v1878_v33, %v1877_v13  ;;  %vm5415_vm10 = vmmov %vm5411_vm15 }
 0x2e7   : > { %v1964_v11 = vsel %vm1330_vm2, %v1963_v19, %v1962_v17  ;;  %vm5407_vm2 = vmmov %vm5406_vm11 }
 0x2eb   : > { %v1077_v53 = vpop.xlane.xlu2 %1076  ;;  %v1165_v6 = vpop.xlane.xlu1 %1164 }
 0x2ec   : > { %v1880_v31 = vperm.slane %v1077_v53, %v3708_v37  ;;  %v1965_v29 = vperm.slane %v1165_v6, %v3664_v52  ;;  %v1135_v44 = vpop.xlane.xlu0 %1134 }
 0x2ed   : > { %v1936_v21 = vperm.slane %v1135_v44, %v3668_v35 }
 0x2ee   : > { %v1881_v0 = vsel %vm1350_vm13, %v1880_v31, %v1879_v34  ;;  %v1966_v43 = vsel %vm1334_vm14, %v1965_v29, %v1964_v11  ;;  %vm5409_vm14 = vcmask 654912  }
 0x2ef   : > { %v1937_v8 = vsel %vm5406_vm11, %v1936_v21, %v1935_v50  ;;  %vm5410_vm7 = vmmov %vm5409_vm14 }
 0x2f0   : > { %vm5416_vm11 = vmmov %vm5413_vm9 }
 0x2f3   : > { %v1167_v26 = vpop.xlane.xlu2 %1166  ;;  %v1137_v60 = vpop.xlane.xlu1 %1136 }
 0x2f4   : > { %v1967_v20 = vperm.slane %v1167_v26, %v3668_v35  ;;  %v1938_v9 = vperm.slane %v1137_v60, %v3677_v38  ;;  %v1107_v23 = vpop.xlane.xlu0 %1106 }
 0x2f5   : > { %v1909_v59 = vperm.slane %v1107_v23, %v5294_v61 }
 0x2f6   : > { %v1968_v52 = vsel %vm5407_vm2, %v1967_v20, %v1966_v43  ;;  %v1939_v15 = vsel %vm5408_vm3, %v1938_v9, %v1937_v8  ;;  %vm5418_vm2 = vcmask 1045509   ;;  %vm5419_vm3 = vmmov %vm5410_vm7 }
 0x2f7   : > { %v1910_v28 = vsel %vm1346_vm1, %v1909_v59, %v1908_v1 }
 0x2fb   : > { %v1139_v49 = vpop.xlane.xlu2 %1138  ;;  %v1109_v3 = vpop.xlane.xlu1 %1108 }
 0x2fc   : > { %v1940_v36 = vperm.slane %v1139_v49, %v5294_v61  ;;  %v1911_v18 = vperm.slane %v1109_v3, %v3708_v37  ;;  %v1079_v12 = vpop.xlane.xlu0 %1078 }
 0x2fd   : > { %v1882_v35 = vperm.slane %v1079_v12, %v3723_v41 }
 0x2fe   : > { %v1941_v7 = vsel %vm1346_vm1, %v1940_v36, %v1939_v15  ;;  %v1912_v39 = vsel %vm1350_vm13, %v1911_v18, %v1910_v28 }
 0x2ff   : > { %v1883_v30 = vsel %vm5409_vm14, %v1882_v35, %v1881_v0  ;;  %vm5420_vm14 = vmmov %vm5415_vm10 }
 0x303   : > { %v1111_v10 = vpop.xlane.xlu2 %1110  ;;  %v1081_v17 = vpop.xlane.xlu1 %1080 }
 0x304   : > { %v1913_v54 = vperm.slane %v1111_v10, %v3723_v41  ;;  %v1884_v16 = vperm.slane %v1081_v17, %v3737_v56  ;;  %v1169_v55 = vpop.xlane.xlu0 %1168 }
 0x305   : > { %v1969_v27 = vperm.slane %v1169_v55, %v3677_v38 }
 0x306   : > { %v1914_v22 = vsel %vm5410_vm7, %v1913_v54, %v1912_v39  ;;  %v1885_v48 = vsel %vm5411_vm15, %v1884_v16, %v1883_v30  ;;  %vm5421_vm7 = vmmov %vm5413_vm9 }
 0x307   : > { %v4633_v58 = vsel %vm5412_vm12, %v1969_v27, %v1968_v52  ;;  %vm5422_vm15 = vmmov %vm5414_vm0 }
 0x308   : > { %vm5423_vm12 = vmmov %vm5419_vm3 }
 0x30b   : > { %v1083_v4 = vpop.xlane.xlu2 %1082  ;;  %v4635_v2 = vpop.xlane.xlu1 %1170 }
 0x30c   : > { %v1141_v50 = vpop.xlane.xlu0 %1140  ;;  %v1886_v44 = vperm.slane %v1083_v4, %v3720_v25 }
 0x30d   : > { %v1942_v5 = vperm.slane %v1141_v50, %v3708_v37 }
 0x30e   : > { %v1887_v8 = vsel %vm1362_vm6, %v1886_v44, %v1885_v48 }
 0x30f   : > { %v1943_v40 = vsel %vm1350_vm13, %v1942_v5, %v1941_v7 }
 0x313   : > { %v4639_v13 = vpop.xlane.xlu2 %1172  ;;  %v1143_v42 = vpop.xlane.xlu1 %1142 }
 0x314   : > { %v1113_v45 = vpop.xlane.xlu0 %1112  ;;  %v1944_v10 = vperm.slane %v1143_v42, %v3723_v41 }
 0x315   : > { %v1915_v23 = vperm.slane %v1113_v45, %v3737_v56  ;;  %v1971_v45 = vperm.slane %v4635_v2, %v5294_v61 }
 0x316   : > { %v1945_v5 = vsel %vm5419_vm3, %v1944_v10, %v1943_v40 }
 0x317   : > { %v1916_v12 = vsel %vm5415_vm10, %v1915_v23, %v1914_v22 }
 0x31b   : > { %v1145_v38 = vpop.xlane.xlu2 %1144  ;;  %v1115_v57 = vpop.xlane.xlu1 %1114 }
 0x31c   : > { %v1085_v33 = vpop.xlane.xlu0 %1084  ;;  %v1917_v15 = vperm.slane %v1115_v57, %v3720_v25  ;;  %v1946_v55 = vperm.slane %v1145_v38, %v3737_v56 }
 0x31d   : > { %v1888_v21 = vperm.slane %v1085_v33, %v3758_v47  ;;  %v1973_v33 = vperm.slane %v4639_v13, %v3708_v37 }
 0x31e   : > { %v1918_v7 = vsel %vm1362_vm6, %v1917_v15, %v1916_v12  ;;  %v1947_v38 = vsel %vm5420_vm14, %v1946_v55, %v1945_v5 }
 0x31f   : > { %v1889_v20 = vsel %vm5413_vm9, %v1888_v21, %v1887_v8  ;;  %vm5424_vm9 = vcmask 1046534  }
 0x323   : > { %v1117_v63 = vpop.xlane.xlu2 %1116  ;;  %v1087_v19 = vpop.xlane.xlu1 %1086 }
 0x324   : > { %v4641_v1 = vpop.xlane.xlu0 %1174  ;;  %v1890_v0 = vperm.slane %v1087_v19, %v3755_v14  ;;  %v1919_v49 = vperm.slane %v1117_v63, %v3758_v47 }
 0x325   : > { %v1975_v19 = vperm.slane %v4641_v1, %v3723_v41 }
 0x326   : > { %v1891_v59 = vsel %vm1370_vm8, %v1890_v0, %v1889_v20  ;;  %v1920_v39 = vsel %vm5416_vm11, %v1919_v49, %v1918_v7 }
 0x32b   : > { %v1089_v34 = vpop.xlane.xlu2 %1088  ;;  %v4643_v11 = vpop.xlane.xlu1 %1176 }
 0x32c   : > { %v1147_v53 = vpop.xlane.xlu0 %1146  ;;  %v1892_v43 = vperm.slane %v1089_v34, %v3805_v24 }
 0x32d   : > { %v1948_v22 = vperm.slane %v1147_v53, %v3720_v25  ;;  %v1977_v53 = vperm.slane %v4643_v11, %v3737_v56 }
 0x32e   : > { %v1893_v28 = vsel %vm1374_vm4, %v1892_v43, %v1891_v59 }
 0x32f   : > { %v1949_v63 = vsel %vm1362_vm6, %v1948_v22, %v1947_v38 }
 0x333   : > { %v4645_v6 = vpop.xlane.xlu2 %1178  ;;  %v1149_v31 = vpop.xlane.xlu1 %1148 }
 0x334   : > { %v1119_v29 = vpop.xlane.xlu0 %1118  ;;  %v1950_v4 = vperm.slane %v1149_v31, %v3758_v47  ;;  %v1979_v37 = vperm.slane %v4645_v6, %v3720_v25 }
 0x335   : > { %v1921_v36 = vperm.slane %v1119_v29, %v3755_v14  ;;  %v1972_v29 = vsel %vm1346_vm1, %v1971_v45, %v4633_v58  ;;  %vm5425_vm1 = vmmov %vm5415_vm10  ;;  %vm5428_vm10 = vcmask 1047559  }
 0x336   : > { %v1951_v34 = vsel %vm5421_vm7, %v1950_v4, %v1949_v63  ;;  %v1974_v13 = vsel %vm1350_vm13, %v1973_v33, %v1972_v29 }
 0x337   : > { %v1922_v17 = vsel %vm1370_vm8, %v1921_v36, %v1920_v39  ;;  %v1976_v11 = vsel %vm5423_vm12, %v1975_v19, %v1974_v13 }
 0x338   : > { %v1978_v58 = vsel %vm5425_vm1, %v1977_v53, %v1976_v11 }
 0x339   : > { %v1980_v43 = vsel %vm1362_vm6, %v1979_v37, %v1978_v58 }
 0x33b   : > { %v1151_v26 = vpop.xlane.xlu2 %1150  ;;  %v1121_v60 = vpop.xlane.xlu1 %1120 }
 0x33c   : > { %v1091_v9 = vpop.xlane.xlu0 %1090  ;;  %v1923_v35 = vperm.slane %v1121_v60, %v3805_v24  ;;  %v1952_v42 = vperm.slane %v1151_v26, %v3755_v14  ;;  %v2850_v26 = vld [vmem:[%s3548_s19] sm:$0xff] }
 0x33d   : > { %v1894_v52 = vperm.slane %v1091_v9, %v3835_v62  ;;  %v1188_v60 = vsub.f32 1.0, %v2850_v26 }
 0x33e   : > { %v1953_v61 = vsel %vm1370_vm8, %v1952_v42, %v1951_v34 }
 0x33f   : > { %v1895_v3 = vsel %vm5414_vm0, %v1894_v52, %v1893_v28  ;;  %v1612_v59 = vmul.f32 %v4165_v46, %v1188_v60 }
 0x340   : > { %v1992_v18 = vsel %vm1603_vm5, %v1895_v3, %v4506_v32  ;;  %v1924_v32 = vsel %vm1374_vm4, %v1923_v35, %v1922_v17  ;;  %vm5417_vm5 = vmmov %vm5414_vm0  ;;  %v2013_v3 = vstv %s2697_s20  ;;  %v2996_v17 = vmov 0.0  }
 0x341   : > { %vm5426_vm0 = vmmov %vm5421_vm7 }
 0x342   : > { %vm5427_vm13 = vmmov %vm5417_vm5 }
 0x343   : > { %v1123_v30 = vpop.xlane.xlu1 %1122  ;;  %v1153_v27 = vpop.xlane.xlu2 %1152 }
 0x344   : > { %v1925_v54 = vperm.slane %v1123_v30, %v3835_v62  ;;  %v1181_v16 = vpop.xlane.xlu0 %1180  ;;  %v1954_v57 = vperm.slane %v1153_v27, %v3805_v24 }
 0x345   : > { %v1981_v1 = vperm.slane %v1181_v16, %v3758_v47 }
 0x346   : > { %v1926_v48 = vsel %vm5417_vm5, %v1925_v54, %v1924_v32  ;;  %v1955_v41 = vsel %vm1374_vm4, %v1954_v57, %v1953_v61 }
 0x347   : > { %v1993_v50 = vsel %vm5418_vm2, %v1926_v48, %v1992_v18  ;;  %v1982_v25 = vsel %vm5426_vm0, %v1981_v1, %v1980_v43 }
 0x34b   : > { %v1155_v40 = vpop.xlane.xlu1 %1154  ;;  %v1185_v0 = vpop.xlane.xlu2 %1184 }
 0x34c   : > { %v1956_v2 = vperm.slane %v1155_v40, %v3835_v62  ;;  %v1183_v31 = vpop.xlane.xlu0 %1182  ;;  %v1985_v6 = vperm.slane %v1185_v0, %v3805_v24  ;;  %v5429_v24 = vlaneseq }
 0x34d   : > { %v1983_v21 = vperm.slane %v1183_v31, %v3755_v14 }
 0x34e   : > { %v1957_v56 = vsel %vm5422_vm15, %v1956_v2, %v1955_v41  ;;  %v2011_v49 = vshrl.u32 %v5429_v24, 7 }
 0x34f   : > { %v1994_v44 = vsel %vm5424_vm9, %v1957_v56, %v1993_v50  ;;  %v1984_v47 = vsel %vm1370_vm8, %v1983_v21, %v1982_v25  ;;  %vm2016_vm8 = vcmp.lt.s32.totalorder %v3619_v51, 8 }
 0x350   : > { %v1986_v9 = vsel %vm1374_vm4, %v1985_v6, %v1984_v47  ;;  %v2014_v18 = vadd.s32 %v2013_v3, %v2011_v49 }
 0x352   : > { %vm2015_vm6 = vcmp.lt.s32.totalorder %v2014_v18, 16 }
 0x353   : > { %vm2017_vm4 = vmand %vm2015_vm6, %vm2016_vm8 }
 0x354   : > { %v1187_v8 = vpop.xlane.xlu0 %1186  ;;  %v2698_v54 = vsel %vm2017_vm4, 1.0, %v2996_v17 }
 0x355   : > { %v1987_v20 = vperm.slane %v1187_v8, %v3835_v62 }
 0x357   : > { %v1988_v14 = vsel %vm5427_vm13, %v1987_v20, %v1986_v9 }
 0x358   : > { %v1995_v23 = vsel %vm5428_vm10, %v1988_v14, %v1994_v44 }
 0x359   : > { %v1997_v52 = vmul.f32 %v2850_v26, %v1995_v23 }
 0x35b   : > { %v1998_v15 = vadd.f32 %v1997_v52, %v1612_v59 }
 0x35d   : > { %2846 = vlog2.f32 %v1998_v15  ;;  %v2002_v28 = vsub.f32 1.0, %v1998_v15 }
 0x35f   : > { %2848 = vlog2.f32 %v2002_v28 }
 0x363   : > { %v2847_v36 = vpop.eup %2846 }
 0x364   : > { %v2000_v62 = vmul.f32 0.6931472, %v2847_v36 }
 0x365   : > { %v2849_v12 = vpop.eup %2848 }
 0x366   : > { %v2001_v35 = vmax.f32 %v2000_v62, -100.0  ;;  %v2004_v7 = vmul.f32 0.6931472, %v2849_v12 }
 0x368   : > { %v2005_v46 = vmax.f32 %v2004_v7, -100.0  ;;  %v2006_v39 = vmul.f32 %v2850_v26, %v2001_v35 }
 0x36a   : > { %v2007_v30 = vmul.f32 %v2005_v46, %v1188_v60 }
 0x36c   : > { %v2008_v10 = vadd.f32 %v2007_v30, %v2006_v39 }
 0x36e   : > { %v2009_v16 = vsub.f32 0.0, %v2008_v10 }
 0x370   : > { %v2020_v55 = vmul.f32 %v2698_v54, %v2009_v16 }
 0x372   : > { %2021 = vadd.xlane.f32.xlu1 %v2020_v55 }
 0x3e5   : > { %v2022_v32 = vpop.xlane.xlu1 %2021 }
 0x3e6   : > { %v2023_v27 = vrot.slane %v2022_v32, 4 }
 0x3e8   : > { %v2024_v22 = vadd.f32 %v2023_v27, %v2022_v32 }
 0x3ea   : > { %v2025_v48 = vrot.slane %v2024_v22, 2 }
 0x3ec   : > { %v2026_v4 = vadd.f32 %v2025_v48, %v2024_v22 }
 0x3ee   : > { %v2027_v50 = vrot.slane %v2026_v4, 1 }
 0x3f0   : > { %v2028_v5 = vadd.f32 %v2027_v50, %v2026_v4 }
 0x3f2   : > { %2777 = vpush %v2028_v5 }
 0x422   : > { %2043 = sbr.rel (%p2700_p7) target bundleno = 1707 (0x6ab), region = 60 }
 0x423   : > { %s2778_s24 = spop %2777 }
 0x424   : > { %s2037_s26 = sadd.f32 %s2778_s24, %s2036_s23 }
 0x426   : > { %2039 = sst [smem:[#allocation2]] %s2037_s26 }
 0x427   : > { %v2148_v42 = vld [vmem:[%s5052_s5 + $0x30] sm:$0xff]  ;;  %v2142_v45 = vld [vmem:[%s5052_s5] sm:$0xff]  ;;  %v2998_v38 = vmov 0   ;;  %v2149_v57 = vld [vmem:[%s5052_s5 + $0x38] sm:$0xff]  ;;  %v2999_v14 = vmov 1.0   ;;  %s2044_s22 = sld [smem:[#allocation2]] }
 0x428   : > { %2852 = vset.pattern.permute.xlu1 %v2998_v38  ;;  %2851 = vset.pattern.permute.xlu0 %v2998_v38  ;;  %v2241_v33 = vld [vmem:[#allocation6 + $0x78] sm:$0xff]  ;;  %v2240_v63 = vld [vmem:[#allocation6 + $0x70] sm:$0xff]  ;;  %v2239_v19 = vld [vmem:[#allocation6 + $0x68] sm:$0xff] }
 0x429   : > { %2173 = vperm.xlu0 %2851, %v2148_v42   ;;  %2155 = vperm.xlu1 %2852, %v2142_v45   ;;  %v2151_v34 = vld [vmem:[%s5052_s5 + $0x48] sm:$0xff]  ;;  %v2145_v40 = vld [vmem:[%s5052_s5 + $0x18] sm:$0xff]  ;;  %v2238_v53 = vld [vmem:[#allocation6 + $0x60] sm:$0xff] }
 0x42a   : > { %2853 = vset.pattern.permute.xlu2 %v2998_v38  ;;  %2242 = vmatpush.msra.mxu0 %v2241_v33  ;;  %v2152_v61 = vld [vmem:[%s5052_s5 + $0x50] sm:$0xff]  ;;  %v2237_v2 = vld [vmem:[#allocation6 + $0x58] sm:$0xff]  ;;  %v2235_v29 = vld [vmem:[#allocation6 + $0x48] sm:$0xff] }
 0x42b   : > { %2176 = vperm.xlu2 %2853, %v2149_v57   ;;  %2730 = vmatpush.msra.mxu2 %v2241_v33  ;;  %v2236_v31 = vld [vmem:[#allocation6 + $0x50] sm:$0xff]  ;;  %v2143_v37 = vld [vmem:[%s5052_s5 + $0x8] sm:$0xff]  ;;  %v2146_v41 = vld [vmem:[%s5052_s5 + $0x20] sm:$0xff] }
 0x42c   : > { %2729 = vmatpush.msra.mxu1 %v2241_v33  ;;  %2731 = vmatpush.msra.mxu3 %v2241_v33  ;;  %v2234_v13 = vld [vmem:[#allocation6 + $0x40] sm:$0xff]  ;;  %v2233_v56 = vld [vmem:[#allocation6 + $0x38] sm:$0xff]  ;;  %v2232_v11 = vld [vmem:[#allocation6 + $0x30] sm:$0xff] }
 0x42d   : > { %2243 = vmatpush.msra.mxu0 %v2240_v63  ;;  %2733 = vmatpush.msra.mxu2 %v2240_v63  ;;  %v2150_v1 = vld [vmem:[%s5052_s5 + $0x40] sm:$0xff]  ;;  %v2153_v44 = vld [vmem:[%s5052_s5 + $0x58] sm:$0xff]  ;;  %v2144_v21 = vld [vmem:[%s5052_s5 + $0x10] sm:$0xff] }
 0x42e   : > { %2732 = vmatpush.msra.mxu1 %v2240_v63  ;;  %2734 = vmatpush.msra.mxu3 %v2240_v63  ;;  %v2147_v0 = vld [vmem:[%s5052_s5 + $0x28] sm:$0xff]  ;;  %v2230_v43 = vld [vmem:[#allocation6 + $0x20] sm:$0xff]  ;;  %v2229_v25 = vld [vmem:[#allocation6 + $0x18] sm:$0xff] }
 0x42f   : > { %2244 = vmatpush.msra.mxu0 %v2239_v19  ;;  %2736 = vmatpush.msra.mxu2 %v2239_v19  ;;  %v2231_v58 = vld [vmem:[#allocation6 + $0x28] sm:$0xff]  ;;  %v2228_v6 = vld [vmem:[#allocation6 + $0x10] sm:$0xff]  ;;  %v2226_v8 = vld [vmem:[#allocation6] sm:$0xff] }
 0x430   : > { %2735 = vmatpush.msra.mxu1 %v2239_v19  ;;  %2737 = vmatpush.msra.mxu3 %v2239_v19  ;;  %v2227_v47 = vld [vmem:[#allocation6 + $0x8] sm:$0xff] }
 0x431   : > { %2182 = vperm.xlu0 %2851, %v2151_v34   ;;  %2164 = vperm.xlu1 %2852, %v2145_v40  }
 0x432   : > { %2245 = vmatpush.msra.mxu0 %v2238_v53  ;;  %2739 = vmatpush.msra.mxu2 %v2238_v53 }
 0x433   : > { %2185 = vperm.xlu2 %2853, %v2152_v61   ;;  %2738 = vmatpush.msra.mxu1 %v2238_v53 }
 0x434   : > { %2246 = vmatpush.msra.mxu0 %v2237_v2  ;;  %2742 = vmatpush.msra.mxu2 %v2237_v2 }
 0x435   : > { %2740 = vmatpush.msra.mxu3 %v2238_v53  ;;  %2741 = vmatpush.msra.mxu1 %v2237_v2 }
 0x436   : > { %2247 = vmatpush.msra.mxu0 %v2236_v31  ;;  %2745 = vmatpush.msra.mxu2 %v2236_v31 }
 0x437   : > { %2743 = vmatpush.msra.mxu3 %v2237_v2  ;;  %2744 = vmatpush.msra.mxu1 %v2236_v31 }
 0x438   : > { %2248 = vmatpush.msra.mxu0 %v2235_v29  ;;  %2748 = vmatpush.msra.mxu2 %v2235_v29 }
 0x439   : > { %2158 = vperm.xlu0 %2851, %v2143_v37   ;;  %2167 = vperm.xlu1 %2852, %v2146_v41  }
 0x43a   : > { %2249 = vmatpush.msra.mxu0 %v2234_v13  ;;  %2751 = vmatpush.msra.mxu2 %v2234_v13 }
 0x43b   : > { %2179 = vperm.xlu2 %2853, %v2150_v1   ;;  %2746 = vmatpush.msra.mxu3 %v2236_v31  ;;  %v3000_v1 = vmov 0.05  }
 0x43c   : > { %2250 = vmatpush.msra.mxu0 %v2233_v56  ;;  %2754 = vmatpush.msra.mxu2 %v2233_v56 }
 0x43d   : > { %2747 = vmatpush.msra.mxu1 %v2235_v29  ;;  %2749 = vmatpush.msra.mxu3 %v2235_v29 }
 0x43e   : > { %2251 = vmatpush.msra.mxu0 %v2232_v11  ;;  %2757 = vmatpush.msra.mxu2 %v2232_v11 }
 0x43f   : > { %2750 = vmatpush.msra.mxu1 %v2234_v13  ;;  %2752 = vmatpush.msra.mxu3 %v2234_v13 }
 0x440   : > { %2252 = vmatpush.msra.mxu0 %v2231_v58  ;;  %2760 = vmatpush.msra.mxu2 %v2231_v58 }
 0x441   : > { %2188 = vperm.xlu0 %2851, %v2153_v44   ;;  %2161 = vperm.xlu1 %2852, %v2144_v21  }
 0x442   : > { %2753 = vmatpush.msra.mxu1 %v2233_v56  ;;  %2755 = vmatpush.msra.mxu3 %v2233_v56 }
 0x443   : > { %2170 = vperm.xlu2 %2853, %v2147_v0   ;;  %2253 = vmatpush.msra.mxu0 %v2230_v43 }
 0x444   : > { %2756 = vmatpush.msra.mxu1 %v2232_v11  ;;  %2758 = vmatpush.msra.mxu3 %v2232_v11 }
 0x445   : > { %2763 = vmatpush.msra.mxu2 %v2230_v43  ;;  %2254 = vmatpush.msra.mxu0 %v2229_v25 }
 0x446   : > { %2759 = vmatpush.msra.mxu1 %v2231_v58  ;;  %2761 = vmatpush.msra.mxu3 %v2231_v58 }
 0x447   : > { %2766 = vmatpush.msra.mxu2 %v2229_v25  ;;  %2255 = vmatpush.msra.mxu0 %v2228_v6 }
 0x448   : > { %2762 = vmatpush.msra.mxu1 %v2230_v43  ;;  %2764 = vmatpush.msra.mxu3 %v2230_v43 }
 0x449   : > { %2769 = vmatpush.msra.mxu2 %v2228_v6  ;;  %2256 = vmatpush.msra.mxu0 %v2227_v47 }
 0x44a   : > { %2765 = vmatpush.msra.mxu1 %v2229_v25  ;;  %2767 = vmatpush.msra.mxu3 %v2229_v25 }
 0x44b   : > { %2772 = vmatpush.msra.mxu2 %v2227_v47  ;;  %2257 = vmatpush.msra.mxu0 %v2226_v8 }
 0x44c   : > { %2768 = vmatpush.msra.mxu1 %v2228_v6  ;;  %2770 = vmatpush.msra.mxu3 %v2228_v6 }
 0x44d   : > { %2775 = vmatpush.msra.mxu2 %v2226_v8 }
 0x44e   : > { %2771 = vmatpush.msra.mxu1 %v2227_v47  ;;  %2773 = vmatpush.msra.mxu3 %v2227_v47 }
 0x450   : > { %2774 = vmatpush.msra.mxu1 %v2226_v8  ;;  %2776 = vmatpush.msra.mxu3 %v2226_v8 }
 0x485   : > { %v2177_v26 = vpop.permute.xlu2 %2176 }
 0x486   : > { %vm2197_vm2 = vcmp.eq.s32.totalorder %v2177_v26, %v3619_v51 }
 0x48d   : > { %v2186_v9 = vpop.permute.xlu2 %2185 }
 0x48e   : > { %vm2200_vm12 = vcmp.eq.s32.totalorder %v2186_v9, %v3619_v51 }
 0x495   : > { %v2180_v52 = vpop.permute.xlu2 %2179 }
 0x496   : > { %vm2198_vm9 = vcmp.eq.s32.totalorder %v2180_v52, %v3619_v51 }
 0x49b   : > { %v2174_v60 = vpop.permute.xlu0 %2173  ;;  %v2156_v20 = vpop.permute.xlu1 %2155 }
 0x49c   : > { %vm2196_vm11 = vcmp.eq.s32.totalorder %v2174_v60, %v3619_v51  ;;  %vm2190_vm5 = vcmp.eq.s32.totalorder %v2156_v20, %v3619_v51 }
 0x49d   : > { %2713 = vmatmul.msk.f32.vlgmr.msra.gmra.mxu0 %vm2190_vm5, %v2999_v14  ;;  %2719 = vmatmul.msk.f32.vlgmr.msra.gmra.mxu2 %vm2196_vm11, %v2999_v14  ;;  %v2171_v24 = vpop.permute.xlu2 %2170 }
 0x49e   : > { %vm2195_vm1 = vcmp.eq.s32.totalorder %v2171_v24, %v3619_v51 }
 0x4a3   : > { %v2183_v23 = vpop.permute.xlu0 %2182  ;;  %v2165_v59 = vpop.permute.xlu1 %2164 }
 0x4a4   : > { %vm2199_vm3 = vcmp.eq.s32.totalorder %v2183_v23, %v3619_v51  ;;  %vm2193_vm14 = vcmp.eq.s32.totalorder %v2165_v59, %v3619_v51 }
 0x4a5   : > { %2716 = vmatmul.msk.f32.vlgmr.msra.gmra.mxu1 %vm2193_vm14, %v2999_v14  ;;  %2720 = vmatmul.msk.f32.gmra.mxu2 %vm2197_vm2, %v2999_v14 }
 0x4a6   : > { %2722 = vmatmul.msk.f32.vlgmr.msra.gmra.mxu3 %vm2199_vm3, %v2999_v14 }
 0x4ab   : > { %v2159_v15 = vpop.permute.xlu0 %2158  ;;  %v2168_v28 = vpop.permute.xlu1 %2167 }
 0x4ac   : > { %vm2191_vm7 = vcmp.eq.s32.totalorder %v2159_v15, %v3619_v51  ;;  %vm2194_vm15 = vcmp.eq.s32.totalorder %v2168_v28, %v3619_v51 }
 0x4ad   : > { %2714 = vmatmul.msk.f32.gmra.mxu0 %vm2191_vm7, %v2999_v14  ;;  %2717 = vmatmul.msk.f32.gmra.mxu1 %vm2194_vm15, %v2999_v14 }
 0x4ae   : > { %2721 = vmatmul.msk.f32.gmra.mxu2 %vm2198_vm9, %v2999_v14  ;;  %2723 = vmatmul.msk.f32.gmra.mxu3 %vm2200_vm12, %v2999_v14 }
 0x4b3   : > { %v2189_v49 = vpop.permute.xlu0 %2188  ;;  %v2162_v3 = vpop.permute.xlu1 %2161 }
 0x4b4   : > { %vm2201_vm0 = vcmp.eq.s32.totalorder %v2189_v49, %v3619_v51  ;;  %vm2192_vm13 = vcmp.eq.s32.totalorder %v2162_v3, %v3619_v51 }
 0x4b5   : > { %2715 = vmatmul.msk.f32.gmra.mxu0 %vm2192_vm13, %v2999_v14  ;;  %2718 = vmatmul.msk.f32.gmra.mxu1 %vm2195_vm1, %v2999_v14 }
 0x4b6   : > { %2724 = vmatmul.msk.f32.gmra.mxu3 %vm2201_vm0, %v2999_v14 }
 0x51a   : > { %v2259_v36 = vpop.f32.mrf.mxu0 }
 0x51b   : > { %v2307_v18 = vmul.f32 %v2259_v36, %v2259_v36 }
 0x51d   : > { %2311 = vadd.xlane.f32.xlu0 %v2307_v18 }
 0x520   : > { %v2277_v62 = vpop.f32.mrf.mxu2 }
 0x521   : > { %v2321_v12 = vmul.f32 %v2277_v62, %v2277_v62 }
 0x522   : > { %v2268_v35 = vpop.f32.mrf.mxu1 }
 0x523   : > { %2327 = vadd.xlane.f32.xlu1 %v2321_v12  ;;  %v2310_v7 = vmul.f32 %v2268_v35, %v2268_v35 }
 0x525   : > { %2317 = vadd.xlane.f32.xlu0 %v2310_v7 }
 0x528   : > { %v2280_v46 = vpop.f32.mrf.mxu2 }
 0x529   : > { %v2286_v39 = vpop.f32.mrf.mxu3  ;;  %v2322_v30 = vmul.f32 %v2280_v46, %v2280_v46  ;;  %v2298_v53 = vmul.f32 %v2280_v46, %v2268_v35 }
 0x52a   : > { %v2262_v10 = vpop.f32.mrf.mxu0  ;;  %v2271_v17 = vpop.f32.mrf.mxu1  ;;  %v2440_v54 = vmul.f32 %v2286_v39, %v2286_v39 }
 0x52b   : > { %v2308_v16 = vmul.f32 %v2262_v10, %v2262_v10  ;;  %v2319_v27 = vmul.f32 %v2271_v17, %v2271_v17  ;;  %v2295_v63 = vmul.f32 %v2271_v17, %v2259_v36  ;;  %v2428_v40 = vmul.f32 %v2286_v39, %v2262_v10 }
 0x52c   : > { %2445 = vadd.xlane.f32.xlu2 %v2440_v54 }
 0x52d   : > { %2313 = vadd.xlane.f32.xlu1 %v2308_v16  ;;  %2329 = vadd.xlane.f32.xlu0 %v2322_v30 }
 0x531   : > { %v2283_v51 = vpop.f32.mrf.mxu2  ;;  %v2289_v55 = vpop.f32.mrf.mxu3 }
 0x532   : > { %v2274_v32 = vpop.f32.mrf.mxu1  ;;  %v2439_v22 = vmul.f32 %v2283_v51, %v2283_v51  ;;  %v2441_v50 = vmul.f32 %v2289_v55, %v2289_v55  ;;  %v2265_v45 = vpop.f32.mrf.mxu0  ;;  %v2427_v57 = vmul.f32 %v2283_v51, %v2259_v36 }
 0x533   : > { %v2320_v48 = vmul.f32 %v2274_v32, %v2274_v32  ;;  %v2296_v5 = vmul.f32 %v2274_v32, %v2262_v10  ;;  %v2309_v38 = vmul.f32 %v2265_v45, %v2265_v45  ;;  %v2297_v33 = vmul.f32 %v2277_v62, %v2265_v45 }
 0x534   : > { %2323 = vadd.xlane.f32.xlu2 %v2319_v27  ;;  %v2429_v34 = vmul.f32 %v2289_v55, %v2265_v45 }
 0x535   : > { %2443 = vadd.xlane.f32.xlu1 %v2439_v22  ;;  %2325 = vadd.xlane.f32.xlu0 %v2320_v48 }
 0x539   : > { %v2292_v4 = vpop.f32.mrf.mxu3 }
 0x53a   : > { %v2442_v42 = vmul.f32 %v2292_v4, %v2292_v4  ;;  %v2430_v19 = vmul.f32 %v2292_v4, %v2268_v35 }
 0x53c   : > { %2447 = vadd.xlane.f32.xlu2 %v2441_v50 }
 0x53d   : > { %2449 = vadd.xlane.f32.xlu1 %v2442_v42  ;;  %2301 = vadd.xlane.f32.xlu0 %v2296_v5 }
 0x544   : > { %2315 = vadd.xlane.f32.xlu2 %v2309_v38 }
 0x545   : > { %2431 = vadd.xlane.f32.xlu1 %v2427_v57  ;;  %2303 = vadd.xlane.f32.xlu0 %v2297_v33 }
 0x54c   : > { %2299 = vadd.xlane.f32.xlu2 %v2295_v63 }
 0x54d   : > { %2435 = vadd.xlane.f32.xlu1 %v2429_v34  ;;  %2437 = vadd.xlane.f32.xlu0 %v2430_v19 }
 0x554   : > { %2433 = vadd.xlane.f32.xlu2 %v2428_v40 }
 0x55c   : > { %2305 = vadd.xlane.f32.xlu2 %v2298_v53 }
 0x590   : > { %v2312_v61 = vpop.xlane.xlu0 %2311 }
 0x591   : > { %v4768_v2 = vmax.f32 %v2312_v61, 1e-12 }
 0x593   : > { %2854 = vrsqrt.f32 %v4768_v2  ;;  %vm2341_vm10 = vweird.f32 %v4768_v2 }
 0x596   : > { %v2328_v31 = vpop.xlane.xlu1 %2327 }
 0x597   : > { %v4771_v29 = vmax.f32 %v2328_v31, 1e-12 }
 0x598   : > { %v2318_v37 = vpop.xlane.xlu0 %2317 }
 0x599   : > { %2856 = vrsqrt.f32 %v4771_v29  ;;  %v4774_v41 = vpop.eup %2854  ;;  %v4776_v13 = vmax.f32 %v2318_v37, 1e-12  ;;  %vm2409_vm5 = vweird.f32 %v4771_v29 }
 0x59a   : > { %2858 = vrcp.f32 %v3000_v1  ;;  %v2336_v11 = vmul.f32 %v4774_v41, %v4768_v2  ;;  %vm2342_vm6 = vweird.f32 %v4774_v41 }
 0x59b   : > { %2860 = vrsqrt.f32 %v4776_v13  ;;  %vm2343_vm11 = vmor %vm2341_vm10, %vm2342_vm6  ;;  %vm2058_vm10 = vcmask 1040384  }
 0x59c   : > { %v2337_v6 = vmul.f32 %v4774_v41, %v2336_v11 }
 0x59e   : > { %v2338_v9 = vmul.f32 0.5, %v2337_v6 }
 0x59f   : > { %v2446_v56 = vpop.xlane.xlu2 %2445  ;;  %v4785_v43 = vpop.eup %2856 }
 0x5a0   : > { %v4780_v44 = vmax.f32 %v2446_v56, 1e-12  ;;  %v2330_v21 = vpop.xlane.xlu0 %2329  ;;  %v2314_v0 = vpop.xlane.xlu1 %2313  ;;  %v2404_v47 = vmul.f32 %v4785_v43, %v4771_v29  ;;  %v2339_v35 = vsub.f32 1.5, %v2338_v9  ;;  %vm2410_vm4 = vweird.f32 %v4785_v43 }
 0x5a1   : > { %v4783_v58 = vmax.f32 %v2314_v0, 1e-12  ;;  %v4787_v25 = vpop.eup %2858  ;;  %v4794_v8 = vmax.f32 %v2330_v21, 1e-12  ;;  %vm4879_vm14 = vmor %vm2409_vm5, %vm2410_vm4 }
 0x5a2   : > { %2862 = vrsqrt.f32 %v4780_v44  ;;  %v2508_v26 = vmul.f32 0.05, %v4787_v25  ;;  %v4797_v60 = vpop.eup %2860  ;;  %v2405_v15 = vmul.f32 %v4785_v43, %v2404_v47  ;;  %v2340_v48 = vmul.f32 %v4774_v41, %v2339_v35 }
 0x5a3   : > { %2864 = vrsqrt.f32 %v4783_v58  ;;  %v2366_v3 = vmul.f32 %v4797_v60, %v4776_v13  ;;  %vm2512_vm8 = vweird.f32 %v4787_v25  ;;  %vm2351_vm2 = vweird.f32 %v4783_v58 }
 0x5a4   : > { %2866 = vrsqrt.f32 %v4794_v8  ;;  %v2509_v36 = vsub.f32 1.0, %v2508_v26  ;;  %v2406_v12 = vmul.f32 0.5, %v2405_v15  ;;  %v2344_v61 = vsel %vm2343_vm11, %v4774_v41, %v2340_v48 }
 0x5a5   : > { %v2367_v7 = vmul.f32 %v4797_v60, %v2366_v3  ;;  %vm2475_vm6 = vweird.f32 %v4780_v44  ;;  %vm2372_vm5 = vweird.f32 %v4797_v60 }
 0x5a6   : > { %v2510_v46 = vmul.f32 %v4787_v25, %v2509_v36  ;;  %v2407_v32 = vsub.f32 1.5, %v2406_v12  ;;  %v2070_v12 = vld [vmem:[%s5050_s3 + $0x3] sm:$0x1] }
 0x5a7   : > { %v2324_v20 = vpop.xlane.xlu2 %2323  ;;  %v4841_v50 = vmul.f32 0.5, %v2367_v7 }
 0x5a8   : > { %v4799_v14 = vmax.f32 %v2324_v20, 1e-12  ;;  %v2326_v23 = vpop.xlane.xlu0 %2325  ;;  %v2444_v59 = vpop.xlane.xlu1 %2443  ;;  %v2511_v42 = vadd.f32 %v4787_v25, %v2510_v46  ;;  %v4856_v40 = vmul.f32 %v4785_v43, %v2407_v32 }
 0x5a9   : > { %v4801_v52 = vpop.eup %2862  ;;  %v4805_v28 = vmax.f32 %v2326_v23, 1e-12  ;;  %v4807_v24 = vmax.f32 %v2444_v59, 1e-12  ;;  %v2369_v11 = vsub.f32 1.5, %v4841_v50 }
 0x5aa   : > { %v4809_v49 = vpop.eup %2864  ;;  %2868 = vrsqrt.f32 %v4799_v14  ;;  %v2470_v18 = vmul.f32 %v4801_v52, %v4780_v44  ;;  %v4869_v56 = vsel %vm2512_vm8, %v4787_v25, %v2511_v42  ;;  %vm2389_vm3 = vweird.f32 %v4799_v14  ;;  %v2054_v23 = vld [vmem:[%s5050_s3] sm:$0x1]  ;;  %v4899_v59 = vld [vmem:[%s5050_s3 + $0x2] sm:$0x1] }
 0x5ab   : > { %2870 = vrsqrt.f32 %v4805_v28  ;;  %v2346_v62 = vmul.f32 %v4809_v49, %v4783_v58  ;;  %v4822_v39 = vpop.eup %2866  ;;  %v2412_v9 = vsel %vm4879_vm14, %v4785_v43, %v4856_v40  ;;  %vm2465_vm7 = vweird.f32 %v4807_v24 }
 0x5ac   : > { %2872 = vrsqrt.f32 %v4807_v24  ;;  %v2471_v17 = vmul.f32 %v4801_v52, %v2470_v18  ;;  %v2414_v45 = vmul.f32 %v4822_v39, %v4794_v8  ;;  %vm2352_vm15 = vweird.f32 %v4809_v49 }
 0x5ad   : > { %v2347_v54 = vmul.f32 %v4809_v49, %v2346_v62  ;;  %vm2476_vm0 = vweird.f32 %v4801_v52  ;;  %v2056_v7 = vsub.f32 %v2054_v23, %v4899_v59  ;;  %vm2399_vm13 = vweird.f32 %v4805_v28  ;;  %vm2353_vm4 = vmor %vm2351_vm2, %vm2352_vm15 }
 0x5ae   : > { %v2472_v33 = vmul.f32 0.5, %v2471_v17  ;;  %v2415_v31 = vmul.f32 %v4822_v39, %v2414_v45  ;;  %v2071_v42 = vsub.f32 %v2054_v23, %v2070_v12  ;;  %v2099_v45 = vld [vmem:[%s5050_s3 + $0x5] sm:$0x1]  ;;  %vm2371_vm2 = vweird.f32 %v4776_v13  ;;  %vm2477_vm15 = vmor %vm2475_vm6, %vm2476_vm0 }
 0x5af   : > { %v2448_v30 = vpop.xlane.xlu2 %2447  ;;  %v2348_v63 = vmul.f32 0.5, %v2347_v54  ;;  %v2084_v54 = vld [vmem:[%s5050_s3 + $0x1] sm:$0x1] }
 0x5b0   : > { %v4825_v10 = vpop.eup %2868  ;;  %v4829_v16 = vmax.f32 %v2448_v30, 1e-12  ;;  %v2450_v51 = vpop.xlane.xlu1 %2449  ;;  %v2473_v2 = vsub.f32 1.5, %v2472_v33  ;;  %v4904_v3 = vmul.f32 0.5, %v2415_v31  ;;  %v2072_v31 = vmul.f32 %v2071_v42, %v2071_v42 }
 0x5b1   : > { %v4832_v55 = vpop.eup %2870  ;;  %v2384_v27 = vmul.f32 %v4825_v10, %v4799_v14  ;;  %v4836_v22 = vmax.f32 %v2450_v51, 1e-12  ;;  %v2349_v29 = vsub.f32 1.5, %v2348_v63  ;;  %v4887_v20 = vpop.xlane.xlu0 %2301  ;;  %vm2390_vm1 = vweird.f32 %v4825_v10  ;;  %v2085_v51 = vld [vmem:[%s5050_s3 + $0x4] sm:$0x1] }
 0x5b2   : > { %v4839_v4 = vpop.eup %2872  ;;  %v2394_v5 = vmul.f32 %v4832_v55, %v4805_v28  ;;  %2874 = vrsqrt.f32 %v4829_v16  ;;  %vm2400_vm9 = vweird.f32 %v4832_v55  ;;  %v4922_v17 = vmul.f32 %v4801_v52, %v2473_v2  ;;  %vm2391_vm11 = vmor %vm2389_vm3, %vm2390_vm1 }
 0x5b3   : > { %v2385_v38 = vmul.f32 %v4825_v10, %v2384_v27  ;;  %v2460_v57 = vmul.f32 %v4839_v4, %v4807_v24  ;;  %2876 = vrsqrt.f32 %v4836_v22  ;;  %vm2466_vm12 = vweird.f32 %v4839_v4  ;;  %vm4980_vm3 = vmor %vm2399_vm13, %vm2400_vm9 }
 0x5b4   : > { %v2395_v53 = vmul.f32 %v4832_v55, %v2394_v5  ;;  %v2350_v35 = vmul.f32 %v4809_v49, %v2349_v29  ;;  %vm4935_vm8 = vmor %vm2465_vm7, %vm2466_vm12  ;;  %v2057_v5 = vmul.f32 %v2056_v7, %v2056_v7  ;;  %v2086_v63 = vsub.f32 %v2084_v54, %v2085_v51 }
 0x5b5   : > { %v2386_v19 = vmul.f32 0.5, %v2385_v38  ;;  %v2461_v34 = vmul.f32 %v4839_v4, %v2460_v57  ;;  %v2113_v38 = vld [vmem:[%s5050_s3 + $0x6] sm:$0x1]  ;;  %v2417_v7 = vsub.f32 1.5, %v4904_v3  ;;  %v2370_v54 = vmul.f32 %v4797_v60, %v2369_v11 }
 0x5b6   : > { %v2396_v15 = vmul.f32 0.5, %v2395_v53  ;;  %v2059_v58 = vsel %vm2058_vm10, %v2057_v5, 0.0  ;;  %v2354_v2 = vsel %vm2353_vm4, %v4809_v49, %v2350_v35  ;;  %v2478_v5 = vsel %vm2477_vm15, %v4801_v52, %v4922_v17 }
 0x5b7   : > { %v2462_v37 = vmul.f32 0.5, %v2461_v34  ;;  %v2316_v1 = vpop.xlane.xlu2 %2315  ;;  %v2387_v25 = vsub.f32 1.5, %v2386_v19  ;;  %v2100_v19 = vsub.f32 %v4899_v59, %v2099_v45  ;;  %2060 = vadd.xlane.f32.xlu1 %v2059_v58  ;;  %vm2485_vm0 = vweird.f32 %v4829_v16 }
 0x5b8   : > { %v4872_v21 = vpop.eup %2874  ;;  %v4875_v0 = vmax.f32 %v2316_v1, 1e-12  ;;  %v2432_v62 = vpop.xlane.xlu1 %2431  ;;  %v2397_v32 = vsub.f32 1.5, %v2396_v15  ;;  %vm2420_vm4 = vweird.f32 %v4822_v39  ;;  %vm2578_vm15 = vcmask 7168  }
 0x5b9   : > { %v4883_v6 = vpop.eup %2876  ;;  %v2463_v47 = vsub.f32 1.5, %v2462_v37  ;;  %v2480_v26 = vmul.f32 %v4872_v21, %v4829_v16  ;;  %v2388_v30 = vmul.f32 %v4825_v10, %v2387_v25  ;;  %v2451_v48 = vmul.f32 %v2432_v62, %v2344_v61  ;;  %v2127_v25 = vld [vmem:[%s5050_s3 + $0x7] sm:$0x1] }
 0x5ba   : > { %2878 = vrsqrt.f32 %v4875_v0  ;;  %v2490_v36 = vmul.f32 %v4883_v6, %v4836_v22  ;;  %v2114_v37 = vsub.f32 %v4899_v59, %v2113_v38  ;;  %v2398_v23 = vmul.f32 %v4832_v55, %v2397_v32 }
 0x5bb   : > { %v2464_v18 = vmul.f32 %v4839_v4, %v2463_v47  ;;  %v2481_v46 = vmul.f32 %v4872_v21, %v2480_v26  ;;  %v2392_v29 = vsel %vm2391_vm11, %v4825_v10, %v2388_v30  ;;  %v2087_v26 = vmul.f32 %v2086_v63, %v2086_v63 }
 0x5bc   : > { %v2491_v24 = vmul.f32 %v4883_v6, %v2490_v36  ;;  %v2304_v36 = vpop.xlane.xlu0 %2303  ;;  %v2115_v12 = vmul.f32 %v2114_v37, %v2114_v37  ;;  %v2128_v35 = vsub.f32 %v4899_v59, %v2127_v25  ;;  %v2376_v32 = vmul.f32 %v2354_v2, %v4887_v20 }
 0x5bd   : > { %v2468_v57 = vsel %vm4935_vm8, %v4839_v4, %v2464_v18  ;;  %v2482_v1 = vmul.f32 0.5, %v2481_v46  ;;  %v2101_v18 = vmul.f32 %v2100_v19, %v2100_v19  ;;  %v2088_v62 = vsel %vm2058_vm10, %v2087_v26, 0.0 }
 0x5be   : > { %v2499_v14 = vmul.f32 %v2468_v57, %v2451_v48  ;;  %v2492_v15 = vmul.f32 0.5, %v2491_v24  ;;  %2089 = vadd.xlane.f32.xlu0 %v2088_v62  ;;  %v2129_v27 = vmul.f32 %v2128_v35, %v2128_v35  ;;  %v2402_v50 = vsel %vm4980_vm3, %v4832_v55, %v2398_v23 }
 0x5bf   : > { %v2300_v33 = vpop.xlane.xlu2 %2299  ;;  %v2483_v46 = vsub.f32 1.5, %v2482_v1  ;;  %v2102_v3 = vsel %vm2058_vm10, %v2101_v18, 0.0  ;;  %v2116_v45 = vsel %vm2058_vm10, %v2115_v12, 0.0  ;;  %vm2361_vm12 = vweird.f32 %v4875_v0 }
 0x5c0   : > { %v2879_v34 = vpop.eup %2878  ;;  %v2375_v53 = vmul.f32 %v2344_v61, %v2300_v33  ;;  %v2073_v61 = vsel %vm2058_vm10, %v2072_v31, 0.0  ;;  %v2493_v11 = vsub.f32 1.5, %v2492_v15  ;;  %vm2486_vm9 = vweird.f32 %v4872_v21  ;;  %2103 = vadd.xlane.f32.xlu1 %v2102_v3  ;;  %v2436_v63 = vpop.xlane.xlu1 %2435 }
 0x5c1   : > { %v2356_v4 = vmul.f32 %v2879_v34, %v4875_v0  ;;  %2074 = vadd.xlane.f32.xlu2 %v2073_v61  ;;  %vm2362_vm7 = vweird.f32 %v2879_v34  ;;  %v2484_v55 = vmul.f32 %v4872_v21, %v2483_v46  ;;  %v2424_v24 = vmul.f32 %v2402_v50, %v2376_v32  ;;  %vm2487_vm6 = vmor %vm2485_vm0, %vm2486_vm9 }
 0x5c2   : > { %v2423_v47 = vmul.f32 %v2392_v29, %v2375_v53  ;;  %vm2363_vm1 = vmor %vm2361_vm12, %vm2362_vm7  ;;  %v2130_v33 = vsel %vm2058_vm10, %v2129_v27, 0.0  ;;  %v2494_v17 = vmul.f32 %v4883_v6, %v2493_v11  ;;  %vm2496_vm13 = vweird.f32 %v4883_v6 }
 0x5c3   : > { %v2357_v49 = vmul.f32 %v2879_v34, %v2356_v4  ;;  %vm2495_vm8 = vweird.f32 %v4836_v22  ;;  %vm2373_vm10 = vmor %vm2371_vm2, %vm2372_vm5  ;;  %v2418_v31 = vmul.f32 %v4822_v39, %v2417_v7  ;;  %vm2419_vm5 = vweird.f32 %v4794_v8 }
 0x5c4   : > { %v2503_v10 = vsub.f32 %v2423_v47, %v2499_v14  ;;  %v2438_v16 = vpop.xlane.xlu0 %2437  ;;  %vm2497_vm11 = vmor %vm2495_vm8, %vm2496_vm13 }
 0x5c5   : > { %v2358_v30 = vmul.f32 0.5, %v2357_v49  ;;  %v2498_v1 = vsel %vm2497_vm11, %v4883_v6, %v2494_v17  ;;  %vm2421_vm14 = vmor %vm2419_vm5, %vm2420_vm4 }
 0x5c6   : > { %v4986_v59 = vmul.f32 %v4869_v56, %v2503_v10  ;;  %2131 = vadd.xlane.f32.xlu0 %v2130_v33 }
 0x5c7   : > { %v2359_v48 = vsub.f32 1.5, %v2358_v30  ;;  %v2434_v28 = vpop.xlane.xlu2 %2433 }
 0x5c8   : > { %v2522_v20 = vand.u32 2147483647, %v4986_v59  ;;  %v2452_v42 = vmul.f32 %v2434_v28, %v2354_v2  ;;  %v2518_v33 = vmax.f32 %v4986_v59, 0.0 }
 0x5c9   : > { %v2360_v38 = vmul.f32 %v2879_v34, %v2359_v48  ;;  %2117 = vadd.xlane.f32.xlu2 %v2116_v45 }
 0x5ca   : > { %v2526_v44 = vsub.f32 0.0, %v2522_v20  ;;  %v2500_v57 = vmul.f32 %v2478_v5, %v2452_v42 }
 0x5cb   : > { %v2364_v52 = vsel %vm2363_vm1, %v2879_v34, %v2360_v38  ;;  %v2488_v34 = vsel %vm2487_vm6, %v4872_v21, %v2484_v55  ;;  %v2374_v21 = vsel %vm2373_vm10, %v4797_v60, %v2370_v54 }
 0x5cc   : > { %v2377_v0 = vmul.f32 %v2364_v52, %v2304_v36  ;;  %v2530_v19 = vmul.f32 1.442695, %v2526_v44  ;;  %v2453_v53 = vmul.f32 %v2436_v63, %v2364_v52  ;;  %v2504_v58 = vsub.f32 %v2424_v24, %v2500_v57 }
 0x5cd   : > { %v2454_v41 = vmul.f32 %v2438_v16, %v2374_v21 }
 0x5ce   : > { %v2425_v37 = vmul.f32 %v2412_v9, %v2377_v0  ;;  %2880 = vpow2.f32 %v2530_v19  ;;  %v2501_v13 = vmul.f32 %v2488_v34, %v2453_v53  ;;  %v5025_v22 = vmul.f32 %v4869_v56, %v2504_v58 }
 0x5cf   : > { %v2306_v2 = vpop.xlane.xlu2 %2305  ;;  %v2422_v9 = vsel %vm2421_vm14, %v4822_v39, %v2418_v31  ;;  %v2502_v29 = vmul.f32 %v2498_v1, %v2454_v41 }
 0x5d0   : > { %v2505_v4 = vsub.f32 %v2425_v37, %v2501_v13  ;;  %v2523_v43 = vand.u32 2147483647, %v5025_v22  ;;  %v2378_v40 = vmul.f32 %v2374_v21, %v2306_v2  ;;  %v2519_v48 = vmax.f32 %v5025_v22, 0.0 }
 0x5d2   : > { %v2516_v25 = vmul.f32 %v4869_v56, %v2505_v4  ;;  %v2527_v14 = vsub.f32 0.0, %v2523_v43  ;;  %v2426_v47 = vmul.f32 %v2422_v9, %v2378_v40 }
 0x5d4   : > { %v2881_v61 = vpop.eup %2880  ;;  %v2524_v8 = vand.u32 2147483647, %v2516_v25  ;;  %v2532_v26 = vmul.f32 1.442695, %v2527_v14  ;;  %v2506_v60 = vsub.f32 %v2426_v47, %v2502_v29  ;;  %v2520_v19 = vmax.f32 %v2516_v25, 0.0 }
 0x5d5   : > { %v2538_v15 = vadd.f32 1.0, %v2881_v61  ;;  %v2541_v62 = vmul.f32 -0.5, %v2881_v61  ;;  %v2544_v32 = vand.u32 2147483647, %v2881_v61  ;;  %v3001_v29 = vmov 128.0  }
 0x5d6   : > { %v2528_v23 = vsub.f32 0.0, %v2524_v8  ;;  %2882 = vpow2.f32 %v2532_v26  ;;  %v5034_v6 = vmul.f32 %v4869_v56, %v2506_v60 }
 0x5d7   : > { %v2542_v30 = vadd.f32 1.0, %v2541_v62  ;;  %vm2545_vm2 = vcmp.lt.f32.partialorder %v2544_v32, 0.0004427343 }
 0x5d8   : > { %v2534_v49 = vmul.f32 1.442695, %v2528_v23  ;;  %v2525_v36 = vand.u32 2147483647, %v5034_v6  ;;  %v2521_v21 = vmax.f32 %v5034_v6, 0.0 }
 0x5d9   : > { %v2543_v28 = vmul.f32 %v2881_v61, %v2542_v30 }
 0x5da   : > { %2884 = vpow2.f32 %v2534_v49  ;;  %v2529_v39 = vsub.f32 0.0, %v2525_v36 }
 0x5db   : > { %2886 = vlog2.f32 %v2538_v15 }
 0x5dc   : > { %v2883_v18 = vpop.eup %2882  ;;  %v2536_v10 = vmul.f32 1.442695, %v2529_v39 }
 0x5dd   : > { %v2547_v12 = vadd.f32 1.0, %v2883_v18  ;;  %v2550_v35 = vmul.f32 -0.5, %v2883_v18  ;;  %v2553_v3 = vand.u32 2147483647, %v2883_v18 }
 0x5de   : > { %2888 = vpow2.f32 %v2536_v10 }
 0x5df   : > { %2890 = vlog2.f32 %v2547_v12  ;;  %v2551_v56 = vadd.f32 1.0, %v2550_v35  ;;  %vm2554_vm3 = vcmp.lt.f32.partialorder %v2553_v3, 0.0004427343 }
 0x5e0   : > { %v2885_v7 = vpop.eup %2884 }
 0x5e1   : > { %v2887_v46 = vpop.eup %2886  ;;  %v2556_v54 = vadd.f32 1.0, %v2885_v7  ;;  %v2559_v51 = vmul.f32 -0.5, %v2885_v7  ;;  %v2552_v42 = vmul.f32 %v2883_v18, %v2551_v56  ;;  %v2562_v55 = vand.u32 2147483647, %v2885_v7 }
 0x5e2   : > { %v2540_v50 = vmul.f32 0.6931472, %v2887_v46 }
 0x5e3   : > { %2892 = vlog2.f32 %v2556_v54  ;;  %v2560_v45 = vadd.f32 1.0, %v2559_v51  ;;  %vm2563_vm7 = vcmp.lt.f32.partialorder %v2562_v55, 0.0004427343 }
 0x5e4   : > { %v2889_v27 = vpop.eup %2888  ;;  %v2546_v24 = vsel %vm2545_vm2, %v2543_v28, %v2540_v50 }
 0x5e5   : > { %v2891_v11 = vpop.eup %2890  ;;  %v2565_v20 = vadd.f32 1.0, %v2889_v27  ;;  %v2568_v38 = vmul.f32 -0.5, %v2889_v27  ;;  %v2561_v63 = vmul.f32 %v2885_v7, %v2560_v45  ;;  %v2571_v53 = vand.u32 2147483647, %v2889_v27 }
 0x5e6   : > { %v2549_v5 = vmul.f32 0.6931472, %v2891_v11  ;;  %v2574_v58 = vadd.f32 %v2546_v24, %v2518_v33 }
 0x5e7   : > { %2894 = vlog2.f32 %v2565_v20  ;;  %v2569_v0 = vadd.f32 1.0, %v2568_v38  ;;  %vm2572_vm12 = vcmp.lt.f32.partialorder %v2571_v53, 0.0004427343 }
 0x5e8   : > { %v2555_v44 = vsel %vm2554_vm3, %v2552_v42, %v2549_v5  ;;  %v2579_v1 = vsel %vm2578_vm15, %v2574_v58, 0.0  ;;  %2896 = vrcp.f32 %v3001_v29 }
 0x5e9   : > { %v2893_v57 = vpop.eup %2892  ;;  %v2575_v52 = vadd.f32 %v2555_v44, %v2519_v48  ;;  %v2570_v22 = vmul.f32 %v2889_v27, %v2569_v0 }
 0x5ea   : > { %v2558_v17 = vmul.f32 0.6931472, %v2893_v57 }
 0x5eb   : > { %v2580_v37 = vsel %vm2578_vm15, %v2575_v52, 0.0 }
 0x5ec   : > { %v2564_v16 = vsel %vm2563_vm7, %v2561_v63, %v2558_v17  ;;  %v2581_v41 = vadd.f32 %v2580_v37, %v2579_v1 }
 0x5ed   : > { %v2895_v34 = vpop.eup %2894  ;;  %v2576_v31 = vadd.f32 %v2564_v16, %v2520_v19 }
 0x5ee   : > { %v2567_v13 = vmul.f32 0.6931472, %v2895_v34  ;;  %v2897_v25 = vpop.eup %2896 }
 0x5ef   : > { %v2582_v59 = vsel %vm2578_vm15, %v2576_v31, 0.0  ;;  %v2046_v14 = vmul.f32 128.0, %v2897_v25  ;;  %vm2050_vm9 = vweird.f32 %v2897_v25 }
 0x5f0   : > { %v2573_v2 = vsel %vm2572_vm12, %v2570_v22, %v2567_v13  ;;  %v2583_v43 = vadd.f32 %v2582_v59, %v2581_v41 }
 0x5f1   : > { %v2577_v4 = vadd.f32 %v2573_v2, %v2521_v21  ;;  %v2047_v47 = vsub.f32 1.0, %v2046_v14 }
 0x5f3   : > { %v2584_v40 = vsel %vm2578_vm15, %v2577_v4, 0.0  ;;  %v2048_v61 = vmul.f32 %v2897_v25, %v2047_v47 }
 0x5f4   : > { %v2585_v9 = vadd.f32 %v2584_v40, %v2583_v43 }
 0x5f5   : > { %v2049_v60 = vadd.f32 %v2897_v25, %v2048_v61 }
 0x5f6   : > { %2586 = vadd.xlane.f32.xlu1 %v2585_v9 }
 0x5f7   : > { %v2051_v49 = vsel %vm2050_vm9, %v2897_v25, %v2049_v60 }
 0x5f8   : > { %2779 = vpush %v2051_v49 }
 0x629   : > { %s2780_s23 = spop %2779 }
 0x62a   : > { %v2061_v8 = vpop.xlane.xlu1 %2060  ;;  %s2053_s24 = smul.f32 %s2780_s23, %s2044_s22 }
 0x62b   : > { %v2062_v26 = vrot.slane %v2061_v8, 4 }
 0x62c   : > { %2598 = sst [smem:[#allocation8]] %s2053_s24 }
 0x62d   : > { %v2063_v6 = vadd.f32 %v2062_v26, %v2061_v8  ;;  %2600 = sst [smem:[#allocation8 + $0x1]] %s2053_s24 }
 0x62f   : > { %v2064_v39 = vrot.slane %v2063_v6, 2 }
 0x631   : > { %v2090_v36 = vpop.xlane.xlu0 %2089  ;;  %v2065_v35 = vadd.f32 %v2064_v39, %v2063_v6 }
 0x632   : > { %v2091_v10 = vrot.slane %v2090_v36, 4 }
 0x633   : > { %v2104_v7 = vpop.xlane.xlu1 %2103  ;;  %v2066_v54 = vrot.slane %v2065_v35, 1 }
 0x634   : > { %v2075_v23 = vpop.xlane.xlu2 %2074  ;;  %v2092_v12 = vadd.f32 %v2091_v10, %v2090_v36  ;;  %v2105_v30 = vrot.slane %v2104_v7, 4 }
 0x635   : > { %v2076_v15 = vrot.slane %v2075_v23, 4  ;;  %v2067_v27 = vadd.f32 %v2066_v54, %v2065_v35 }
 0x636   : > { %v2093_v46 = vrot.slane %v2092_v12, 2  ;;  %v2106_v32 = vadd.f32 %v2105_v30, %v2104_v7 }
 0x637   : > { %v2077_v18 = vadd.f32 %v2076_v15, %v2075_v23  ;;  %2781 = vpush %v2067_v27 }
 0x638   : > { %v2094_v48 = vadd.f32 %v2093_v46, %v2092_v12  ;;  %v2107_v28 = vrot.slane %v2106_v32, 2 }
 0x639   : > { %v2078_v62 = vrot.slane %v2077_v18, 2  ;;  %v2132_v11 = vpop.xlane.xlu0 %2131 }
 0x63a   : > { %v2133_v5 = vrot.slane %v2132_v11, 4  ;;  %v2095_v45 = vrot.slane %v2094_v48, 1  ;;  %v2108_v24 = vadd.f32 %v2107_v28, %v2106_v32 }
 0x63b   : > { %v2079_v56 = vadd.f32 %v2078_v62, %v2077_v18 }
 0x63c   : > { %v2118_v51 = vpop.xlane.xlu2 %2117  ;;  %v2134_v55 = vadd.f32 %v2133_v5, %v2132_v11  ;;  %v2096_v44 = vadd.f32 %v2095_v45, %v2094_v48  ;;  %v2109_v52 = vrot.slane %v2108_v24, 1 }
 0x63d   : > { %v2119_v3 = vrot.slane %v2118_v51, 4  ;;  %v2080_v50 = vrot.slane %v2079_v56, 1 }
 0x63e   : > { %v2135_v33 = vrot.slane %v2134_v55, 2  ;;  %v2110_v63 = vadd.f32 %v2109_v52, %v2108_v24 }
 0x63f   : > { %v2120_v20 = vadd.f32 %v2119_v3, %v2118_v51  ;;  %v2081_v42 = vadd.f32 %v2080_v50, %v2079_v56 }
 0x640   : > { %v2136_v17 = vadd.f32 %v2135_v33, %v2134_v55 }
 0x641   : > { %v2121_v38 = vrot.slane %v2120_v20, 2  ;;  %2783 = vpush %v2081_v42 }
 0x642   : > { %2785 = vpush %v2096_v44  ;;  %v2137_v53 = vrot.slane %v2136_v17, 1 }
 0x643   : > { %v2122_v57 = vadd.f32 %v2121_v38, %v2120_v20  ;;  %2787 = vpush %v2110_v63 }
 0x644   : > { %v2138_v58 = vadd.f32 %v2137_v53, %v2136_v17 }
 0x645   : > { %v2123_v0 = vrot.slane %v2122_v57, 1 }
 0x647   : > { %v2124_v19 = vadd.f32 %v2123_v0, %v2122_v57 }
 0x649   : > { %2789 = vpush %v2124_v19 }
 0x64a   : > { %2791 = vpush %v2138_v58 }
 0x668   : > { %s2782_s26 = spop %2781 }
 0x669   : > { %v2587_v16 = vpop.xlane.xlu1 %2586 }
 0x66a   : > { %v2588_v34 = vrot.slane %v2587_v16, 4 }
 0x66c   : > { %v2589_v31 = vadd.f32 %v2588_v34, %v2587_v16 }
 0x66e   : > { %v2590_v37 = vrot.slane %v2589_v31, 2 }
 0x670   : > { %v2591_v13 = vadd.f32 %v2590_v37, %v2589_v31 }
 0x672   : > { %v2592_v22 = vrot.slane %v2591_v13, 1  ;;  %s2784_s27 = spop %2783 }
 0x673   : > { %s2083_s28 = sadd.f32 %s2784_s27, %s2782_s26  ;;  %s2786_s29 = spop %2785 }
 0x674   : > { %v2593_v21 = vadd.f32 %v2592_v22, %v2591_v13  ;;  %s2788_s7 = spop %2787 }
 0x675   : > { %s2098_s30 = sadd.f32 %s2786_s29, %s2083_s28 }
 0x676   : > { %2793 = vpush %v2593_v21 }
 0x677   : > { %s2112_s8 = sadd.f32 %s2788_s7, %s2098_s30 }
 0x67a   : > { %s2790_s9 = spop %2789 }
 0x67b   : > { %s2126_s10 = sadd.f32 %s2790_s9, %s2112_s8  ;;  %s2792_s11 = spop %2791 }
 0x67d   : > { %s2140_s12 = sadd.f32 %s2792_s11, %s2126_s10 }
 0x67f   : > { %s2141_s13 = smul.f32 0.5, %s2140_s12 }
 0x681   : > { %s2595_s14 = smul.f32 0.0001, %s2141_s13 }
 0x683   : > { %2604 = sst [smem:[#allocation8 + $0x3]] %s2595_s14 }
 0x6a7   : > { %s2794_s15 = spop %2793 }
 0x6a8   : > { %s2596_s16 = smul.f32 0.0001, %s2794_s15 }
 0x6aa   : > { %2602 = sst [smem:[#allocation8 + $0x2]] %s2596_s16 }
 0x6ab PF: > { %p2821_p8 = scmp.eq.s32.totalorder %s3047_s25, 1  ;;  %s2611_s19 = sshll.u32 %s5053_s6, 4  ;;  %s2612_s19 = int_to_ptr.hbm [resolvable:$true] %s2611_s19 }
 0x6ac   : > { %s3002_s20 = smov [#allocation8]  }
 0x6ad   : > { %2806 = dma.smem_to_hbm (%p2821_p8), %s3002_s20, 16, %s2612_s19, [#allocation5]  }
 0x6ae   : > { %2985 = dma.done.wait (%p2821_p8), [#allocation5], 16  }
 0x6af   : > { %2987 = vsyncadd (%p2821_p8), [#allocation5], 4294967280 }
 0x6b0   : > { %2620 = sfence }
 0x6b1 PF: > { %s19_s21 = sadd.s32 1, %s2990_s21  }
 0x6b2   : > { %p16_p9 = scmp.ge.s32.totalorder %s19_s21, 4  }
 0x6b4   :  { %18 = sbr.rel (!%p16_p9) target bundleno = 3 (0x3), region = 97 }
 0x6b9   :  { %2626 = vsyncpa [#allocation4], 1 }
 0x6ba   :  { %2628 = vsyncpa [#allocation4 + $0x1], 1 }
 0x6bb   :  { %2629 = vsyncpa [#allocation7], 1 }
 0x6bc   :  { %2630 = vsyncpa [#allocation5], 1 }
 0x6bd   :  { %2632 = vsyncpa [#allocation5 + $0x1], 1 }

</bundles_post_ra>
